<compile_context>
chip_gen: v6e
topology: v6e:2x2x1
jax: 0.10.0
libtpu: 0.0.40
codegen_flags: <defaults>
</compile_context>

<pallas_src>
import jax
import jax.numpy as jnp
import numpy as np
from jax.experimental import pallas as pl
from jax.experimental.pallas import tpu as pltpu

SUB = 8       # sublane granule
LANE = 128    # lane granule


def _round_up(x, m):
    return -(-x // m) * m


# ----------------------------------------------------------------------------
# Pallas kernel: full RealNVP forward, transposed layout
#   features -> sublanes (WR = round_up(w_dim, 8) rows)
#   batch    -> lanes    (TB lanes per grid step, lane-dense)
# All coupling layers unrolled; s/t nets fused; masks folded into the weights.
# ----------------------------------------------------------------------------
def _realnvp_kernel(x_ref, W1, b1, W2, b2, W3, b3, W4, b4, out_ref):
    n_layers = W1.shape[0]
    WR = x_ref.shape[0]                      # sublane-padded feature rows

    def leaky_relu(v):                       # nn.LeakyReLU() default slope 0.01
        return jnp.where(v > 0, v, 0.01 * v)

    x = x_ref[...].astype(jnp.float32)       # (WR, TB); padded rows are exactly 0
    s_acc = jnp.zeros_like(x)                # running sum of s, only WR rows live

    for i in range(n_layers):                # static -> unrolled at trace time
        h = leaky_relu(jnp.dot(W1[i], x, preferred_element_type=jnp.float32) + b1[i])
        h = leaky_relu(jnp.dot(W2[i], h, preferred_element_type=jnp.float32) + b2[i])
        h = leaky_relu(jnp.dot(W3[i], h, preferred_element_type=jnp.float32) + b3[i])
        o = jnp.dot(W4[i], h, preferred_element_type=jnp.float32) + b4[i]   # (2*WR, TB)
        s = jnp.tanh(o[:WR, :])              # masked / padded rows -> o == 0 -> s == 0
        t = o[WR:, :]                        # masked / padded rows -> 0
        x = x * jnp.exp(s) + t               # == inv_mask*(x*exp(s)+t) + mask*x
        s_acc = s_acc + s

    out_ref[0:WR, :] = x.astype(out_ref.dtype)
    # log|det J| = sum_over_features(s): one cross-sublane reduce, packed into
    # the last row of the fused output slab (no separate 128-lane output).
    out_ref[WR:WR + 1, :] = jnp.sum(s_acc, axis=0, keepdims=True).astype(out_ref.dtype)


# ----------------------------------------------------------------------------
# Wrapper
# ----------------------------------------------------------------------------
def _const_index_map(nd):
    return lambda b: (0,) * nd


def _pick_batch_tile(B):
    """Batch is the LANE axis: tiles should be multiples of 128 (or the full
    batch).  Keep >= 2 grid steps whenever possible so the "parallel" axis can
    shard across both TensorCores on v7x; cap at 512 lanes to bound vreg/VMEM
    pressure (per-step overhead ~0.35us stays negligible at that size)."""
    if B <= LANE or B % LANE != 0:
        return B                              # full-dim block (always legal)
    cap = min(512, B // 2)
    cap -= cap % LANE
    for tb in range(cap, LANE - 1, -LANE):
        if B % tb == 0:
            return tb
    return B


def realnvp_forward(xi, fused_params, *, batch_tile=None):
    """xi: (B, w_dim).  fused_params: 8 stacked/transposed arrays from fuse_params()."""
    W1f = fused_params[0]
    L, HR, WR = W1f.shape
    B, w_dim = xi.shape
    OUT_ROWS = WR + 1                         # rows [0, WR) = w, row WR = log_det

    TB = _pick_batch_tile(B) if batch_tile is None else batch_tile
    assert B % TB == 0, (B, TB)

    # Transpose to (features, batch).  Same number of real bytes as xi (no 16x
    # lane padding); padded sublane rows MUST be zero for the folded-mask math.
    xi_t = jnp.zeros((WR, B), jnp.float32).at[:w_dim, :].set(xi.astype(jnp.float32).T)

    grid_spec = pltpu.PrefetchScalarGridSpec(
        num_scalar_prefetch=0,
        grid=(B // TB,),
        in_specs=[pl.BlockSpec((WR, TB), lambda b: (0, b))]            # xi (batch-tiled)
                 + [pl.BlockSpec(p.shape, _const_index_map(p.ndim))    # resident weights
                    for p in fused_params],
        out_specs=pl.BlockSpec((OUT_ROWS, TB), lambda b: (0, b)),      # w + log_det slab
    )

    # Scoped-VMEM estimate (double-buffered tiles + weights + in-kernel
    # intermediates).  Only raise the limit when needed, and clamp it to the
    # chip's physical VMEM (v7x: 64 MiB/TC vs 128 MiB on v5e/v6e).
    weight_bytes = sum(int(p.size) * p.dtype.itemsize for p in fused_params)
    io_bytes = 2 * (WR * TB * 4) + 2 * (OUT_ROWS * TB * 4)
    interm_bytes = 8 * HR * TB * 4
    need = 2 * weight_bytes + io_bytes + interm_bytes + (2 << 20)
    cp_kwargs = dict(dimension_semantics=("parallel",))
    if need > (32 << 20):
        try:
            vmem_cap = int(pltpu.get_tpu_info().vmem_capacity_bytes)
        except Exception:
            vmem_cap = 64 << 20               # v7x is the smallest current part
        cp_kwargs["vmem_limit_bytes"] = int(min(need, vmem_cap - (8 << 20)))

    out = pl.pallas_call(
        _realnvp_kernel,
        out_shape=jax.ShapeDtypeStruct((OUT_ROWS, B), jnp.float32),
        grid_spec=grid_spec,
        compiler_params=pltpu.CompilerParams(**cp_kwargs),
    )(xi_t, *fused_params)

    w = out[:w_dim, :].T                      # (B, w_dim), like PyTorch forward
    log_det = out[WR, :]                      # (B,)
    return w, log_det


# ----------------------------------------------------------------------------
# Parameter construction (mirrors setup_affinecoupling) + offline fusion
# ----------------------------------------------------------------------------
def make_masks(nf_couplingpair, w_dim, seed=0):
    # Same structure as the PyTorch code (np.random.choice with replacement,
    # then the complement mask), made deterministic with a fixed seed.
    rng = np.random.RandomState(seed)
    rows = []
    for _ in range(nf_couplingpair):
        ones = np.ones(w_dim, np.float32)
        ones[rng.choice(w_dim, w_dim // 2)] = 0.0
        rows.append(ones.copy())
        rows.append(1.0 - ones)
    return jnp.asarray(np.stack(rows))


def make_params(key, nf_couplingpair, nf_hidden, w_dim):
    """Raw (unfused) per-network params, PyTorch nn.Linear-style init.
    Weights are stored as (in_dim, out_dim) so y = x @ W + b."""
    L = 2 * nf_couplingpair

    def linear_init(key, fan_in, fan_out):
        kw, kb = jax.random.split(key)
        bound = 1.0 / np.sqrt(fan_in)
        W = jax.random.uniform(kw, (fan_in, fan_out), jnp.float32, -bound, bound)
        b = jax.random.uniform(kb, (fan_out,), jnp.float32, -bound, bound)
        return W, b

    def make_stack(key):
        dims = [(w_dim, nf_hidden), (nf_hidden, nf_hidden),
                (nf_hidden, nf_hidden), (nf_hidden, w_dim)]
        Ws = [[] for _ in range(4)]
        bs = [[] for _ in range(4)]
        keys = jax.random.split(key, L * 4).reshape(L, 4, 2)
        for l in range(L):
            for j, (fi, fo) in enumerate(dims):
                W, b = linear_init(keys[l, j], fi, fo)
                Ws[j].append(W)
                bs[j].append(b)
        out = []
        for j in range(4):
            out.append(jnp.stack(Ws[j]))
            out.append(jnp.stack(bs[j]))
        return tuple(out)  # (W1,b1,W2,b2,W3,b3,W4,b4), each stacked over L

    ks, kt = jax.random.split(key)
    return make_stack(ks), make_stack(kt)


def fuse_params(masks, s_params, t_params):
    """Fold masks into the weights, fuse the s/t nets, transpose everything to
    the y = W @ x convention (features on sublanes, batch on lanes).

    Per coupling layer i:
      W1f (L, HR, WR)    : rows [0,H) = mask-folded s first layer, [H,2H) = t
      W2f/W3f (L, HR, HR): block-diagonal (s block top-left, t block middle)
      W4f (L, 2*WR, HR)  : inv_mask-scaled s head in rows [0,w_dim), t head in
                           rows [WR, WR+w_dim)
      biases             : column vectors (..., 1), broadcast over the lane axis
    """
    sW1, sb1, sW2, sb2, sW3, sb3, sW4, sb4 = s_params
    tW1, tb1, tW2, tb2, tW3, tb3, tW4, tb4 = t_params
    L, w_dim, H = sW1.shape
    WR = _round_up(w_dim, SUB)
    HR = _round_up(2 * H, SUB)
    inv = 1.0 - masks                                               # (L, w_dim)

    def T(a):                                                       # (L,in,out)->(L,out,in)
        return jnp.transpose(a, (0, 2, 1))

    W1f = jnp.zeros((L, HR, WR), jnp.float32)
    W1f = W1f.at[:, :H, :w_dim].set(T(sW1 * masks[:, :, None]))     # mask folded in
    W1f = W1f.at[:, H:2 * H, :w_dim].set(T(tW1 * masks[:, :, None]))
    b1f = jnp.zeros((L, HR, 1), jnp.float32)
    b1f = b1f.at[:, :H, 0].set(sb1).at[:, H:2 * H, 0].set(tb1)

    W2f = jnp.zeros((L, HR, HR), jnp.float32)
    W2f = W2f.at[:, :H, :H].set(T(sW2)).at[:, H:2 * H, H:2 * H].set(T(tW2))
    b2f = jnp.zeros((L, HR, 1), jnp.float32)
    b2f = b2f.at[:, :H, 0].set(sb2).at[:, H:2 * H, 0].set(tb2)

    W3f = jnp.zeros((L, HR, HR), jnp.float32)
    W3f = W3f.at[:, :H, :H].set(T(sW3)).at[:, H:2 * H, H:2 * H].set(T(tW3))
    b3f = jnp.zeros((L, HR, 1), jnp.float32)
    b3f = b3f.at[:, :H, 0].set(sb3).at[:, H:2 * H, 0].set(tb3)

    W4f = jnp.zeros((L, 2 * WR, HR), jnp.float32)
    W4f = W4f.at[:, :w_dim, :H].set(T(sW4 * inv[:, None, :]))       # inv_mask folded in
    W4f = W4f.at[:, WR:WR + w_dim, H:2 * H].set(T(tW4 * inv[:, None, :]))
    b4f = jnp.zeros((L, 2 * WR, 1), jnp.float32)
    b4f = b4f.at[:, :w_dim, 0].set(sb4 * inv).at[:, WR:WR + w_dim, 0].set(tb4 * inv)

    return (W1f, b1f, W2f, b2f, W3f, b3f, W4f, b4f)


# ----------------------------------------------------------------------------
# Pure-JAX reference on the RAW params (mirrors RealNVP.forward exactly)
# ----------------------------------------------------------------------------
def realnvp_reference(xi, masks, s_params, t_params):
    def leaky(x):
        return jnp.where(x > 0, x, 0.01 * x)

    def mlp(x, i, p, final_tanh):
        W1, b1, W2, b2, W3, b3, W4, b4 = p
        h = leaky(x @ W1[i] + b1[i])
        h = leaky(h @ W2[i] + b2[i])
        h = leaky(h @ W3[i] + b3[i])
        o = h @ W4[i] + b4[i]
        return jnp.tanh(o) if final_tanh else o

    w = xi
    log_det = jnp.zeros((xi.shape[0],), jnp.float32)
    for i in range(masks.shape[0]):
        m = masks[i]
        w_ = w * m
        s = mlp(w_, i, s_params, True) * (1 - m)
        t = mlp(w_, i, t_params, False) * (1 - m)
        w = (1 - m) * (w * jnp.exp(s) + t) + w_
        log_det = log_det + s.sum(axis=1)
    return w, log_det


if __name__ == "__main__":
    # Small shapes consistent with the module: w_dim=8 features, hidden=32,
    # 2 coupling pairs -> 4 coupling layers.  batch=512 so the batch grid has
    # 2 steps (TB=256): pipelining + both TensorCores on v7x get work.
    batch, w_dim, nf_hidden, nf_couplingpair = 512, 8, 32, 2

    key = jax.random.PRNGKey(0)
    k_xi, k_par = jax.random.split(key)
    xi = jax.random.normal(k_xi, (batch, w_dim), jnp.float32)

    masks = make_masks(nf_couplingpair, w_dim, seed=0)
    s_params, t_params = make_params(k_par, nf_couplingpair, nf_hidden, w_dim)
    fused = fuse_params(masks, s_params, t_params)

    w_out, log_det = realnvp_forward(xi, fused)
    jax.block_until_ready((w_out, log_det))

    w_ref, ld_ref = realnvp_reference(xi, masks, s_params, t_params)
    assert w_out.shape == (batch, w_dim) and log_det.shape == (batch,)
    np.testing.assert_allclose(np.asarray(w_out), np.asarray(w_ref), rtol=2e-5, atol=2e-5)
    np.testing.assert_allclose(np.asarray(log_det), np.asarray(ld_ref), rtol=2e-5, atol=2e-5)

    print("KERNEL_OK")
</pallas_src>

<mosaic_0001>
module attributes {stable_mosaic.version = 11 : i64} {
  func.func @_realnvp_kernel(%arg0: i32, %arg1: memref<8x256xf32, #tpu.memory_space<vmem>>, %arg2: memref<4x64x8xf32, #tpu.memory_space<vmem>>, %arg3: memref<4x64x1xf32, #tpu.memory_space<vmem>>, %arg4: memref<4x64x64xf32, #tpu.memory_space<vmem>>, %arg5: memref<4x64x1xf32, #tpu.memory_space<vmem>>, %arg6: memref<4x64x64xf32, #tpu.memory_space<vmem>>, %arg7: memref<4x64x1xf32, #tpu.memory_space<vmem>>, %arg8: memref<4x16x64xf32, #tpu.memory_space<vmem>>, %arg9: memref<4x16x1xf32, #tpu.memory_space<vmem>>, %arg10: memref<9x256xf32, #tpu.memory_space<vmem>>) attributes {dimension_semantics = [#tpu.dimension_semantics<parallel>], iteration_bounds = array<i64: 2>, scalar_prefetch = 0 : i64, scratch_operands = 0 : i64, tpu.core_type = #tpu.core_type<tc>, window_params = [{transform_indices = @transform_0, window_bounds = array<i64: 8, 256>}, {pipeline_mode = #tpu.pipeline_mode<synchronous>, transform_indices = @transform_1, window_bounds = array<i64: 4, 64, 8>}, {pipeline_mode = #tpu.pipeline_mode<synchronous>, transform_indices = @transform_2, window_bounds = array<i64: 4, 64, 1>}, {pipeline_mode = #tpu.pipeline_mode<synchronous>, transform_indices = @transform_3, window_bounds = array<i64: 4, 64, 64>}, {pipeline_mode = #tpu.pipeline_mode<synchronous>, transform_indices = @transform_4, window_bounds = array<i64: 4, 64, 1>}, {pipeline_mode = #tpu.pipeline_mode<synchronous>, transform_indices = @transform_5, window_bounds = array<i64: 4, 64, 64>}, {pipeline_mode = #tpu.pipeline_mode<synchronous>, transform_indices = @transform_6, window_bounds = array<i64: 4, 64, 1>}, {pipeline_mode = #tpu.pipeline_mode<synchronous>, transform_indices = @transform_7, window_bounds = array<i64: 4, 16, 64>}, {pipeline_mode = #tpu.pipeline_mode<synchronous>, transform_indices = @transform_8, window_bounds = array<i64: 4, 16, 1>}, {transform_indices = @transform_9, window_bounds = array<i64: 9, 256>}]} {
    %c0 = arith.constant 0 : index
    %c0_0 = arith.constant 0 : index
    %0 = vector.load %arg1[%c0, %c0_0] : memref<8x256xf32, #tpu.memory_space<vmem>>, vector<8x256xf32>
    %cst = arith.constant 0.000000e+00 : f32
    %1 = vector.broadcast %cst : f32 to vector<8x256xf32>
    %c0_1 = arith.constant 0 : index
    %c0_2 = arith.constant 0 : index
    %c0_3 = arith.constant 0 : index
    %2 = vector.load %arg2[%c0_1, %c0_2, %c0_3] : memref<4x64x8xf32, #tpu.memory_space<vmem>>, vector<1x64x8xf32>
    %3 = vector.shape_cast %2 : vector<1x64x8xf32> to vector<64x8xf32>
    %cst_4 = arith.constant dense<0.000000e+00> : vector<64x256xf32>
    %4 = tpu.matmul %3, %0, %cst_4 {dimension_numbers = #tpu.dot_dimension_numbers<[1], [0], [0], [1], [0, 0, 1, 1], [], []>} : vector<64x8xf32>, vector<8x256xf32>, vector<64x256xf32> -> vector<64x256xf32>
    %c0_5 = arith.constant 0 : index
    %c0_6 = arith.constant 0 : index
    %c0_7 = arith.constant 0 : index
    %5 = vector.load %arg3[%c0_5, %c0_6, %c0_7] : memref<4x64x1xf32, #tpu.memory_space<vmem>>, vector<1x64x1xf32>
    %6 = vector.shape_cast %5 : vector<1x64x1xf32> to vector<64x1xf32>
    %7 = vector.broadcast %6 : vector<64x1xf32> to vector<64x256xf32>
    %8 = arith.addf %4, %7 : vector<64x256xf32>
    %cst_8 = arith.constant 0.000000e+00 : f32
    %9 = vector.broadcast %cst_8 : f32 to vector<64x256xf32>
    %10 = arith.cmpf ogt, %8, %9 : vector<64x256xf32>
    %cst_9 = arith.constant 0.00999999977 : f32
    %11 = vector.broadcast %cst_9 : f32 to vector<64x256xf32>
    %12 = arith.mulf %11, %8 : vector<64x256xf32>
    %13 = arith.select %10, %8, %12 : vector<64x256xi1>, vector<64x256xf32>
    %c0_10 = arith.constant 0 : index
    %c0_11 = arith.constant 0 : index
    %c0_12 = arith.constant 0 : index
    %14 = vector.load %arg4[%c0_10, %c0_11, %c0_12] : memref<4x64x64xf32, #tpu.memory_space<vmem>>, vector<1x64x64xf32>
    %15 = vector.shape_cast %14 : vector<1x64x64xf32> to vector<64x64xf32>
    %cst_13 = arith.constant dense<0.000000e+00> : vector<64x256xf32>
    %16 = tpu.matmul %15, %13, %cst_13 {dimension_numbers = #tpu.dot_dimension_numbers<[1], [0], [0], [1], [0, 0, 1, 1], [], []>} : vector<64x64xf32>, vector<64x256xf32>, vector<64x256xf32> -> vector<64x256xf32>
    %c0_14 = arith.constant 0 : index
    %c0_15 = arith.constant 0 : index
    %c0_16 = arith.constant 0 : index
    %17 = vector.load %arg5[%c0_14, %c0_15, %c0_16] : memref<4x64x1xf32, #tpu.memory_space<vmem>>, vector<1x64x1xf32>
    %18 = vector.shape_cast %17 : vector<1x64x1xf32> to vector<64x1xf32>
    %19 = vector.broadcast %18 : vector<64x1xf32> to vector<64x256xf32>
    %20 = arith.addf %16, %19 : vector<64x256xf32>
    %cst_17 = arith.constant 0.000000e+00 : f32
    %21 = vector.broadcast %cst_17 : f32 to vector<64x256xf32>
    %22 = arith.cmpf ogt, %20, %21 : vector<64x256xf32>
    %cst_18 = arith.constant 0.00999999977 : f32
    %23 = vector.broadcast %cst_18 : f32 to vector<64x256xf32>
    %24 = arith.mulf %23, %20 : vector<64x256xf32>
    %25 = arith.select %22, %20, %24 : vector<64x256xi1>, vector<64x256xf32>
    %c0_19 = arith.constant 0 : index
    %c0_20 = arith.constant 0 : index
    %c0_21 = arith.constant 0 : index
    %26 = vector.load %arg6[%c0_19, %c0_20, %c0_21] : memref<4x64x64xf32, #tpu.memory_space<vmem>>, vector<1x64x64xf32>
    %27 = vector.shape_cast %26 : vector<1x64x64xf32> to vector<64x64xf32>
    %cst_22 = arith.constant dense<0.000000e+00> : vector<64x256xf32>
    %28 = tpu.matmul %27, %25, %cst_22 {dimension_numbers = #tpu.dot_dimension_numbers<[1], [0], [0], [1], [0, 0, 1, 1], [], []>} : vector<64x64xf32>, vector<64x256xf32>, vector<64x256xf32> -> vector<64x256xf32>
    %c0_23 = arith.constant 0 : index
    %c0_24 = arith.constant 0 : index
    %c0_25 = arith.constant 0 : index
    %29 = vector.load %arg7[%c0_23, %c0_24, %c0_25] : memref<4x64x1xf32, #tpu.memory_space<vmem>>, vector<1x64x1xf32>
    %30 = vector.shape_cast %29 : vector<1x64x1xf32> to vector<64x1xf32>
    %31 = vector.broadcast %30 : vector<64x1xf32> to vector<64x256xf32>
    %32 = arith.addf %28, %31 : vector<64x256xf32>
    %cst_26 = arith.constant 0.000000e+00 : f32
    %33 = vector.broadcast %cst_26 : f32 to vector<64x256xf32>
    %34 = arith.cmpf ogt, %32, %33 : vector<64x256xf32>
    %cst_27 = arith.constant 0.00999999977 : f32
    %35 = vector.broadcast %cst_27 : f32 to vector<64x256xf32>
    %36 = arith.mulf %35, %32 : vector<64x256xf32>
    %37 = arith.select %34, %32, %36 : vector<64x256xi1>, vector<64x256xf32>
    %c0_28 = arith.constant 0 : index
    %c0_29 = arith.constant 0 : index
    %c0_30 = arith.constant 0 : index
    %38 = vector.load %arg8[%c0_28, %c0_29, %c0_30] : memref<4x16x64xf32, #tpu.memory_space<vmem>>, vector<1x16x64xf32>
    %39 = vector.shape_cast %38 : vector<1x16x64xf32> to vector<16x64xf32>
    %cst_31 = arith.constant dense<0.000000e+00> : vector<16x256xf32>
    %40 = tpu.matmul %39, %37, %cst_31 {dimension_numbers = #tpu.dot_dimension_numbers<[1], [0], [0], [1], [0, 0, 1, 1], [], []>} : vector<16x64xf32>, vector<64x256xf32>, vector<16x256xf32> -> vector<16x256xf32>
    %c0_32 = arith.constant 0 : index
    %c0_33 = arith.constant 0 : index
    %c0_34 = arith.constant 0 : index
    %41 = vector.load %arg9[%c0_32, %c0_33, %c0_34] : memref<4x16x1xf32, #tpu.memory_space<vmem>>, vector<1x16x1xf32>
    %42 = vector.shape_cast %41 : vector<1x16x1xf32> to vector<16x1xf32>
    %43 = vector.broadcast %42 : vector<16x1xf32> to vector<16x256xf32>
    %44 = arith.addf %40, %43 : vector<16x256xf32>
    %45 = vector.extract_strided_slice %44 {offsets = [0, 0], sizes = [8, 256], strides = [1, 1]} : vector<16x256xf32> to vector<8x256xf32>
    %46 = math.tanh %45 : vector<8x256xf32>
    %47 = vector.extract_strided_slice %44 {offsets = [8, 0], sizes = [8, 256], strides = [1, 1]} : vector<16x256xf32> to vector<8x256xf32>
    %48 = math.exp %46 : vector<8x256xf32>
    %49 = arith.mulf %0, %48 : vector<8x256xf32>
    %50 = arith.addf %49, %47 : vector<8x256xf32>
    %51 = arith.addf %1, %46 : vector<8x256xf32>
    %c1 = arith.constant 1 : index
    %c0_35 = arith.constant 0 : index
    %c0_36 = arith.constant 0 : index
    %52 = vector.load %arg2[%c1, %c0_35, %c0_36] : memref<4x64x8xf32, #tpu.memory_space<vmem>>, vector<1x64x8xf32>
    %53 = vector.shape_cast %52 : vector<1x64x8xf32> to vector<64x8xf32>
    %cst_37 = arith.constant dense<0.000000e+00> : vector<64x256xf32>
    %54 = tpu.matmul %53, %50, %cst_37 {dimension_numbers = #tpu.dot_dimension_numbers<[1], [0], [0], [1], [0, 0, 1, 1], [], []>} : vector<64x8xf32>, vector<8x256xf32>, vector<64x256xf32> -> vector<64x256xf32>
    %c1_38 = arith.constant 1 : index
    %c0_39 = arith.constant 0 : index
    %c0_40 = arith.constant 0 : index
    %55 = vector.load %arg3[%c1_38, %c0_39, %c0_40] : memref<4x64x1xf32, #tpu.memory_space<vmem>>, vector<1x64x1xf32>
    %56 = vector.shape_cast %55 : vector<1x64x1xf32> to vector<64x1xf32>
    %57 = vector.broadcast %56 : vector<64x1xf32> to vector<64x256xf32>
    %58 = arith.addf %54, %57 : vector<64x256xf32>
    %cst_41 = arith.constant 0.000000e+00 : f32
    %59 = vector.broadcast %cst_41 : f32 to vector<64x256xf32>
    %60 = arith.cmpf ogt, %58, %59 : vector<64x256xf32>
    %cst_42 = arith.constant 0.00999999977 : f32
    %61 = vector.broadcast %cst_42 : f32 to vector<64x256xf32>
    %62 = arith.mulf %61, %58 : vector<64x256xf32>
    %63 = arith.select %60, %58, %62 : vector<64x256xi1>, vector<64x256xf32>
    %c1_43 = arith.constant 1 : index
    %c0_44 = arith.constant 0 : index
    %c0_45 = arith.constant 0 : index
    %64 = vector.load %arg4[%c1_43, %c0_44, %c0_45] : memref<4x64x64xf32, #tpu.memory_space<vmem>>, vector<1x64x64xf32>
    %65 = vector.shape_cast %64 : vector<1x64x64xf32> to vector<64x64xf32>
    %cst_46 = arith.constant dense<0.000000e+00> : vector<64x256xf32>
    %66 = tpu.matmul %65, %63, %cst_46 {dimension_numbers = #tpu.dot_dimension_numbers<[1], [0], [0], [1], [0, 0, 1, 1], [], []>} : vector<64x64xf32>, vector<64x256xf32>, vector<64x256xf32> -> vector<64x256xf32>
    %c1_47 = arith.constant 1 : index
    %c0_48 = arith.constant 0 : index
    %c0_49 = arith.constant 0 : index
    %67 = vector.load %arg5[%c1_47, %c0_48, %c0_49] : memref<4x64x1xf32, #tpu.memory_space<vmem>>, vector<1x64x1xf32>
    %68 = vector.shape_cast %67 : vector<1x64x1xf32> to vector<64x1xf32>
    %69 = vector.broadcast %68 : vector<64x1xf32> to vector<64x256xf32>
    %70 = arith.addf %66, %69 : vector<64x256xf32>
    %cst_50 = arith.constant 0.000000e+00 : f32
    %71 = vector.broadcast %cst_50 : f32 to vector<64x256xf32>
    %72 = arith.cmpf ogt, %70, %71 : vector<64x256xf32>
    %cst_51 = arith.constant 0.00999999977 : f32
    %73 = vector.broadcast %cst_51 : f32 to vector<64x256xf32>
    %74 = arith.mulf %73, %70 : vector<64x256xf32>
    %75 = arith.select %72, %70, %74 : vector<64x256xi1>, vector<64x256xf32>
    %c1_52 = arith.constant 1 : index
    %c0_53 = arith.constant 0 : index
    %c0_54 = arith.constant 0 : index
    %76 = vector.load %arg6[%c1_52, %c0_53, %c0_54] : memref<4x64x64xf32, #tpu.memory_space<vmem>>, vector<1x64x64xf32>
    %77 = vector.shape_cast %76 : vector<1x64x64xf32> to vector<64x64xf32>
    %cst_55 = arith.constant dense<0.000000e+00> : vector<64x256xf32>
    %78 = tpu.matmul %77, %75, %cst_55 {dimension_numbers = #tpu.dot_dimension_numbers<[1], [0], [0], [1], [0, 0, 1, 1], [], []>} : vector<64x64xf32>, vector<64x256xf32>, vector<64x256xf32> -> vector<64x256xf32>
    %c1_56 = arith.constant 1 : index
    %c0_57 = arith.constant 0 : index
    %c0_58 = arith.constant 0 : index
    %79 = vector.load %arg7[%c1_56, %c0_57, %c0_58] : memref<4x64x1xf32, #tpu.memory_space<vmem>>, vector<1x64x1xf32>
    %80 = vector.shape_cast %79 : vector<1x64x1xf32> to vector<64x1xf32>
    %81 = vector.broadcast %80 : vector<64x1xf32> to vector<64x256xf32>
    %82 = arith.addf %78, %81 : vector<64x256xf32>
    %cst_59 = arith.constant 0.000000e+00 : f32
    %83 = vector.broadcast %cst_59 : f32 to vector<64x256xf32>
    %84 = arith.cmpf ogt, %82, %83 : vector<64x256xf32>
    %cst_60 = arith.constant 0.00999999977 : f32
    %85 = vector.broadcast %cst_60 : f32 to vector<64x256xf32>
    %86 = arith.mulf %85, %82 : vector<64x256xf32>
    %87 = arith.select %84, %82, %86 : vector<64x256xi1>, vector<64x256xf32>
    %c1_61 = arith.constant 1 : index
    %c0_62 = arith.constant 0 : index
    %c0_63 = arith.constant 0 : index
    %88 = vector.load %arg8[%c1_61, %c0_62, %c0_63] : memref<4x16x64xf32, #tpu.memory_space<vmem>>, vector<1x16x64xf32>
    %89 = vector.shape_cast %88 : vector<1x16x64xf32> to vector<16x64xf32>
    %cst_64 = arith.constant dense<0.000000e+00> : vector<16x256xf32>
    %90 = tpu.matmul %89, %87, %cst_64 {dimension_numbers = #tpu.dot_dimension_numbers<[1], [0], [0], [1], [0, 0, 1, 1], [], []>} : vector<16x64xf32>, vector<64x256xf32>, vector<16x256xf32> -> vector<16x256xf32>
    %c1_65 = arith.constant 1 : index
    %c0_66 = arith.constant 0 : index
    %c0_67 = arith.constant 0 : index
    %91 = vector.load %arg9[%c1_65, %c0_66, %c0_67] : memref<4x16x1xf32, #tpu.memory_space<vmem>>, vector<1x16x1xf32>
    %92 = vector.shape_cast %91 : vector<1x16x1xf32> to vector<16x1xf32>
    %93 = vector.broadcast %92 : vector<16x1xf32> to vector<16x256xf32>
    %94 = arith.addf %90, %93 : vector<16x256xf32>
    %95 = vector.extract_strided_slice %94 {offsets = [0, 0], sizes = [8, 256], strides = [1, 1]} : vector<16x256xf32> to vector<8x256xf32>
    %96 = math.tanh %95 : vector<8x256xf32>
    %97 = vector.extract_strided_slice %94 {offsets = [8, 0], sizes = [8, 256], strides = [1, 1]} : vector<16x256xf32> to vector<8x256xf32>
    %98 = math.exp %96 : vector<8x256xf32>
    %99 = arith.mulf %50, %98 : vector<8x256xf32>
    %100 = arith.addf %99, %97 : vector<8x256xf32>
    %101 = arith.addf %51, %96 : vector<8x256xf32>
    %c2 = arith.constant 2 : index
    %c0_68 = arith.constant 0 : index
    %c0_69 = arith.constant 0 : index
    %102 = vector.load %arg2[%c2, %c0_68, %c0_69] : memref<4x64x8xf32, #tpu.memory_space<vmem>>, vector<1x64x8xf32>
    %103 = vector.shape_cast %102 : vector<1x64x8xf32> to vector<64x8xf32>
    %cst_70 = arith.constant dense<0.000000e+00> : vector<64x256xf32>
    %104 = tpu.matmul %103, %100, %cst_70 {dimension_numbers = #tpu.dot_dimension_numbers<[1], [0], [0], [1], [0, 0, 1, 1], [], []>} : vector<64x8xf32>, vector<8x256xf32>, vector<64x256xf32> -> vector<64x256xf32>
    %c2_71 = arith.constant 2 : index
    %c0_72 = arith.constant 0 : index
    %c0_73 = arith.constant 0 : index
    %105 = vector.load %arg3[%c2_71, %c0_72, %c0_73] : memref<4x64x1xf32, #tpu.memory_space<vmem>>, vector<1x64x1xf32>
    %106 = vector.shape_cast %105 : vector<1x64x1xf32> to vector<64x1xf32>
    %107 = vector.broadcast %106 : vector<64x1xf32> to vector<64x256xf32>
    %108 = arith.addf %104, %107 : vector<64x256xf32>
    %cst_74 = arith.constant 0.000000e+00 : f32
    %109 = vector.broadcast %cst_74 : f32 to vector<64x256xf32>
    %110 = arith.cmpf ogt, %108, %109 : vector<64x256xf32>
    %cst_75 = arith.constant 0.00999999977 : f32
    %111 = vector.broadcast %cst_75 : f32 to vector<64x256xf32>
    %112 = arith.mulf %111, %108 : vector<64x256xf32>
    %113 = arith.select %110, %108, %112 : vector<64x256xi1>, vector<64x256xf32>
    %c2_76 = arith.constant 2 : index
    %c0_77 = arith.constant 0 : index
    %c0_78 = arith.constant 0 : index
    %114 = vector.load %arg4[%c2_76, %c0_77, %c0_78] : memref<4x64x64xf32, #tpu.memory_space<vmem>>, vector<1x64x64xf32>
    %115 = vector.shape_cast %114 : vector<1x64x64xf32> to vector<64x64xf32>
    %cst_79 = arith.constant dense<0.000000e+00> : vector<64x256xf32>
    %116 = tpu.matmul %115, %113, %cst_79 {dimension_numbers = #tpu.dot_dimension_numbers<[1], [0], [0], [1], [0, 0, 1, 1], [], []>} : vector<64x64xf32>, vector<64x256xf32>, vector<64x256xf32> -> vector<64x256xf32>
    %c2_80 = arith.constant 2 : index
    %c0_81 = arith.constant 0 : index
    %c0_82 = arith.constant 0 : index
    %117 = vector.load %arg5[%c2_80, %c0_81, %c0_82] : memref<4x64x1xf32, #tpu.memory_space<vmem>>, vector<1x64x1xf32>
    %118 = vector.shape_cast %117 : vector<1x64x1xf32> to vector<64x1xf32>
    %119 = vector.broadcast %118 : vector<64x1xf32> to vector<64x256xf32>
    %120 = arith.addf %116, %119 : vector<64x256xf32>
    %cst_83 = arith.constant 0.000000e+00 : f32
    %121 = vector.broadcast %cst_83 : f32 to vector<64x256xf32>
    %122 = arith.cmpf ogt, %120, %121 : vector<64x256xf32>
    %cst_84 = arith.constant 0.00999999977 : f32
    %123 = vector.broadcast %cst_84 : f32 to vector<64x256xf32>
    %124 = arith.mulf %123, %120 : vector<64x256xf32>
    %125 = arith.select %122, %120, %124 : vector<64x256xi1>, vector<64x256xf32>
    %c2_85 = arith.constant 2 : index
    %c0_86 = arith.constant 0 : index
    %c0_87 = arith.constant 0 : index
    %126 = vector.load %arg6[%c2_85, %c0_86, %c0_87] : memref<4x64x64xf32, #tpu.memory_space<vmem>>, vector<1x64x64xf32>
    %127 = vector.shape_cast %126 : vector<1x64x64xf32> to vector<64x64xf32>
    %cst_88 = arith.constant dense<0.000000e+00> : vector<64x256xf32>
    %128 = tpu.matmul %127, %125, %cst_88 {dimension_numbers = #tpu.dot_dimension_numbers<[1], [0], [0], [1], [0, 0, 1, 1], [], []>} : vector<64x64xf32>, vector<64x256xf32>, vector<64x256xf32> -> vector<64x256xf32>
    %c2_89 = arith.constant 2 : index
    %c0_90 = arith.constant 0 : index
    %c0_91 = arith.constant 0 : index
    %129 = vector.load %arg7[%c2_89, %c0_90, %c0_91] : memref<4x64x1xf32, #tpu.memory_space<vmem>>, vector<1x64x1xf32>
    %130 = vector.shape_cast %129 : vector<1x64x1xf32> to vector<64x1xf32>
    %131 = vector.broadcast %130 : vector<64x1xf32> to vector<64x256xf32>
    %132 = arith.addf %128, %131 : vector<64x256xf32>
    %cst_92 = arith.constant 0.000000e+00 : f32
    %133 = vector.broadcast %cst_92 : f32 to vector<64x256xf32>
    %134 = arith.cmpf ogt, %132, %133 : vector<64x256xf32>
    %cst_93 = arith.constant 0.00999999977 : f32
    %135 = vector.broadcast %cst_93 : f32 to vector<64x256xf32>
    %136 = arith.mulf %135, %132 : vector<64x256xf32>
    %137 = arith.select %134, %132, %136 : vector<64x256xi1>, vector<64x256xf32>
    %c2_94 = arith.constant 2 : index
    %c0_95 = arith.constant 0 : index
    %c0_96 = arith.constant 0 : index
    %138 = vector.load %arg8[%c2_94, %c0_95, %c0_96] : memref<4x16x64xf32, #tpu.memory_space<vmem>>, vector<1x16x64xf32>
    %139 = vector.shape_cast %138 : vector<1x16x64xf32> to vector<16x64xf32>
    %cst_97 = arith.constant dense<0.000000e+00> : vector<16x256xf32>
    %140 = tpu.matmul %139, %137, %cst_97 {dimension_numbers = #tpu.dot_dimension_numbers<[1], [0], [0], [1], [0, 0, 1, 1], [], []>} : vector<16x64xf32>, vector<64x256xf32>, vector<16x256xf32> -> vector<16x256xf32>
    %c2_98 = arith.constant 2 : index
    %c0_99 = arith.constant 0 : index
    %c0_100 = arith.constant 0 : index
    %141 = vector.load %arg9[%c2_98, %c0_99, %c0_100] : memref<4x16x1xf32, #tpu.memory_space<vmem>>, vector<1x16x1xf32>
    %142 = vector.shape_cast %141 : vector<1x16x1xf32> to vector<16x1xf32>
    %143 = vector.broadcast %142 : vector<16x1xf32> to vector<16x256xf32>
    %144 = arith.addf %140, %143 : vector<16x256xf32>
    %145 = vector.extract_strided_slice %144 {offsets = [0, 0], sizes = [8, 256], strides = [1, 1]} : vector<16x256xf32> to vector<8x256xf32>
    %146 = math.tanh %145 : vector<8x256xf32>
    %147 = vector.extract_strided_slice %144 {offsets = [8, 0], sizes = [8, 256], strides = [1, 1]} : vector<16x256xf32> to vector<8x256xf32>
    %148 = math.exp %146 : vector<8x256xf32>
    %149 = arith.mulf %100, %148 : vector<8x256xf32>
    %150 = arith.addf %149, %147 : vector<8x256xf32>
    %151 = arith.addf %101, %146 : vector<8x256xf32>
    %c3 = arith.constant 3 : index
    %c0_101 = arith.constant 0 : index
    %c0_102 = arith.constant 0 : index
    %152 = vector.load %arg2[%c3, %c0_101, %c0_102] : memref<4x64x8xf32, #tpu.memory_space<vmem>>, vector<1x64x8xf32>
    %153 = vector.shape_cast %152 : vector<1x64x8xf32> to vector<64x8xf32>
    %cst_103 = arith.constant dense<0.000000e+00> : vector<64x256xf32>
    %154 = tpu.matmul %153, %150, %cst_103 {dimension_numbers = #tpu.dot_dimension_numbers<[1], [0], [0], [1], [0, 0, 1, 1], [], []>} : vector<64x8xf32>, vector<8x256xf32>, vector<64x256xf32> -> vector<64x256xf32>
    %c3_104 = arith.constant 3 : index
    %c0_105 = arith.constant 0 : index
    %c0_106 = arith.constant 0 : index
    %155 = vector.load %arg3[%c3_104, %c0_105, %c0_106] : memref<4x64x1xf32, #tpu.memory_space<vmem>>, vector<1x64x1xf32>
    %156 = vector.shape_cast %155 : vector<1x64x1xf32> to vector<64x1xf32>
    %157 = vector.broadcast %156 : vector<64x1xf32> to vector<64x256xf32>
    %158 = arith.addf %154, %157 : vector<64x256xf32>
    %cst_107 = arith.constant 0.000000e+00 : f32
    %159 = vector.broadcast %cst_107 : f32 to vector<64x256xf32>
    %160 = arith.cmpf ogt, %158, %159 : vector<64x256xf32>
    %cst_108 = arith.constant 0.00999999977 : f32
    %161 = vector.broadcast %cst_108 : f32 to vector<64x256xf32>
    %162 = arith.mulf %161, %158 : vector<64x256xf32>
    %163 = arith.select %160, %158, %162 : vector<64x256xi1>, vector<64x256xf32>
    %c3_109 = arith.constant 3 : index
    %c0_110 = arith.constant 0 : index
    %c0_111 = arith.constant 0 : index
    %164 = vector.load %arg4[%c3_109, %c0_110, %c0_111] : memref<4x64x64xf32, #tpu.memory_space<vmem>>, vector<1x64x64xf32>
    %165 = vector.shape_cast %164 : vector<1x64x64xf32> to vector<64x64xf32>
    %cst_112 = arith.constant dense<0.000000e+00> : vector<64x256xf32>
    %166 = tpu.matmul %165, %163, %cst_112 {dimension_numbers = #tpu.dot_dimension_numbers<[1], [0], [0], [1], [0, 0, 1, 1], [], []>} : vector<64x64xf32>, vector<64x256xf32>, vector<64x256xf32> -> vector<64x256xf32>
    %c3_113 = arith.constant 3 : index
    %c0_114 = arith.constant 0 : index
    %c0_115 = arith.constant 0 : index
    %167 = vector.load %arg5[%c3_113, %c0_114, %c0_115] : memref<4x64x1xf32, #tpu.memory_space<vmem>>, vector<1x64x1xf32>
    %168 = vector.shape_cast %167 : vector<1x64x1xf32> to vector<64x1xf32>
    %169 = vector.broadcast %168 : vector<64x1xf32> to vector<64x256xf32>
    %170 = arith.addf %166, %169 : vector<64x256xf32>
    %cst_116 = arith.constant 0.000000e+00 : f32
    %171 = vector.broadcast %cst_116 : f32 to vector<64x256xf32>
    %172 = arith.cmpf ogt, %170, %171 : vector<64x256xf32>
    %cst_117 = arith.constant 0.00999999977 : f32
    %173 = vector.broadcast %cst_117 : f32 to vector<64x256xf32>
    %174 = arith.mulf %173, %170 : vector<64x256xf32>
    %175 = arith.select %172, %170, %174 : vector<64x256xi1>, vector<64x256xf32>
    %c3_118 = arith.constant 3 : index
    %c0_119 = arith.constant 0 : index
    %c0_120 = arith.constant 0 : index
    %176 = vector.load %arg6[%c3_118, %c0_119, %c0_120] : memref<4x64x64xf32, #tpu.memory_space<vmem>>, vector<1x64x64xf32>
    %177 = vector.shape_cast %176 : vector<1x64x64xf32> to vector<64x64xf32>
    %cst_121 = arith.constant dense<0.000000e+00> : vector<64x256xf32>
    %178 = tpu.matmul %177, %175, %cst_121 {dimension_numbers = #tpu.dot_dimension_numbers<[1], [0], [0], [1], [0, 0, 1, 1], [], []>} : vector<64x64xf32>, vector<64x256xf32>, vector<64x256xf32> -> vector<64x256xf32>
    %c3_122 = arith.constant 3 : index
    %c0_123 = arith.constant 0 : index
    %c0_124 = arith.constant 0 : index
    %179 = vector.load %arg7[%c3_122, %c0_123, %c0_124] : memref<4x64x1xf32, #tpu.memory_space<vmem>>, vector<1x64x1xf32>
    %180 = vector.shape_cast %179 : vector<1x64x1xf32> to vector<64x1xf32>
    %181 = vector.broadcast %180 : vector<64x1xf32> to vector<64x256xf32>
    %182 = arith.addf %178, %181 : vector<64x256xf32>
    %cst_125 = arith.constant 0.000000e+00 : f32
    %183 = vector.broadcast %cst_125 : f32 to vector<64x256xf32>
    %184 = arith.cmpf ogt, %182, %183 : vector<64x256xf32>
    %cst_126 = arith.constant 0.00999999977 : f32
    %185 = vector.broadcast %cst_126 : f32 to vector<64x256xf32>
    %186 = arith.mulf %185, %182 : vector<64x256xf32>
    %187 = arith.select %184, %182, %186 : vector<64x256xi1>, vector<64x256xf32>
    %c3_127 = arith.constant 3 : index
    %c0_128 = arith.constant 0 : index
    %c0_129 = arith.constant 0 : index
    %188 = vector.load %arg8[%c3_127, %c0_128, %c0_129] : memref<4x16x64xf32, #tpu.memory_space<vmem>>, vector<1x16x64xf32>
    %189 = vector.shape_cast %188 : vector<1x16x64xf32> to vector<16x64xf32>
    %cst_130 = arith.constant dense<0.000000e+00> : vector<16x256xf32>
    %190 = tpu.matmul %189, %187, %cst_130 {dimension_numbers = #tpu.dot_dimension_numbers<[1], [0], [0], [1], [0, 0, 1, 1], [], []>} : vector<16x64xf32>, vector<64x256xf32>, vector<16x256xf32> -> vector<16x256xf32>
    %c3_131 = arith.constant 3 : index
    %c0_132 = arith.constant 0 : index
    %c0_133 = arith.constant 0 : index
    %191 = vector.load %arg9[%c3_131, %c0_132, %c0_133] : memref<4x16x1xf32, #tpu.memory_space<vmem>>, vector<1x16x1xf32>
    %192 = vector.shape_cast %191 : vector<1x16x1xf32> to vector<16x1xf32>
    %193 = vector.broadcast %192 : vector<16x1xf32> to vector<16x256xf32>
    %194 = arith.addf %190, %193 : vector<16x256xf32>
    %195 = vector.extract_strided_slice %194 {offsets = [0, 0], sizes = [8, 256], strides = [1, 1]} : vector<16x256xf32> to vector<8x256xf32>
    %196 = math.tanh %195 : vector<8x256xf32>
    %197 = vector.extract_strided_slice %194 {offsets = [8, 0], sizes = [8, 256], strides = [1, 1]} : vector<16x256xf32> to vector<8x256xf32>
    %198 = math.exp %196 : vector<8x256xf32>
    %199 = arith.mulf %150, %198 : vector<8x256xf32>
    %200 = arith.addf %199, %197 : vector<8x256xf32>
    %201 = arith.addf %151, %196 : vector<8x256xf32>
    %c0_134 = arith.constant 0 : index
    %c0_135 = arith.constant 0 : index
    %202 = vector.load %arg10[%c0_134, %c0_135] : memref<9x256xf32, #tpu.memory_space<vmem>>, vector<8x256xf32>
    tpu.vector_store %arg10[%c0_134, %c0_135], %200 {strides = array<i32>} : memref<9x256xf32, #tpu.memory_space<vmem>>, vector<8x256xf32>,
    %cst_136 = arith.constant dense<0.000000e+00> : vector<256xf32>
    %203 = vector.multi_reduction <add>, %201, %cst_136 [0] : vector<8x256xf32> to vector<256xf32>
    %204 = vector.shape_cast %203 : vector<256xf32> to vector<1x256xf32>
    %c8 = arith.constant 8 : index
    %c0_137 = arith.constant 0 : index
    %205 = vector.load %arg10[%c8, %c0_137] : memref<9x256xf32, #tpu.memory_space<vmem>>, vector<1x256xf32>
    tpu.vector_store %arg10[%c8, %c0_137], %204 {strides = array<i32>} : memref<9x256xf32, #tpu.memory_space<vmem>>, vector<1x256xf32>,
    return
  }
  func.func @transform_0(%arg0: i32) -> (i32, i32) {
    %c0_i32 = arith.constant 0 : i32
    %c0_i32_0 = arith.constant 0 : i32
    return %c0_i32, %arg0 : i32, i32
  }
  func.func @transform_1(%arg0: i32) -> (i32, i32, i32) {
    %c0_i32 = arith.constant 0 : i32
    %c0_i32_0 = arith.constant 0 : i32
    %c0_i32_1 = arith.constant 0 : i32
    %c0_i32_2 = arith.constant 0 : i32
    return %c0_i32, %c0_i32_0, %c0_i32_1 : i32, i32, i32
  }
  func.func @transform_2(%arg0: i32) -> (i32, i32, i32) {
    %c0_i32 = arith.constant 0 : i32
    %c0_i32_0 = arith.constant 0 : i32
    %c0_i32_1 = arith.constant 0 : i32
    %c0_i32_2 = arith.constant 0 : i32
    return %c0_i32, %c0_i32_0, %c0_i32_1 : i32, i32, i32
  }
  func.func @transform_3(%arg0: i32) -> (i32, i32, i32) {
    %c0_i32 = arith.constant 0 : i32
    %c0_i32_0 = arith.constant 0 : i32
    %c0_i32_1 = arith.constant 0 : i32
    %c0_i32_2 = arith.constant 0 : i32
    return %c0_i32, %c0_i32_0, %c0_i32_1 : i32, i32, i32
  }
  func.func @transform_4(%arg0: i32) -> (i32, i32, i32) {
    %c0_i32 = arith.constant 0 : i32
    %c0_i32_0 = arith.constant 0 : i32
    %c0_i32_1 = arith.constant 0 : i32
    %c0_i32_2 = arith.constant 0 : i32
    return %c0_i32, %c0_i32_0, %c0_i32_1 : i32, i32, i32
  }
  func.func @transform_5(%arg0: i32) -> (i32, i32, i32) {
    %c0_i32 = arith.constant 0 : i32
    %c0_i32_0 = arith.constant 0 : i32
    %c0_i32_1 = arith.constant 0 : i32
    %c0_i32_2 = arith.constant 0 : i32
    return %c0_i32, %c0_i32_0, %c0_i32_1 : i32, i32, i32
  }
  func.func @transform_6(%arg0: i32) -> (i32, i32, i32) {
    %c0_i32 = arith.constant 0 : i32
    %c0_i32_0 = arith.constant 0 : i32
    %c0_i32_1 = arith.constant 0 : i32
    %c0_i32_2 = arith.constant 0 : i32
    return %c0_i32, %c0_i32_0, %c0_i32_1 : i32, i32, i32
  }
  func.func @transform_7(%arg0: i32) -> (i32, i32, i32) {
    %c0_i32 = arith.constant 0 : i32
    %c0_i32_0 = arith.constant 0 : i32
    %c0_i32_1 = arith.constant 0 : i32
    %c0_i32_2 = arith.constant 0 : i32
    return %c0_i32, %c0_i32_0, %c0_i32_1 : i32, i32, i32
  }
  func.func @transform_8(%arg0: i32) -> (i32, i32, i32) {
    %c0_i32 = arith.constant 0 : i32
    %c0_i32_0 = arith.constant 0 : i32
    %c0_i32_1 = arith.constant 0 : i32
    %c0_i32_2 = arith.constant 0 : i32
    return %c0_i32, %c0_i32_0, %c0_i32_1 : i32, i32, i32
  }
  func.func @transform_9(%arg0: i32) -> (i32, i32) {
    %c0_i32 = arith.constant 0 : i32
    %c0_i32_0 = arith.constant 0 : i32
    return %c0_i32, %arg0 : i32, i32
  }
}

</mosaic_0001>

<bundles_post_ra>
// kernel: tpu_custom_call.1
= control target key start
LH: loop header
LB: loop body
LE: loop exit
PB: predicated region body
PF: predicated region fallthrough
CT: control target
= control target key end

     0   :  { %14 = vsyncpa [#allocation3], 0  ;;  %s5396_s0 = inlined_call_operand.vmem [shape: f32[8,512], index: 0, kind: input, shape index: {}]   ;;  %s5397_s1 = inlined_call_operand.vmem [shape: f32[4,64,8], index: 1, kind: input, shape index: {}]   ;;  %s5398_s2 = inlined_call_operand.vmem [shape: f32[4,64,1], index: 2, kind: input, shape index: {}]   ;;  %s5399_s3 = inlined_call_operand.vmem [shape: f32[4,64,64], index: 3, kind: input, shape index: {}]   ;;  %s5400_s4 = inlined_call_operand.vmem [shape: f32[4,64,1], index: 4, kind: input, shape index: {}]   ;;  %s5401_s5 = inlined_call_operand.vmem [shape: f32[4,64,64], index: 5, kind: input, shape index: {}]   ;;  %s5402_s6 = inlined_call_operand.vmem [shape: f32[4,64,1], index: 6, kind: input, shape index: {}]   ;;  %s5403_s7 = inlined_call_operand.vmem [shape: f32[4,16,64], index: 7, kind: input, shape index: {}]   ;;  %s5404_s8 = inlined_call_operand.vmem [shape: f32[4,16,1], index: 8, kind: input, shape index: {}]   ;;  %s5405_s9 = inlined_call_operand.hbm [shape: f32[9,512], index: 9, kind: output, shape index: {}]  }
   0x1   :  { %16 = vsyncpa [#allocation3 + $0x1], 0  ;;  %s4279_s30 = smov 0   ;;  %s4281_s10 = smov 0  }
   0x2   :  { %s4283_s11 = smov 0   ;;  %s4285_s12 = smov 0  }
   0x3 LB: > { %s4300_s13 = sadd.s32 4294967295, %s4220_s12   ;;  %s3805_s14 = sadd.s32 4294967294, %s4220_s12   ;;  %s4220_s12 = sphi %s4285_s12, %s5411_s12   ;;  %s4216_s11 = sphi %s4283_s11, %s5410_s11   ;;  %s4212_s10 = sphi %s4281_s10, %s5409_s10   ;;  %s4208_s30 = sphi %s4279_s30, %s5408_s30  }
   0x4   : > { %s4304_s15 = sadd.s32 1, %s4220_s12   ;;  %s223_s16 = sadd.s32 1, %s4216_s11 }
   0x5   : > { %s220_s17 = ssub.s32 %s4220_s12, %s4304_s15  ;;  %p233_p0 = scmp.ne.s32.totalorder %s4216_s11, %s4212_s10 }
   0x6   : > { %p221_p1 = scmp.eq.s32.totalorder %s220_s17, 0  ;;  %p234_p2 = scmp.eq.s32.totalorder %s4300_s13, 1 }
   0x7   : > { %p239_p3 = scmp.ne.s32.totalorder %s4212_s10, %s4208_s30  ;;  %p240_p4 = scmp.eq.s32.totalorder %s3805_s14, 1 }
   0x8   : > { %s4315_s18 = scalar_select %p221_p1, %s4216_s11, %s223_s16  }
   0x9   : > { %p4317_p5 = por %p234_p2, %p233_p0  ;;  %p4321_p6 = por %p240_p4, %p239_p3 }
   0xa   : > { %p3808_p7 = scmp.ge.s32.totalorder %s4220_s12, 1  ;;  %p291_p8 = scmp.lt.s32.totalorder %s4220_s12, 3 }
   0xc   : > { %p292_p9 = pnand %p3808_p7, %p291_p8 }
   0xd   : > { %s3810_s25 = sshll.u32 (!%p292_p9), %s4300_s13, 1  ;;  %s324_s17 = sand.u32 (!%p292_p9), 1, %s4212_s10  }
   0xe   : > { %295 = sbr.rel (%p292_p9) target bundleno = 3899 (0xf3b), region = 56  ;;  %p328_p10 = scmp.lt.s32.totalorder (!%p292_p9), %s3810_s25, 3 }
   0xf   : > { %s3809_s22 = sshll.u32 (!%p292_p9), %s324_s17, 5  ;;  %s4078_s24 = sshll.u32 (!%p292_p9), %s4300_s13, 8 }
  0x10   : > { %s326_s23 = scalar_lea.vmem (!%p292_p9), [#allocation2], %s3809_s22  ;;  %s5352_s27 = scalar_lea.hbm (!%p292_p9), %s5405_s9, %s4078_s24 }
  0x11   : > { %s5356_s13 = scalar_lea.sflag (!%p292_p9), [#allocation3], %s324_s17  ;;  %s4225_s29 = smov (!%p292_p9), [#allocation2]  }
  0x13   : > { %v351_v0 = vld [vmem:[%s5398_s2 + $0x38] sm:$0xff]  ;;  %v349_v1 = vld [vmem:[%s5398_s2 + $0x28] sm:$0xff]  ;;  %v4222_v2 = vmov 0   ;;  %v350_v3 = vld [vmem:[%s5398_s2 + $0x30] sm:$0xff]  ;;  %s5413_s25 = smov (!%p328_p10, %s3810_s25), 3  ;;  %v4223_v5 = vmov 0.0  }
  0x14   : > { %4125 = vset.pattern.permute.xlu1 %v4222_v2  ;;  %4124 = vset.pattern.permute.xlu0 %v4222_v2  ;;  %v348_v4 = vld [vmem:[%s5398_s2 + $0x20] sm:$0xff]  ;;  %s3811_s14 = sshll.u32 %s5413_s25, 3  ;;  %v347_v6 = vld [vmem:[%s5398_s2 + $0x18] sm:$0xff]  ;;  %v346_v9 = vld [vmem:[%s5398_s2 + $0x10] sm:$0xff]  ;;  %vm392_vm0 = vcmask 64512  }
  0x15   : > { %389 = vperm.xlu0 %4124, %v351_v0   ;;  %379 = vperm.xlu1 %4125, %v349_v1   ;;  %s4345_s21 = scalar_lea.vmem %s5396_s0, %s3811_s14  ;;  %v336_v10 = vld [vmem:[%s5397_s1] sm:$0xff]  ;;  %v345_v11 = vld [vmem:[%s5398_s2 + $0x8] sm:$0xff]  ;;  %v593_v14 = vld [vmem:[%s5400_s4 + $0x38] sm:$0xff]  ;;  %s4164_s14 = sshll.u32 %s4225_s29, 4  ;;  %s4165_s14 = int_to_ptr.vmem [resolvable:$false] %s4164_s14 }
  0x16   : > { %481 = vmatprep.mubr.f32.mxu0 %v4223_v5  ;;  %723 = vmatprep.mubr.f32.mxu1 %v4223_v5  ;;  %v335_v7 = vld [vmem:[%s4345_s21 + $0x8] sm:$0xff]  ;;  %v334_v8 = vld [vmem:[%s4345_s21] sm:$0xff]  ;;  %v592_v15 = vld [vmem:[%s5400_s4 + $0x30] sm:$0xff]  ;;  %s4166_s16 = scalar_lea.vmem %s4165_s14, 1024 }
  0x17   : > { %447 = vmatprep.subr.mxu0 %v335_v7  ;;  %v344_v12 = vld [vmem:[%s5398_s2] sm:$0xff]  ;;  %v337_v13 = vld [vmem:[%s5397_s1 + $0x8] sm:$0xff]  ;;  %v338_v16 = vld [vmem:[%s5397_s1 + $0x10] sm:$0xff] }
  0x18   : > { %448 = vmatpush1.msra.mxu0 %v334_v8  ;;  %v591_v17 = vld [vmem:[%s5400_s4 + $0x28] sm:$0xff]  ;;  %v590_v18 = vld [vmem:[%s5400_s4 + $0x20] sm:$0xff]  ;;  %v339_v19 = vld [vmem:[%s5397_s1 + $0x18] sm:$0xff] }
  0x19   : > { %384 = vperm.xlu0 %4124, %v350_v3   ;;  %374 = vperm.xlu1 %4125, %v348_v4   ;;  %v589_v20 = vld [vmem:[%s5400_s4 + $0x18] sm:$0xff]  ;;  %v588_v21 = vld [vmem:[%s5400_s4 + $0x10] sm:$0xff]  ;;  %v340_v22 = vld [vmem:[%s5397_s1 + $0x20] sm:$0xff] }
  0x1a   : > { %3812 = vmatmul.mubr.msk.f32.vlgmr.msra.gmra.mxu0 %vm392_vm0, %v336_v10  ;;  %v587_v23 = vld [vmem:[%s5400_s4 + $0x8] sm:$0xff]  ;;  %v586_v24 = vld [vmem:[%s5400_s4] sm:$0xff]  ;;  %v835_v26 = vld [vmem:[%s5402_s6 + $0x38] sm:$0xff] }
  0x1b   : > { %487 = vmatprep.mubr.f32.mxu0 %v4223_v5  ;;  %v341_v25 = vld [vmem:[%s5397_s1 + $0x28] sm:$0xff]  ;;  %v834_v27 = vld [vmem:[%s5402_s6 + $0x30] sm:$0xff]  ;;  %v832_v30 = vld [vmem:[%s5402_s6 + $0x20] sm:$0xff] }
  0x1c   : > { %v342_v28 = vld [vmem:[%s5397_s1 + $0x30] sm:$0xff]  ;;  %v833_v29 = vld [vmem:[%s5402_s6 + $0x28] sm:$0xff]  ;;  %v343_v31 = vld [vmem:[%s5397_s1 + $0x38] sm:$0xff] }
  0x1d   : > { %369 = vperm.xlu0 %4124, %v347_v6   ;;  %364 = vperm.xlu1 %4125, %v346_v9   ;;  %v831_v32 = vld [vmem:[%s5402_s6 + $0x18] sm:$0xff]  ;;  %v830_v33 = vld [vmem:[%s5402_s6 + $0x10] sm:$0xff]  ;;  %v829_v34 = vld [vmem:[%s5402_s6 + $0x8] sm:$0xff] }
  0x1e   : > { %3813 = vmatmul.mubr.msk.f32.gmra.mxu0 %vm392_vm0, %v337_v13  ;;  %v828_v35 = vld [vmem:[%s5402_s6] sm:$0xff]  ;;  %v1064_v37 = vld [vmem:[%s5404_s8 + $0x8] sm:$0xff]  ;;  %v3853_v38 = vld [vmem:[%s5398_s2 + $0x78] sm:$0xff] }
  0x1f   : > { %493 = vmatprep.mubr.f32.mxu0 %v4223_v5  ;;  %v1063_v36 = vld [vmem:[%s5404_s8] sm:$0xff]  ;;  %v3852_v39 = vld [vmem:[%s5398_s2 + $0x70] sm:$0xff]  ;;  %v3851_v40 = vld [vmem:[%s5398_s2 + $0x68] sm:$0xff] }
  0x20   : > { %v3850_v41 = vld [vmem:[%s5398_s2 + $0x60] sm:$0xff]  ;;  %v3849_v42 = vld [vmem:[%s5398_s2 + $0x58] sm:$0xff]  ;;  %v3848_v43 = vld [vmem:[%s5398_s2 + $0x50] sm:$0xff] }
  0x21   : > { %359 = vperm.xlu0 %4124, %v345_v11   ;;  %354 = vperm.xlu1 %4125, %v344_v12   ;;  %v3847_v44 = vld [vmem:[%s5398_s2 + $0x48] sm:$0xff]  ;;  %v3846_v45 = vld [vmem:[%s5398_s2 + $0x40] sm:$0xff]  ;;  %v3877_v46 = vld [vmem:[%s5400_s4 + $0x78] sm:$0xff] }
  0x22   : > { %3814 = vmatmul.mubr.msk.f32.gmra.mxu0 %vm392_vm0, %v338_v16  ;;  %v3876_v47 = vld [vmem:[%s5400_s4 + $0x70] sm:$0xff]  ;;  %v3875_v48 = vld [vmem:[%s5400_s4 + $0x68] sm:$0xff]  ;;  %v3874_v49 = vld [vmem:[%s5400_s4 + $0x60] sm:$0xff] }
  0x23   : > { %499 = vmatprep.mubr.f32.mxu0 %v4223_v5  ;;  %v3873_v50 = vld [vmem:[%s5400_s4 + $0x58] sm:$0xff]  ;;  %v3872_v51 = vld [vmem:[%s5400_s4 + $0x50] sm:$0xff]  ;;  %v3871_v52 = vld [vmem:[%s5400_s4 + $0x48] sm:$0xff] }
  0x24   : > { %v3870_v53 = vld [vmem:[%s5400_s4 + $0x40] sm:$0xff]  ;;  %v3901_v54 = vld [vmem:[%s5402_s6 + $0x78] sm:$0xff]  ;;  %v3900_v55 = vld [vmem:[%s5402_s6 + $0x70] sm:$0xff] }
  0x25   : > { %631 = vperm.xlu0 %4124, %v593_v14   ;;  %626 = vperm.xlu1 %4125, %v592_v15   ;;  %v3899_v56 = vld [vmem:[%s5402_s6 + $0x68] sm:$0xff]  ;;  %v3898_v57 = vld [vmem:[%s5402_s6 + $0x60] sm:$0xff]  ;;  %v3897_v58 = vld [vmem:[%s5402_s6 + $0x58] sm:$0xff] }
  0x26   : > { %3815 = vmatmul.mubr.msk.f32.gmra.mxu0 %vm392_vm0, %v339_v19  ;;  %v3896_v59 = vld [vmem:[%s5402_s6 + $0x50] sm:$0xff]  ;;  %v3895_v60 = vld [vmem:[%s5402_s6 + $0x48] sm:$0xff]  ;;  %v3894_v61 = vld [vmem:[%s5402_s6 + $0x40] sm:$0xff] }
  0x27   : > { %505 = vmatprep.mubr.f32.mxu0 %v4223_v5  ;;  %v3912_v62 = vld [vmem:[%s5404_s8 + $0x10] sm:$0xff]  ;;  %v3913_v63 = vld [vmem:[%s5404_s8 + $0x18] sm:$0xff]  ;;  %v3929_v2 = vld [vmem:[%s5398_s2 + $0xa8] sm:$0xff] }
  0x28   : > { %v3931_v0 = vld [vmem:[%s5398_s2 + $0xb8] sm:$0xff]  ;;  %v3930_v1 = vld [vmem:[%s5398_s2 + $0xb0] sm:$0xff]  ;;  %v3928_v3 = vld [vmem:[%s5398_s2 + $0xa0] sm:$0xff] }
  0x29   : > { %621 = vperm.xlu0 %4124, %v591_v17   ;;  %616 = vperm.xlu1 %4125, %v590_v18   ;;  %v3927_v4 = vld [vmem:[%s5398_s2 + $0x98] sm:$0xff]  ;;  %v3926_v6 = vld [vmem:[%s5398_s2 + $0x90] sm:$0xff]  ;;  %v3925_v7 = vld [vmem:[%s5398_s2 + $0x88] sm:$0xff] }
  0x2a   : > { %3816 = vmatmul.mubr.msk.f32.gmra.mxu0 %vm392_vm0, %v340_v22  ;;  %v3924_v8 = vld [vmem:[%s5398_s2 + $0x80] sm:$0xff]  ;;  %v3955_v9 = vld [vmem:[%s5400_s4 + $0xb8] sm:$0xff]  ;;  %v3954_v10 = vld [vmem:[%s5400_s4 + $0xb0] sm:$0xff] }
  0x2b   : > { %511 = vmatprep.mubr.f32.mxu0 %v4223_v5  ;;  %v3953_v11 = vld [vmem:[%s5400_s4 + $0xa8] sm:$0xff]  ;;  %v3952_v12 = vld [vmem:[%s5400_s4 + $0xa0] sm:$0xff]  ;;  %v3951_v13 = vld [vmem:[%s5400_s4 + $0x98] sm:$0xff] }
  0x2c   : > { %v3950_v14 = vld [vmem:[%s5400_s4 + $0x90] sm:$0xff]  ;;  %v3949_v15 = vld [vmem:[%s5400_s4 + $0x88] sm:$0xff]  ;;  %v3948_v16 = vld [vmem:[%s5400_s4 + $0x80] sm:$0xff] }
  0x2d   : > { %611 = vperm.xlu0 %4124, %v589_v20   ;;  %606 = vperm.xlu1 %4125, %v588_v21   ;;  %v3979_v17 = vld [vmem:[%s5402_s6 + $0xb8] sm:$0xff]  ;;  %v3978_v18 = vld [vmem:[%s5402_s6 + $0xb0] sm:$0xff]  ;;  %v3977_v19 = vld [vmem:[%s5402_s6 + $0xa8] sm:$0xff] }
  0x2e   : > { %3817 = vmatmul.mubr.msk.f32.gmra.mxu0 %vm392_vm0, %v341_v25  ;;  %v3976_v20 = vld [vmem:[%s5402_s6 + $0xa0] sm:$0xff]  ;;  %v3975_v21 = vld [vmem:[%s5402_s6 + $0x98] sm:$0xff]  ;;  %v3974_v22 = vld [vmem:[%s5402_s6 + $0x90] sm:$0xff] }
  0x2f   : > { %517 = vmatprep.mubr.f32.mxu0 %v4223_v5  ;;  %v3990_v25 = vld [vmem:[%s5404_s8 + $0x20] sm:$0xff] }
  0x31   : > { %601 = vperm.xlu0 %4124, %v587_v23   ;;  %596 = vperm.xlu1 %4125, %v586_v24   ;;  %v3973_v23 = vld [vmem:[%s5402_s6 + $0x88] sm:$0xff]  ;;  %v3972_v24 = vld [vmem:[%s5402_s6 + $0x80] sm:$0xff] }
  0x32   : > { %3818 = vmatmul.mubr.msk.f32.gmra.mxu0 %vm392_vm0, %v342_v28  ;;  %v4008_v28 = vld [vmem:[%s5398_s2 + $0xf0] sm:$0xff] }
  0x33   : > { %523 = vmatprep.mubr.f32.mxu0 %v4223_v5 }
  0x35   : > { %873 = vperm.xlu0 %4124, %v835_v26   ;;  %868 = vperm.xlu1 %4125, %v834_v27   ;;  %v3991_v26 = vld [vmem:[%s5404_s8 + $0x28] sm:$0xff]  ;;  %v4009_v27 = vld [vmem:[%s5398_s2 + $0xf8] sm:$0xff] }
  0x36   : > { %3819 = vmatmul.mubr.msk.f32.gmra.mxu0 %vm392_vm0, %v343_v31  ;;  %v4005_v31 = vld [vmem:[%s5398_s2 + $0xd8] sm:$0xff] }
  0x37   : > { %964 = vmatprep.mubr.f32.mxu0 %v4223_v5 }
  0x39   : > { %863 = vperm.xlu0 %4124, %v833_v29   ;;  %858 = vperm.xlu1 %4125, %v832_v30   ;;  %v4007_v29 = vld [vmem:[%s5398_s2 + $0xe8] sm:$0xff]  ;;  %v4006_v30 = vld [vmem:[%s5398_s2 + $0xe0] sm:$0xff] }
  0x3d   : > { %853 = vperm.xlu0 %4124, %v831_v32   ;;  %848 = vperm.xlu1 %4125, %v830_v33   ;;  %v4004_v32 = vld [vmem:[%s5398_s2 + $0xd0] sm:$0xff]  ;;  %v4003_v33 = vld [vmem:[%s5398_s2 + $0xc8] sm:$0xff] }
  0x41   : > { %843 = vperm.xlu0 %4124, %v829_v34   ;;  %838 = vperm.xlu1 %4125, %v828_v35   ;;  %v4002_v34 = vld [vmem:[%s5398_s2 + $0xc0] sm:$0xff]  ;;  %v4033_v35 = vld [vmem:[%s5400_s4 + $0xf8] sm:$0xff] }
  0x45   : > { %1067 = vperm.xlu0 %4124, %v1063_v36   ;;  %1072 = vperm.xlu1 %4125, %v1064_v37   ;;  %v4032_v36 = vld [vmem:[%s5400_s4 + $0xf0] sm:$0xff]  ;;  %v4031_v37 = vld [vmem:[%s5400_s4 + $0xe8] sm:$0xff] }
  0x49   : > { %1225 = vperm.xlu0 %4124, %v3853_v38   ;;  %1220 = vperm.xlu1 %4125, %v3852_v39   ;;  %v4030_v38 = vld [vmem:[%s5400_s4 + $0xe0] sm:$0xff]  ;;  %v4029_v39 = vld [vmem:[%s5400_s4 + $0xd8] sm:$0xff] }
  0x4d   : > { %1215 = vperm.xlu0 %4124, %v3851_v40   ;;  %1210 = vperm.xlu1 %4125, %v3850_v41   ;;  %v4028_v40 = vld [vmem:[%s5400_s4 + $0xd0] sm:$0xff]  ;;  %v4027_v41 = vld [vmem:[%s5400_s4 + $0xc8] sm:$0xff] }
  0x51   : > { %1205 = vperm.xlu0 %4124, %v3849_v42   ;;  %1200 = vperm.xlu1 %4125, %v3848_v43   ;;  %v4026_v42 = vld [vmem:[%s5400_s4 + $0xc0] sm:$0xff]  ;;  %v4057_v43 = vld [vmem:[%s5402_s6 + $0xf8] sm:$0xff] }
  0x55   : > { %1195 = vperm.xlu0 %4124, %v3847_v44   ;;  %1190 = vperm.xlu1 %4125, %v3846_v45   ;;  %v4056_v44 = vld [vmem:[%s5402_s6 + $0xf0] sm:$0xff]  ;;  %v4055_v45 = vld [vmem:[%s5402_s6 + $0xe8] sm:$0xff] }
  0x59   : > { %1468 = vperm.xlu0 %4124, %v3877_v46   ;;  %1463 = vperm.xlu1 %4125, %v3876_v47   ;;  %v4054_v46 = vld [vmem:[%s5402_s6 + $0xe0] sm:$0xff] }
  0x5d   : > { %1458 = vperm.xlu0 %4124, %v3875_v48   ;;  %1453 = vperm.xlu1 %4125, %v3874_v49   ;;  %v4053_v49 = vld [vmem:[%s5402_s6 + $0xd8] sm:$0xff] }
  0x61   : > { %1448 = vperm.xlu0 %4124, %v3873_v50   ;;  %1443 = vperm.xlu1 %4125, %v3872_v51   ;;  %v4052_v50 = vld [vmem:[%s5402_s6 + $0xd0] sm:$0xff]  ;;  %v4051_v51 = vld [vmem:[%s5402_s6 + $0xc8] sm:$0xff] }
  0x65   : > { %1438 = vperm.xlu0 %4124, %v3871_v52   ;;  %1433 = vperm.xlu1 %4125, %v3870_v53   ;;  %v4050_v52 = vld [vmem:[%s5402_s6 + $0xc0] sm:$0xff] }
  0x69   : > { %1711 = vperm.xlu0 %4124, %v3901_v54   ;;  %1706 = vperm.xlu1 %4125, %v3900_v55  }
  0x6d   : > { %1701 = vperm.xlu0 %4124, %v3899_v56   ;;  %1696 = vperm.xlu1 %4125, %v3898_v57   ;;  %v4068_v56 = vld [vmem:[%s5404_s8 + $0x30] sm:$0xff]  ;;  %v4069_v57 = vld [vmem:[%s5404_s8 + $0x38] sm:$0xff] }
  0x71   : > { %1691 = vperm.xlu0 %4124, %v3897_v58   ;;  %1686 = vperm.xlu1 %4125, %v3896_v59  }
  0x75   : > { %1681 = vperm.xlu0 %4124, %v3895_v60   ;;  %1676 = vperm.xlu1 %4125, %v3894_v61  }
  0x79   : > { %1907 = vperm.xlu0 %4124, %v3912_v62   ;;  %1912 = vperm.xlu1 %4125, %v3913_v63  }
  0x7d   : > { %2065 = vperm.xlu0 %4124, %v3931_v0   ;;  %2060 = vperm.xlu1 %4125, %v3930_v1  }
  0x81   : > { %2055 = vperm.xlu0 %4124, %v3929_v2   ;;  %2050 = vperm.xlu1 %4125, %v3928_v3  }
  0x85   : > { %2045 = vperm.xlu0 %4124, %v3927_v4   ;;  %2040 = vperm.xlu1 %4125, %v3926_v6  }
  0x89   : > { %2035 = vperm.xlu0 %4124, %v3925_v7   ;;  %2030 = vperm.xlu1 %4125, %v3924_v8  }
  0x8d   : > { %2308 = vperm.xlu0 %4124, %v3955_v9   ;;  %2303 = vperm.xlu1 %4125, %v3954_v10  }
  0x90   : > { %v390_v47 = vpop.permute.xlu0 %389  ;;  %v380_v48 = vpop.permute.xlu1 %379 }
  0x91   : > { %2298 = vperm.xlu0 %4124, %v3953_v11   ;;  %2293 = vperm.xlu1 %4125, %v3952_v12  }
  0x94   : > { %v385_v53 = vpop.permute.xlu0 %384  ;;  %v375_v54 = vpop.permute.xlu1 %374 }
  0x95   : > { %2288 = vperm.xlu0 %4124, %v3951_v13   ;;  %2283 = vperm.xlu1 %4125, %v3950_v14  }
  0x98   : > { %v370_v59 = vpop.permute.xlu0 %369  ;;  %v365_v60 = vpop.permute.xlu1 %364 }
  0x99   : > { %2278 = vperm.xlu0 %4124, %v3949_v15   ;;  %2273 = vperm.xlu1 %4125, %v3948_v16  }
  0x9d   : > { %2551 = vperm.xlu0 %4124, %v3979_v17   ;;  %2546 = vperm.xlu1 %4125, %v3978_v18  }
  0xa1   : > { %2541 = vperm.xlu0 %4124, %v3977_v19   ;;  %2536 = vperm.xlu1 %4125, %v3976_v20  }
  0xa5   : > { %2531 = vperm.xlu0 %4124, %v3975_v21   ;;  %2526 = vperm.xlu1 %4125, %v3974_v22  }
  0xa9   : > { %2521 = vperm.xlu0 %4124, %v3973_v23   ;;  %2516 = vperm.xlu1 %4125, %v3972_v24  }
  0xad   : > { %2747 = vperm.xlu0 %4124, %v3990_v25   ;;  %2752 = vperm.xlu1 %4125, %v3991_v26  }
  0xb1   : > { %2905 = vperm.xlu0 %4124, %v4009_v27   ;;  %2900 = vperm.xlu1 %4125, %v4008_v28  }
  0xb5   : > { %2895 = vperm.xlu0 %4124, %v4007_v29   ;;  %2890 = vperm.xlu1 %4125, %v4006_v30  }
  0xb9   : > { %2885 = vperm.xlu0 %4124, %v4005_v31   ;;  %2880 = vperm.xlu1 %4125, %v4004_v32  }
  0xbd   : > { %2875 = vperm.xlu0 %4124, %v4003_v33   ;;  %2870 = vperm.xlu1 %4125, %v4002_v34   ;;  %v360_v33 = vpop.permute.xlu0 %359 }
  0xc1   : > { %3148 = vperm.xlu0 %4124, %v4033_v35   ;;  %3143 = vperm.xlu1 %4125, %v4032_v36  }
  0xc5   : > { %3138 = vperm.xlu0 %4124, %v4031_v37   ;;  %3133 = vperm.xlu1 %4125, %v4030_v38  }
  0xc9   : > { %3128 = vperm.xlu0 %4124, %v4029_v39   ;;  %3123 = vperm.xlu1 %4125, %v4028_v40   ;;  %v355_v40 = vpop.permute.xlu1 %354 }
  0xcd   : > { %3118 = vperm.xlu0 %4124, %v4027_v41   ;;  %3113 = vperm.xlu1 %4125, %v4026_v42  }
  0xd1   : > { %3391 = vperm.xlu0 %4124, %v4057_v43   ;;  %3386 = vperm.xlu1 %4125, %v4056_v44  }
  0xd5   : > { %3381 = vperm.xlu0 %4124, %v4055_v45   ;;  %3376 = vperm.xlu1 %4125, %v4054_v46  }
  0xd9   : > { %3371 = vperm.xlu0 %4124, %v4053_v49   ;;  %3366 = vperm.xlu1 %4125, %v4052_v50  }
  0xda   : > { %v4683_v55 = vpop.f32.mrf.mxu0 }
  0xdc   : > { %v4691_v58 = vpop.f32.mrf.mxu0 }
  0xdd   : > { %3361 = vperm.xlu0 %4124, %v4051_v51   ;;  %3356 = vperm.xlu1 %4125, %v4050_v52   ;;  %v486_v44 = vadd.f32 %v4691_v58, %v355_v40 }
  0xde   : > { %v489_v61 = vpop.f32.mrf.mxu0 }
  0xdf   : > { %v490_v41 = vadd.f32 %v489_v61, %v360_v33  ;;  %vm531_vm15 = vcmp.gt.f32.partialorder %v486_v44, 0.0  ;;  %v578_v61 = vld [vmem:[%s5399_s3] sm:$0xff] }
  0xe0   : > { %v491_v62 = vpop.f32.mrf.mxu0 }
  0xe1   : > { %3587 = vperm.xlu0 %4124, %v4068_v56   ;;  %3592 = vperm.xlu1 %4125, %v4069_v57   ;;  %v492_v37 = vadd.f32 %v491_v62, %v360_v33  ;;  %v548_v52 = vmul.f32 0.01, %v490_v41  ;;  %vm532_vm14 = vcmp.gt.f32.partialorder %v490_v41, 0.0 }
  0xe2   : > { %v495_v63 = vpop.f32.mrf.mxu0 }
  0xe3   : > { %v496_v34 = vadd.f32 %v495_v63, %v365_v60  ;;  %v549_v50 = vmul.f32 0.01, %v492_v37  ;;  %vm533_vm13 = vcmp.gt.f32.partialorder %v492_v37, 0.0  ;;  %v579_v63 = vld [vmem:[%s5399_s3 + $0x8] sm:$0xff] }
  0xe4   : > { %v497_v0 = vpop.f32.mrf.mxu0 }
  0xe5   : > { %v498_v30 = vadd.f32 %v497_v0, %v365_v60  ;;  %vm534_vm12 = vcmp.gt.f32.partialorder %v496_v34, 0.0  ;;  %v580_v0 = vld [vmem:[%s5399_s3 + $0x10] sm:$0xff] }
  0xe6   : > { %v501_v1 = vpop.f32.mrf.mxu0 }
  0xe7   : > { %v502_v27 = vadd.f32 %v501_v1, %v370_v59  ;;  %v551_v45 = vmul.f32 0.01, %v498_v30  ;;  %vm535_vm11 = vcmp.gt.f32.partialorder %v498_v30, 0.0  ;;  %v581_v1 = vld [vmem:[%s5399_s3 + $0x18] sm:$0xff] }
  0xe8   : > { %v503_v2 = vpop.f32.mrf.mxu0 }
  0xe9   : > { %v504_v24 = vadd.f32 %v503_v2, %v370_v59  ;;  %v552_v42 = vmul.f32 0.01, %v502_v27  ;;  %vm536_vm10 = vcmp.gt.f32.partialorder %v502_v27, 0.0  ;;  %v567_v56 = vsel %vm535_vm11, %v498_v30, %v551_v45  ;;  %v582_v2 = vld [vmem:[%s5399_s3 + $0x20] sm:$0xff] }
  0xea   : > { %v507_v3 = vpop.f32.mrf.mxu0  ;;  %v564_v59 = vsel %vm532_vm14, %v490_v41, %v548_v52 }
  0xeb   : > { %v508_v22 = vadd.f32 %v507_v3, %v375_v54  ;;  %v553_v38 = vmul.f32 0.01, %v504_v24  ;;  %vm537_vm9 = vcmp.gt.f32.partialorder %v504_v24, 0.0  ;;  %v583_v3 = vld [vmem:[%s5399_s3 + $0x28] sm:$0xff] }
  0xec   : > { %v509_v4 = vpop.f32.mrf.mxu0 }
  0xed   : > { %v510_v17 = vadd.f32 %v509_v4, %v375_v54  ;;  %v554_v35 = vmul.f32 0.01, %v508_v22  ;;  %vm538_vm8 = vcmp.gt.f32.partialorder %v508_v22, 0.0  ;;  %v569_v51 = vsel %vm537_vm9, %v504_v24, %v553_v38  ;;  %v584_v4 = vld [vmem:[%s5399_s3 + $0x30] sm:$0xff] }
  0xee   : > { %v513_v6 = vpop.f32.mrf.mxu0  ;;  %v547_v54 = vmul.f32 0.01, %v486_v44 }
  0xef   : > { %v514_v18 = vadd.f32 %v513_v6, %v380_v48  ;;  %v555_v31 = vmul.f32 0.01, %v510_v17  ;;  %vm539_vm7 = vcmp.gt.f32.partialorder %v510_v17, 0.0  ;;  %v570_v49 = vsel %vm538_vm8, %v508_v22, %v554_v35  ;;  %v585_v6 = vld [vmem:[%s5399_s3 + $0x38] sm:$0xff] }
  0xf0   : > { %v515_v7 = vpop.f32.mrf.mxu0  ;;  %v563_v60 = vsel %vm531_vm15, %v486_v44, %v547_v54 }
  0xf1   : > { %v516_v15 = vadd.f32 %v515_v7, %v380_v48  ;;  %v556_v28 = vmul.f32 0.01, %v514_v18  ;;  %vm540_vm6 = vcmp.gt.f32.partialorder %v514_v18, 0.0  ;;  %v571_v46 = vsel %vm539_vm7, %v510_v17, %v555_v31  ;;  %v632_v17 = vpop.permute.xlu0 %631 }
  0xf2   : > { %v519_v8 = vpop.f32.mrf.mxu0  ;;  %v550_v48 = vmul.f32 0.01, %v496_v34 }
  0xf3   : > { %v520_v13 = vadd.f32 %v519_v8, %v385_v53  ;;  %v557_v25 = vmul.f32 0.01, %v516_v15  ;;  %vm541_vm5 = vcmp.gt.f32.partialorder %v516_v15, 0.0  ;;  %v572_v43 = vsel %vm540_vm6, %v514_v18, %v556_v28 }
  0xf4   : > { %v521_v9 = vpop.f32.mrf.mxu0  ;;  %v566_v58 = vsel %vm534_vm12, %v496_v34, %v550_v48 }
  0xf5   : > { %v522_v11 = vadd.f32 %v521_v9, %v385_v53  ;;  %v558_v23 = vmul.f32 0.01, %v520_v13  ;;  %vm542_vm4 = vcmp.gt.f32.partialorder %v520_v13, 0.0  ;;  %v573_v39 = vsel %vm541_vm5, %v516_v15, %v557_v25  ;;  %v622_v22 = vpop.permute.xlu0 %621 }
  0xf6   : > { %v525_v10 = vpop.f32.mrf.mxu0  ;;  %v568_v53 = vsel %vm536_vm10, %v502_v27, %v552_v42 }
  0xf7   : > { %v526_v12 = vadd.f32 %v525_v10, %v390_v47  ;;  %v559_v20 = vmul.f32 0.01, %v522_v11  ;;  %vm543_vm3 = vcmp.gt.f32.partialorder %v522_v11, 0.0  ;;  %v574_v36 = vsel %vm542_vm4, %v520_v13, %v558_v23 }
  0xf8   : > { %v527_v14 = vpop.f32.mrf.mxu0 }
  0xf9   : > { %v528_v16 = vadd.f32 %v527_v14, %v390_v47  ;;  %v560_v19 = vmul.f32 0.01, %v526_v12  ;;  %vm544_vm2 = vcmp.gt.f32.partialorder %v526_v12, 0.0  ;;  %v575_v32 = vsel %vm543_vm3, %v522_v11, %v559_v20 }
  0xfa   : > { %v484_v47 = vadd.f32 %v4683_v55, %v355_v40  ;;  %v565_v55 = vsel %vm533_vm13, %v492_v37, %v549_v50 }
  0xfb   : > { %vm545_vm1 = vcmp.gt.f32.partialorder %v528_v16, 0.0  ;;  %v561_v21 = vmul.f32 0.01, %v528_v16  ;;  %v576_v29 = vsel %vm544_vm2, %v526_v12, %v560_v19  ;;  %vm634_vm2 = vcmask 523264   ;;  %v627_v19 = vpop.permute.xlu1 %626 }
  0xfc   : > { %v546_v57 = vmul.f32 0.01, %v484_v47 }
  0xfd   : > { %v577_v26 = vsel %vm545_vm1, %v528_v16, %v561_v21  ;;  %vm530_vm1 = vcmp.gt.f32.partialorder %v484_v47, 0.0 }
  0xfe   : > { %675 = vmatprep.subr.mxu1 %v577_v26  ;;  %v562_v62 = vsel %vm530_vm1, %v484_v47, %v546_v57 }
  0xff   : > { %676 = vmatpush1.msra.mxu1 %v576_v29  ;;  %v617_v24 = vpop.permute.xlu1 %616 }
 0x100   : > { %677 = vmatprep.subr.mxu1 %v575_v32  ;;  %v612_v32 = vpop.permute.xlu0 %611 }
 0x101   : > { %678 = vmatpush1.msra.mxu1 %v574_v36 }
 0x102   : > { %679 = vmatprep.subr.mxu1 %v573_v39 }
 0x103   : > { %680 = vmatpush1.msra.mxu1 %v572_v43  ;;  %v607_v38 = vpop.permute.xlu1 %606 }
 0x104   : > { %681 = vmatprep.subr.mxu1 %v571_v46  ;;  %v602_v50 = vpop.permute.xlu0 %601 }
 0x105   : > { %682 = vmatpush1.msra.mxu1 %v570_v49 }
 0x106   : > { %683 = vmatprep.subr.mxu1 %v569_v51 }
 0x107   : > { %684 = vmatpush1.msra.mxu1 %v568_v53 }
 0x108   : > { %685 = vmatprep.subr.mxu1 %v567_v56 }
 0x109   : > { %686 = vmatpush1.msra.mxu1 %v566_v58  ;;  %v597_v58 = vpop.permute.xlu1 %596 }
 0x10a   : > { %687 = vmatprep.subr.mxu1 %v565_v55 }
 0x10b   : > { %688 = vmatpush1.msra.mxu1 %v564_v59 }
 0x10c   : > { %689 = vmatprep.subr.mxu1 %v563_v60 }
 0x10d   : > { %690 = vmatpush1.msra.mxu1 %v562_v62 }
 0x10e   : > { %3820 = vmatmul.mubr.msk.f32.vlgmr.msra.gmra.mxu1 %vm634_vm2, %v578_v61 }
 0x10f   : > { %729 = vmatprep.mubr.f32.mxu1 %v4223_v5 }
 0x112   : > { %3821 = vmatmul.mubr.msk.f32.gmra.mxu1 %vm634_vm2, %v579_v63 }
 0x113   : > { %735 = vmatprep.mubr.f32.mxu1 %v4223_v5 }
 0x116   : > { %3822 = vmatmul.mubr.msk.f32.gmra.mxu1 %vm634_vm2, %v580_v0 }
 0x117   : > { %741 = vmatprep.mubr.f32.mxu1 %v4223_v5 }
 0x11a   : > { %3823 = vmatmul.mubr.msk.f32.gmra.mxu1 %vm634_vm2, %v581_v1 }
 0x11b   : > { %747 = vmatprep.mubr.f32.mxu1 %v4223_v5 }
 0x11e   : > { %3824 = vmatmul.mubr.msk.f32.gmra.mxu1 %vm634_vm2, %v582_v2 }
 0x11f   : > { %753 = vmatprep.mubr.f32.mxu1 %v4223_v5 }
 0x122   : > { %3825 = vmatmul.mubr.msk.f32.gmra.mxu1 %vm634_vm2, %v583_v3 }
 0x123   : > { %759 = vmatprep.mubr.f32.mxu1 %v4223_v5 }
 0x126   : > { %3826 = vmatmul.mubr.msk.f32.gmra.mxu1 %vm634_vm2, %v584_v4 }
 0x127   : > { %765 = vmatprep.mubr.f32.mxu1 %v4223_v5 }
 0x12a   : > { %3827 = vmatmul.mubr.msk.f32.gmra.mxu1 %vm634_vm2, %v585_v6 }
 0x12b   : > { %1145 = vmatprep.mubr.f32.mxu1 %v4223_v5 }
 0x1ce   : > { %v4736_v7 = vpop.f32.mrf.mxu1 }
 0x1cf   : > { %v726_v0 = vadd.f32 %v4736_v7, %v597_v58 }
 0x1d0   : > { %v4738_v8 = vpop.f32.mrf.mxu1 }
 0x1d1   : > { %v728_v61 = vadd.f32 %v4738_v8, %v597_v58 }
 0x1d2   : > { %v731_v9 = vpop.f32.mrf.mxu1 }
 0x1d3   : > { %v732_v55 = vadd.f32 %v731_v9, %v602_v50  ;;  %v789_v8 = vmul.f32 0.01, %v728_v61 }
 0x1d4   : > { %v733_v10 = vpop.f32.mrf.mxu1 }
 0x1d5   : > { %v734_v54 = vadd.f32 %v733_v10, %v602_v50  ;;  %v790_v6 = vmul.f32 0.01, %v732_v55  ;;  %vm774_vm1 = vcmp.gt.f32.partialorder %v732_v55, 0.0 }
 0x1d6   : > { %v737_v11 = vpop.f32.mrf.mxu1 }
 0x1d7   : > { %v738_v51 = vadd.f32 %v737_v11, %v607_v38  ;;  %v791_v3 = vmul.f32 0.01, %v734_v54  ;;  %vm775_vm15 = vcmp.gt.f32.partialorder %v734_v54, 0.0  ;;  %v788_v11 = vmul.f32 0.01, %v726_v0 }
 0x1d8   : > { %v739_v12 = vpop.f32.mrf.mxu1 }
 0x1d9   : > { %v740_v47 = vadd.f32 %v739_v12, %v607_v38  ;;  %v792_v1 = vmul.f32 0.01, %v738_v51  ;;  %vm776_vm14 = vcmp.gt.f32.partialorder %v738_v51, 0.0  ;;  %v807_v12 = vsel %vm775_vm15, %v734_v54, %v791_v3 }
 0x1da   : > { %v743_v13 = vpop.f32.mrf.mxu1 }
 0x1db   : > { %v744_v44 = vadd.f32 %v743_v13, %v612_v32  ;;  %v793_v62 = vmul.f32 0.01, %v740_v47  ;;  %vm777_vm13 = vcmp.gt.f32.partialorder %v740_v47, 0.0  ;;  %v808_v7 = vsel %vm776_vm14, %v738_v51, %v792_v1 }
 0x1dc   : > { %v745_v14 = vpop.f32.mrf.mxu1  ;;  %v806_v13 = vsel %vm774_vm1, %v732_v55, %v790_v6 }
 0x1dd   : > { %v746_v41 = vadd.f32 %v745_v14, %v612_v32  ;;  %v794_v59 = vmul.f32 0.01, %v744_v44  ;;  %vm778_vm12 = vcmp.gt.f32.partialorder %v744_v44, 0.0  ;;  %v809_v10 = vsel %vm777_vm13, %v740_v47, %v793_v62 }
 0x1de   : > { %v749_v15 = vpop.f32.mrf.mxu1 }
 0x1df   : > { %v750_v39 = vadd.f32 %v749_v15, %v617_v24  ;;  %v795_v56 = vmul.f32 0.01, %v746_v41  ;;  %vm779_vm11 = vcmp.gt.f32.partialorder %v746_v41, 0.0  ;;  %v810_v9 = vsel %vm778_vm12, %v744_v44, %v794_v59  ;;  %v820_v15 = vld [vmem:[%s5401_s5] sm:$0xff] }
 0x1e0   : > { %v751_v16 = vpop.f32.mrf.mxu1 }
 0x1e1   : > { %v752_v33 = vadd.f32 %v751_v16, %v617_v24  ;;  %v796_v52 = vmul.f32 0.01, %v750_v39  ;;  %vm780_vm10 = vcmp.gt.f32.partialorder %v750_v39, 0.0  ;;  %v811_v4 = vsel %vm779_vm11, %v746_v41, %v795_v56 }
 0x1e2   : > { %v755_v18 = vpop.f32.mrf.mxu1 }
 0x1e3   : > { %v756_v34 = vadd.f32 %v755_v18, %v622_v22  ;;  %v797_v48 = vmul.f32 0.01, %v752_v33  ;;  %vm781_vm9 = vcmp.gt.f32.partialorder %v752_v33, 0.0  ;;  %v812_v2 = vsel %vm780_vm10, %v750_v39, %v796_v52  ;;  %v822_v18 = vld [vmem:[%s5401_s5 + $0x10] sm:$0xff] }
 0x1e4   : > { %v757_v20 = vpop.f32.mrf.mxu1 }
 0x1e5   : > { %v758_v30 = vadd.f32 %v757_v20, %v622_v22  ;;  %v798_v45 = vmul.f32 0.01, %v756_v34  ;;  %vm782_vm8 = vcmp.gt.f32.partialorder %v756_v34, 0.0  ;;  %v813_v63 = vsel %vm781_vm9, %v752_v33, %v797_v48  ;;  %v824_v20 = vld [vmem:[%s5401_s5 + $0x20] sm:$0xff]  ;;  %v826_v22 = vld [vmem:[%s5401_s5 + $0x30] sm:$0xff] }
 0x1e6   : > { %v761_v21 = vpop.f32.mrf.mxu1 }
 0x1e7   : > { %v762_v28 = vadd.f32 %v761_v21, %v627_v19  ;;  %v799_v42 = vmul.f32 0.01, %v758_v30  ;;  %vm783_vm7 = vcmp.gt.f32.partialorder %v758_v30, 0.0  ;;  %v814_v60 = vsel %vm782_vm8, %v756_v34, %v798_v45  ;;  %v825_v21 = vld [vmem:[%s5401_s5 + $0x28] sm:$0xff]  ;;  %v874_v34 = vpop.permute.xlu0 %873 }
 0x1e8   : > { %v763_v23 = vpop.f32.mrf.mxu1 }
 0x1e9   : > { %v764_v26 = vadd.f32 %v763_v23, %v627_v19  ;;  %v800_v40 = vmul.f32 0.01, %v762_v28  ;;  %vm784_vm6 = vcmp.gt.f32.partialorder %v762_v28, 0.0  ;;  %v815_v57 = vsel %vm783_vm7, %v758_v30, %v799_v42  ;;  %v823_v19 = vld [vmem:[%s5401_s5 + $0x18] sm:$0xff] }
 0x1ea   : > { %v767_v25 = vpop.f32.mrf.mxu1  ;;  %v827_v23 = vld [vmem:[%s5401_s5 + $0x38] sm:$0xff] }
 0x1eb   : > { %v768_v27 = vadd.f32 %v767_v25, %v632_v17  ;;  %v801_v36 = vmul.f32 0.01, %v764_v26  ;;  %vm785_vm5 = vcmp.gt.f32.partialorder %v764_v26, 0.0  ;;  %v816_v53 = vsel %vm784_vm6, %v762_v28, %v800_v40  ;;  %v864_v39 = vpop.permute.xlu0 %863 }
 0x1ec   : > { %v769_v29 = vpop.f32.mrf.mxu1 }
 0x1ed   : > { %v770_v31 = vadd.f32 %v769_v29, %v632_v17  ;;  %v802_v35 = vmul.f32 0.01, %v768_v27  ;;  %vm786_vm3 = vcmp.gt.f32.partialorder %v768_v27, 0.0  ;;  %v817_v49 = vsel %vm785_vm5, %v764_v26, %v801_v36  ;;  %v821_v17 = vld [vmem:[%s5401_s5 + $0x8] sm:$0xff]  ;;  %v869_v36 = vpop.permute.xlu1 %868 }
 0x1ef   : > { %v803_v37 = vmul.f32 0.01, %v770_v31  ;;  %vm787_vm4 = vcmp.gt.f32.partialorder %v770_v31, 0.0  ;;  %v818_v46 = vsel %vm786_vm3, %v768_v27, %v802_v35  ;;  %vm773_vm3 = vcmp.gt.f32.partialorder %v728_v61, 0.0 }
 0x1f0   : > { %v805_v14 = vsel %vm773_vm3, %v728_v61, %v789_v8 }
 0x1f1   : > { %v819_v43 = vsel %vm787_vm4, %v770_v31, %v803_v37  ;;  %vm772_vm4 = vcmp.gt.f32.partialorder %v726_v0, 0.0  ;;  %v859_v41 = vpop.permute.xlu1 %858 }
 0x1f2   : > { %916 = vmatprep.subr.mxu0 %v819_v43  ;;  %v804_v16 = vsel %vm772_vm4, %v726_v0, %v788_v11 }
 0x1f3   : > { %917 = vmatpush1.msra.mxu0 %v818_v46 }
 0x1f4   : > { %918 = vmatprep.subr.mxu0 %v817_v49  ;;  %v854_v49 = vpop.permute.xlu0 %853 }
 0x1f5   : > { %919 = vmatpush1.msra.mxu0 %v816_v53  ;;  %v849_v56 = vpop.permute.xlu1 %848 }
 0x1f6   : > { %920 = vmatprep.subr.mxu0 %v815_v57 }
 0x1f7   : > { %921 = vmatpush1.msra.mxu0 %v814_v60 }
 0x1f8   : > { %922 = vmatprep.subr.mxu0 %v813_v63  ;;  %v844_v3 = vpop.permute.xlu0 %843 }
 0x1f9   : > { %923 = vmatpush1.msra.mxu0 %v812_v2 }
 0x1fa   : > { %924 = vmatprep.subr.mxu0 %v811_v4 }
 0x1fb   : > { %925 = vmatpush1.msra.mxu0 %v810_v9 }
 0x1fc   : > { %926 = vmatprep.subr.mxu0 %v809_v10 }
 0x1fd   : > { %927 = vmatpush1.msra.mxu0 %v808_v7  ;;  %v839_v7 = vpop.permute.xlu1 %838 }
 0x1fe   : > { %928 = vmatprep.subr.mxu0 %v807_v12 }
 0x1ff   : > { %929 = vmatpush1.msra.mxu0 %v806_v13 }
 0x200   : > { %930 = vmatprep.subr.mxu0 %v805_v14 }
 0x201   : > { %931 = vmatpush1.msra.mxu0 %v804_v16 }
 0x202   : > { %3828 = vmatmul.mubr.msk.f32.vlgmr.msra.gmra.mxu0 %vm634_vm2, %v820_v15 }
 0x203   : > { %970 = vmatprep.mubr.f32.mxu0 %v4223_v5 }
 0x206   : > { %3829 = vmatmul.mubr.msk.f32.gmra.mxu0 %vm634_vm2, %v821_v17 }
 0x207   : > { %976 = vmatprep.mubr.f32.mxu0 %v4223_v5 }
 0x20a   : > { %3830 = vmatmul.mubr.msk.f32.gmra.mxu0 %vm634_vm2, %v822_v18 }
 0x20b   : > { %982 = vmatprep.mubr.f32.mxu0 %v4223_v5 }
 0x20e   : > { %3831 = vmatmul.mubr.msk.f32.gmra.mxu0 %vm634_vm2, %v823_v19 }
 0x20f   : > { %988 = vmatprep.mubr.f32.mxu0 %v4223_v5 }
 0x212   : > { %3832 = vmatmul.mubr.msk.f32.gmra.mxu0 %vm634_vm2, %v824_v20 }
 0x213   : > { %994 = vmatprep.mubr.f32.mxu0 %v4223_v5 }
 0x216   : > { %3833 = vmatmul.mubr.msk.f32.gmra.mxu0 %vm634_vm2, %v825_v21 }
 0x217   : > { %1000 = vmatprep.mubr.f32.mxu0 %v4223_v5 }
 0x21a   : > { %3834 = vmatmul.mubr.msk.f32.gmra.mxu0 %vm634_vm2, %v826_v22 }
 0x21b   : > { %1006 = vmatprep.mubr.f32.mxu0 %v4223_v5 }
 0x21e   : > { %3835 = vmatmul.mubr.msk.f32.gmra.mxu0 %vm634_vm2, %v827_v23 }
 0x21f   : > { %1559 = vmatprep.mubr.f32.mxu0 %v4223_v5 }
 0x2c2   : > { %v4787_v24 = vpop.f32.mrf.mxu0 }
 0x2c3   : > { %v967_v18 = vadd.f32 %v4787_v24, %v839_v7 }
 0x2c4   : > { %v4789_v25 = vpop.f32.mrf.mxu0 }
 0x2c5   : > { %v969_v15 = vadd.f32 %v4789_v25, %v839_v7 }
 0x2c6   : > { %v972_v26 = vpop.f32.mrf.mxu0 }
 0x2c7   : > { %v973_v12 = vadd.f32 %v972_v26, %v844_v3  ;;  %v1030_v25 = vmul.f32 0.01, %v969_v15 }
 0x2c8   : > { %v974_v27 = vpop.f32.mrf.mxu0 }
 0x2c9   : > { %v975_v8 = vadd.f32 %v974_v27, %v844_v3  ;;  %v1031_v23 = vmul.f32 0.01, %v973_v12  ;;  %vm1015_vm4 = vcmp.gt.f32.partialorder %v973_v12, 0.0 }
 0x2ca   : > { %v978_v28 = vpop.f32.mrf.mxu0 }
 0x2cb   : > { %v979_v4 = vadd.f32 %v978_v28, %v849_v56  ;;  %v1032_v21 = vmul.f32 0.01, %v975_v8  ;;  %vm1016_vm3 = vcmp.gt.f32.partialorder %v975_v8, 0.0  ;;  %v1029_v28 = vmul.f32 0.01, %v967_v18 }
 0x2cc   : > { %v980_v29 = vpop.f32.mrf.mxu0 }
 0x2cd   : > { %v981_v0 = vadd.f32 %v980_v29, %v849_v56  ;;  %v1033_v19 = vmul.f32 0.01, %v979_v4  ;;  %vm1017_vm1 = vcmp.gt.f32.partialorder %v979_v4, 0.0  ;;  %v1048_v29 = vsel %vm1016_vm3, %v975_v8, %v1032_v21 }
 0x2ce   : > { %v984_v30 = vpop.f32.mrf.mxu0 }
 0x2cf   : > { %v985_v61 = vadd.f32 %v984_v30, %v854_v49  ;;  %v1034_v16 = vmul.f32 0.01, %v981_v0  ;;  %vm1018_vm15 = vcmp.gt.f32.partialorder %v981_v0, 0.0  ;;  %v1049_v24 = vsel %vm1017_vm1, %v979_v4, %v1033_v19 }
 0x2d0   : > { %v986_v31 = vpop.f32.mrf.mxu0  ;;  %v1047_v30 = vsel %vm1015_vm4, %v973_v12, %v1031_v23 }
 0x2d1   : > { %v987_v55 = vadd.f32 %v986_v31, %v854_v49  ;;  %v1035_v13 = vmul.f32 0.01, %v985_v61  ;;  %vm1019_vm14 = vcmp.gt.f32.partialorder %v985_v61, 0.0  ;;  %v1050_v27 = vsel %vm1018_vm15, %v981_v0, %v1034_v16  ;;  %v4158_v49 = vld [vmem:[%s4345_s21] sm:$0xff]  ;;  %v3845_v0 = vld [vmem:[%s5397_s1 + $0x78] sm:$0xff] }
 0x2d2   : > { %v990_v32 = vpop.f32.mrf.mxu0 }
 0x2d3   : > { %v991_v57 = vadd.f32 %v990_v32, %v859_v41  ;;  %v1036_v10 = vmul.f32 0.01, %v987_v55  ;;  %vm1020_vm13 = vcmp.gt.f32.partialorder %v987_v55, 0.0  ;;  %v1051_v26 = vsel %vm1019_vm14, %v985_v61, %v1035_v13  ;;  %v1061_v32 = vld [vmem:[%s5403_s7] sm:$0xff] }
 0x2d4   : > { %v992_v33 = vpop.f32.mrf.mxu0  ;;  %v3842_v61 = vld [vmem:[%s5397_s1 + $0x60] sm:$0xff] }
 0x2d5   : > { %v993_v50 = vadd.f32 %v992_v33, %v859_v41  ;;  %v1037_v6 = vmul.f32 0.01, %v991_v57  ;;  %vm1021_vm12 = vcmp.gt.f32.partialorder %v991_v57, 0.0  ;;  %v1052_v22 = vsel %vm1020_vm13, %v987_v55, %v1036_v10  ;;  %v3839_v55 = vld [vmem:[%s5397_s1 + $0x48] sm:$0xff] }
 0x2d6   : > { %v996_v35 = vpop.f32.mrf.mxu0 }
 0x2d7   : > { %v997_v51 = vadd.f32 %v996_v35, %v864_v39  ;;  %v1038_v1 = vmul.f32 0.01, %v993_v50  ;;  %vm1022_vm11 = vcmp.gt.f32.partialorder %v993_v50, 0.0  ;;  %v1053_v20 = vsel %vm1021_vm12, %v991_v57, %v1037_v6  ;;  %v1068_v35 = vpop.permute.xlu0 %1067 }
 0x2d8   : > { %v998_v37 = vpop.f32.mrf.mxu0 }
 0x2d9   : > { %v999_v47 = vadd.f32 %v998_v37, %v864_v39  ;;  %v1039_v62 = vmul.f32 0.01, %v997_v51  ;;  %vm1023_vm10 = vcmp.gt.f32.partialorder %v997_v51, 0.0  ;;  %v1054_v17 = vsel %vm1022_vm11, %v993_v50, %v1038_v1 }
 0x2da   : > { %v1002_v38 = vpop.f32.mrf.mxu0 }
 0x2db   : > { %v1003_v45 = vadd.f32 %v1002_v38, %v869_v36  ;;  %v1040_v59 = vmul.f32 0.01, %v999_v47  ;;  %vm1024_vm9 = vcmp.gt.f32.partialorder %v999_v47, 0.0  ;;  %v1055_v14 = vsel %vm1023_vm10, %v997_v51, %v1039_v62  ;;  %v3843_v62 = vld [vmem:[%s5397_s1 + $0x68] sm:$0xff]  ;;  %v1226_v12 = vpop.permute.xlu0 %1225 }
 0x2dc   : > { %v1004_v40 = vpop.f32.mrf.mxu0 }
 0x2dd   : > { %v1005_v43 = vadd.f32 %v1004_v40, %v869_v36  ;;  %v1041_v58 = vmul.f32 0.01, %v1003_v45  ;;  %vm1025_vm8 = vcmp.gt.f32.partialorder %v1003_v45, 0.0  ;;  %v1056_v11 = vsel %vm1024_vm9, %v999_v47, %v1040_v59  ;;  %v3840_v59 = vld [vmem:[%s5397_s1 + $0x50] sm:$0xff] }
 0x2de   : > { %v1008_v42 = vpop.f32.mrf.mxu0 }
 0x2df   : > { %v1009_v44 = vadd.f32 %v1008_v42, %v874_v34  ;;  %v1042_v53 = vmul.f32 0.01, %v1005_v43  ;;  %vm1026_vm7 = vcmp.gt.f32.partialorder %v1005_v43, 0.0  ;;  %v1057_v9 = vsel %vm1025_vm8, %v1003_v45, %v1041_v58  ;;  %v3838_v58 = vld [vmem:[%s5397_s1 + $0x40] sm:$0xff] }
 0x2e0   : > { %v1010_v46 = vpop.f32.mrf.mxu0 }
 0x2e1   : > { %v1011_v48 = vadd.f32 %v1010_v46, %v874_v34  ;;  %v1043_v52 = vmul.f32 0.01, %v1009_v44  ;;  %vm1027_vm5 = vcmp.gt.f32.partialorder %v1009_v44, 0.0  ;;  %v1058_v2 = vsel %vm1026_vm7, %v1005_v43, %v1042_v53  ;;  %v1062_v34 = vld [vmem:[%s5403_s7 + $0x8] sm:$0xff] }
 0x2e3   : > { %v1044_v54 = vmul.f32 0.01, %v1011_v48  ;;  %vm1028_vm6 = vcmp.gt.f32.partialorder %v1011_v48, 0.0  ;;  %v1059_v63 = vsel %vm1027_vm5, %v1009_v44, %v1043_v52  ;;  %vm1014_vm5 = vcmp.gt.f32.partialorder %v969_v15, 0.0  ;;  %v4159_v52 = vld [vmem:[%s4345_s21 + $0x8] sm:$0xff]  ;;  %s3743_s21 = sshll.u32 %s326_s23, 4  ;;  %s5346_s21 = int_to_ptr.vmem [resolvable:$true] %s3743_s21 }
 0x2e4   : > { %v1046_v31 = vsel %vm1014_vm5, %v969_v15, %v1030_v25  ;;  %s4160_s28 = scalar_lea.vmem %s5346_s21, 512  ;;  %p4167_p0 = scmp.lt.s32.totalorder %s5346_s21, %s4165_s14 }
 0x2e5   : > { %v1060_v60 = vsel %vm1028_vm6, %v1011_v48, %v1044_v54  ;;  %vm1013_vm6 = vcmp.gt.f32.partialorder %v967_v18, 0.0  ;;  %v1073_v48 = vpop.permute.xlu1 %1072  ;;  %p4161_p11 = scmp.ne.s32.totalorder %s5346_s21, %s4160_s28  ;;  %p4168_p1 = scmp.lt.s32.totalorder %s4166_s16, %s4160_s28 }
 0x2e6   : > { %1097 = vmatprep.subr.mxu1 %v1060_v60  ;;  %v1045_v33 = vsel %vm1013_vm6, %v967_v18, %v1029_v28  ;;  %v3841_v60 = vld [vmem:[%s5397_s1 + $0x58] sm:$0xff] }
 0x2e7   : > { %1098 = vmatpush1.msra.mxu1 %v1059_v63  ;;  %v3844_v63 = vld [vmem:[%s5397_s1 + $0x70] sm:$0xff]  ;;  %p4162_p12 = pnand %p4161_p11, %p4317_p5  ;;  %p4169_p2 = por %p4168_p1, %p4167_p0 }
 0x2e8   : > { %1099 = vmatprep.subr.mxu1 %v1058_v2 }
 0x2e9   : > { %1100 = vmatpush1.msra.mxu1 %v1057_v9  ;;  %p4163_p13 = pneg %p4162_p12 }
 0x2ea   : > { %1101 = vmatprep.subr.mxu1 %v1056_v11 }
 0x2eb   : > { %1102 = vmatpush1.msra.mxu1 %v1055_v14  ;;  %v1221_v14 = vpop.permute.xlu1 %1220  ;;  %p4170_p3 = pnand %p4169_p2, %p4163_p13 }
 0x2ec   : > { %1103 = vmatprep.subr.mxu1 %v1054_v17  ;;  %v1216_v17 = vpop.permute.xlu0 %1215 }
 0x2ed   : > { %1104 = vmatpush1.msra.mxu1 %v1053_v20 }
 0x2ee   : > { %1105 = vmatprep.subr.mxu1 %v1052_v22 }
 0x2ef   : > { %1106 = vmatpush1.msra.mxu1 %v1051_v26  ;;  %v1211_v19 = vpop.permute.xlu1 %1210 }
 0x2f0   : > { %1107 = vmatprep.subr.mxu1 %v1050_v27  ;;  %v1206_v28 = vpop.permute.xlu0 %1205 }
 0x2f1   : > { %1108 = vmatpush1.msra.mxu1 %v1049_v24 }
 0x2f2   : > { %1109 = vmatprep.subr.mxu1 %v1048_v29 }
 0x2f3   : > { %1110 = vmatpush1.msra.mxu1 %v1047_v30 }
 0x2f4   : > { %1111 = vmatprep.subr.mxu1 %v1046_v31 }
 0x2f5   : > { %1112 = vmatpush1.msra.mxu1 %v1045_v33  ;;  %v1201_v33 = vpop.permute.xlu1 %1200 }
 0x2f6   : > { %3836 = vmatmul.mubr.msk.f32.vlgmr.msra.gmra.mxu1 %vm634_vm2, %v1061_v32 }
 0x2f7   : > { %1151 = vmatprep.mubr.f32.mxu1 %v4223_v5 }
 0x2fa   : > { %3837 = vmatmul.mubr.msk.f32.gmra.mxu1 %vm634_vm2, %v1062_v34 }
 0x2fb   : > { %1316 = vmatprep.mubr.f32.mxu1 %v4223_v5 }
 0x3b6   : > { %v1147_v36 = vpop.f32.mrf.mxu1 }
 0x3b7   : > { %v1148_v37 = vadd.f32 %v1147_v36, %v1068_v35 }
 0x3b8   : > { %v1149_v38 = vpop.f32.mrf.mxu1 }
 0x3b9   : > { %4126 = vtanh.f32 %v1148_v37  ;;  %v1150_v39 = vadd.f32 %v1149_v38, %v1068_v35 }
 0x3ba   : > { %v1153_v44 = vpop.f32.mrf.mxu1 }
 0x3bb   : > { %4128 = vtanh.f32 %v1150_v39  ;;  %v1154_v54 = vadd.f32 %v1153_v44, %v1073_v48 }
 0x3bc   : > { %v1155_v46 = vpop.f32.mrf.mxu1 }
 0x3bd   : > { %v1156_v51 = vadd.f32 %v1155_v46, %v1073_v48 }
 0x3c6   : > { %v4808_v40 = vpop.eup %4126 }
 0x3c7   : > { %v1160_v41 = vmul.f32 1.442695, %v4808_v40 }
 0x3c8   : > { %v4811_v42 = vpop.eup %4128 }
 0x3c9   : > { %4130 = vpow2.f32 %v1160_v41  ;;  %v1162_v43 = vmul.f32 1.442695, %v4811_v42 }
 0x3cb   : > { %4132 = vpow2.f32 %v1162_v43 }
 0x3d6   : > { %v4131_v45 = vpop.eup %4130 }
 0x3d7   : > { %v1164_v50 = vmul.f32 %v4158_v49, %v4131_v45 }
 0x3d8   : > { %v4133_v47 = vpop.eup %4132 }
 0x3d9   : > { %v1165_v53 = vmul.f32 %v4159_v52, %v4133_v47  ;;  %v4818_v57 = vadd.f32 %v1164_v50, %v1154_v54  ;;  %v1196_v47 = vpop.permute.xlu0 %1195  ;;  %v1191_v54 = vpop.permute.xlu1 %1190 }
 0x3db   : > { %v4816_v56 = vadd.f32 %v1165_v53, %v1156_v51 }
 0x3dd   : > { %1282 = vmatprep.subr.mxu1 %v4816_v56 }
 0x3de   : > { %1283 = vmatpush1.msra.mxu1 %v4818_v57 }
 0x3df   : > { %3854 = vmatmul.mubr.msk.f32.vlgmr.msra.gmra.mxu1 %vm392_vm0, %v3838_v58 }
 0x3e0   : > { %1322 = vmatprep.mubr.f32.mxu1 %v4223_v5 }
 0x3e3   : > { %3855 = vmatmul.mubr.msk.f32.gmra.mxu1 %vm392_vm0, %v3839_v55 }
 0x3e4   : > { %1328 = vmatprep.mubr.f32.mxu1 %v4223_v5 }
 0x3e7   : > { %3856 = vmatmul.mubr.msk.f32.gmra.mxu1 %vm392_vm0, %v3840_v59 }
 0x3e8   : > { %1334 = vmatprep.mubr.f32.mxu1 %v4223_v5 }
 0x3eb   : > { %3857 = vmatmul.mubr.msk.f32.gmra.mxu1 %vm392_vm0, %v3841_v60 }
 0x3ec   : > { %1340 = vmatprep.mubr.f32.mxu1 %v4223_v5 }
 0x3ef   : > { %3858 = vmatmul.mubr.msk.f32.gmra.mxu1 %vm392_vm0, %v3842_v61 }
 0x3f0   : > { %1346 = vmatprep.mubr.f32.mxu1 %v4223_v5 }
 0x3f3   : > { %3859 = vmatmul.mubr.msk.f32.gmra.mxu1 %vm392_vm0, %v3843_v62 }
 0x3f4   : > { %1352 = vmatprep.mubr.f32.mxu1 %v4223_v5 }
 0x3f7   : > { %3860 = vmatmul.mubr.msk.f32.gmra.mxu1 %vm392_vm0, %v3844_v63 }
 0x3f8   : > { %1358 = vmatprep.mubr.f32.mxu1 %v4223_v5 }
 0x3fb   : > { %3861 = vmatmul.mubr.msk.f32.gmra.mxu1 %vm392_vm0, %v3845_v0 }
 0x3fc   : > { %1802 = vmatprep.mubr.f32.mxu1 %v4223_v5 }
 0x49f   : > { %v4862_v1 = vpop.f32.mrf.mxu1 }
 0x4a0   : > { %v1319_v63 = vadd.f32 %v4862_v1, %v1191_v54 }
 0x4a1   : > { %v4864_v2 = vpop.f32.mrf.mxu1 }
 0x4a2   : > { %v1321_v60 = vadd.f32 %v4864_v2, %v1191_v54 }
 0x4a3   : > { %v1324_v3 = vpop.f32.mrf.mxu1 }
 0x4a4   : > { %v1325_v58 = vadd.f32 %v1324_v3, %v1196_v47  ;;  %v1382_v2 = vmul.f32 0.01, %v1321_v60 }
 0x4a5   : > { %v1326_v4 = vpop.f32.mrf.mxu1 }
 0x4a6   : > { %v1327_v51 = vadd.f32 %v1326_v4, %v1196_v47  ;;  %vm1367_vm6 = vcmp.gt.f32.partialorder %v1325_v58, 0.0 }
 0x4a7   : > { %v1330_v6 = vpop.f32.mrf.mxu1 }
 0x4a8   : > { %v1331_v48 = vadd.f32 %v1330_v6, %v1201_v33  ;;  %v1384_v3 = vmul.f32 0.01, %v1327_v51  ;;  %vm1368_vm5 = vcmp.gt.f32.partialorder %v1327_v51, 0.0 }
 0x4a9   : > { %v1332_v9 = vpop.f32.mrf.mxu1 }
 0x4aa   : > { %v1333_v44 = vadd.f32 %v1332_v9, %v1201_v33  ;;  %v1385_v0 = vmul.f32 0.01, %v1331_v48  ;;  %vm1369_vm4 = vcmp.gt.f32.partialorder %v1331_v48, 0.0  ;;  %v1383_v9 = vmul.f32 0.01, %v1325_v58  ;;  %v1469_v33 = vpop.permute.xlu0 %1468 }
 0x4ab   : > { %v1336_v8 = vpop.f32.mrf.mxu1 }
 0x4ac   : > { %v1337_v39 = vadd.f32 %v1336_v8, %v1206_v28  ;;  %v1386_v61 = vmul.f32 0.01, %v1333_v44  ;;  %vm1370_vm3 = vcmp.gt.f32.partialorder %v1333_v44, 0.0  ;;  %v1401_v1 = vsel %vm1369_vm4, %v1331_v48, %v1385_v0 }
 0x4ad   : > { %v1338_v10 = vpop.f32.mrf.mxu1 }
 0x4ae   : > { %v1339_v36 = vadd.f32 %v1338_v10, %v1206_v28  ;;  %v1387_v55 = vmul.f32 0.01, %v1337_v39  ;;  %vm1371_vm1 = vcmp.gt.f32.partialorder %v1337_v39, 0.0  ;;  %v1402_v10 = vsel %vm1370_vm3, %v1333_v44, %v1386_v61 }
 0x4af   : > { %v1342_v11 = vpop.f32.mrf.mxu1 }
 0x4b0   : > { %v1343_v34 = vadd.f32 %v1342_v11, %v1211_v19  ;;  %v1388_v52 = vmul.f32 0.01, %v1339_v36  ;;  %vm1372_vm15 = vcmp.gt.f32.partialorder %v1339_v36, 0.0  ;;  %v1403_v8 = vsel %vm1371_vm1, %v1337_v39, %v1387_v55 }
 0x4b1   : > { %v1344_v7 = vpop.f32.mrf.mxu1  ;;  %v1381_v11 = vmul.f32 0.01, %v1319_v63 }
 0x4b2   : > { %v1345_v24 = vadd.f32 %v1344_v7, %v1211_v19  ;;  %v1389_v49 = vmul.f32 0.01, %v1343_v34  ;;  %vm1373_vm14 = vcmp.gt.f32.partialorder %v1343_v34, 0.0  ;;  %v1404_v6 = vsel %vm1372_vm15, %v1339_v36, %v1388_v52  ;;  %v3866_v19 = vld [vmem:[%s5399_s3 + $0x60] sm:$0xff] }
 0x4b3   : > { %v1348_v13 = vpop.f32.mrf.mxu1  ;;  %v1400_v7 = vsel %vm1368_vm5, %v1327_v51, %v1384_v3 }
 0x4b4   : > { %v1349_v29 = vadd.f32 %v1348_v13, %v1216_v17  ;;  %v1390_v45 = vmul.f32 0.01, %v1345_v24  ;;  %vm1374_vm13 = vcmp.gt.f32.partialorder %v1345_v24, 0.0  ;;  %v1405_v4 = vsel %vm1373_vm14, %v1343_v34, %v1389_v49 }
 0x4b5   : > { %v1350_v15 = vpop.f32.mrf.mxu1 }
 0x4b6   : > { %v1351_v25 = vadd.f32 %v1350_v15, %v1216_v17  ;;  %v1391_v41 = vmul.f32 0.01, %v1349_v29  ;;  %vm1375_vm12 = vcmp.gt.f32.partialorder %v1349_v29, 0.0  ;;  %v1406_v62 = vsel %vm1374_vm13, %v1345_v24, %v1390_v45  ;;  %v3864_v17 = vld [vmem:[%s5399_s3 + $0x50] sm:$0xff] }
 0x4b7   : > { %v1354_v16 = vpop.f32.mrf.mxu1 }
 0x4b8   : > { %v1355_v23 = vadd.f32 %v1354_v16, %v1221_v14  ;;  %v1392_v37 = vmul.f32 0.01, %v1351_v25  ;;  %vm1376_vm11 = vcmp.gt.f32.partialorder %v1351_v25, 0.0  ;;  %v1407_v59 = vsel %vm1375_vm12, %v1349_v29, %v1391_v41  ;;  %v3863_v16 = vld [vmem:[%s5399_s3 + $0x48] sm:$0xff] }
 0x4b9   : > { %v1356_v18 = vpop.f32.mrf.mxu1 }
 0x4ba   : > { %v1357_v21 = vadd.f32 %v1356_v18, %v1221_v14  ;;  %v1393_v35 = vmul.f32 0.01, %v1355_v23  ;;  %vm1377_vm10 = vcmp.gt.f32.partialorder %v1355_v23, 0.0  ;;  %v1408_v53 = vsel %vm1376_vm11, %v1351_v25, %v1392_v37  ;;  %v3862_v14 = vld [vmem:[%s5399_s3 + $0x40] sm:$0xff]  ;;  %v3865_v18 = vld [vmem:[%s5399_s3 + $0x58] sm:$0xff] }
 0x4bb   : > { %v1360_v20 = vpop.f32.mrf.mxu1 }
 0x4bc   : > { %v1361_v22 = vadd.f32 %v1360_v20, %v1226_v12  ;;  %v1394_v31 = vmul.f32 0.01, %v1357_v21  ;;  %vm1378_vm9 = vcmp.gt.f32.partialorder %v1357_v21, 0.0  ;;  %v1409_v50 = vsel %vm1377_vm10, %v1355_v23, %v1393_v35  ;;  %v3867_v20 = vld [vmem:[%s5399_s3 + $0x68] sm:$0xff]  ;;  %v1464_v35 = vpop.permute.xlu1 %1463 }
 0x4bd   : > { %v1362_v26 = vpop.f32.mrf.mxu1 }
 0x4be   : > { %v1363_v27 = vadd.f32 %v1362_v26, %v1226_v12  ;;  %v1395_v30 = vmul.f32 0.01, %v1361_v22  ;;  %vm1379_vm7 = vcmp.gt.f32.partialorder %v1361_v22, 0.0  ;;  %v1410_v46 = vsel %vm1378_vm9, %v1357_v21, %v1394_v31  ;;  %v3868_v21 = vld [vmem:[%s5399_s3 + $0x70] sm:$0xff] }
 0x4bf   : > { %v1399_v12 = vsel %vm1367_vm6, %v1325_v58, %v1383_v9 }
 0x4c0   : > { %v1396_v32 = vmul.f32 0.01, %v1363_v27  ;;  %vm1380_vm8 = vcmp.gt.f32.partialorder %v1363_v27, 0.0  ;;  %v1411_v43 = vsel %vm1379_vm7, %v1361_v22, %v1395_v30  ;;  %vm1366_vm7 = vcmp.gt.f32.partialorder %v1321_v60, 0.0  ;;  %v3869_v22 = vld [vmem:[%s5399_s3 + $0x78] sm:$0xff]  ;;  %v1454_v41 = vpop.permute.xlu1 %1453 }
 0x4c1   : > { %v1398_v13 = vsel %vm1366_vm7, %v1321_v60, %v1382_v2 }
 0x4c2   : > { %v1412_v38 = vsel %vm1380_vm8, %v1363_v27, %v1396_v32  ;;  %vm1365_vm8 = vcmp.gt.f32.partialorder %v1319_v63, 0.0 }
 0x4c3   : > { %1511 = vmatprep.subr.mxu0 %v1412_v38  ;;  %v1397_v15 = vsel %vm1365_vm8, %v1319_v63, %v1381_v11  ;;  %v1459_v38 = vpop.permute.xlu0 %1458 }
 0x4c4   : > { %1512 = vmatpush1.msra.mxu0 %v1411_v43  ;;  %v1444_v55 = vpop.permute.xlu1 %1443 }
 0x4c5   : > { %1513 = vmatprep.subr.mxu0 %v1410_v46 }
 0x4c6   : > { %1514 = vmatpush1.msra.mxu0 %v1409_v50 }
 0x4c7   : > { %1515 = vmatprep.subr.mxu0 %v1408_v53  ;;  %v1449_v50 = vpop.permute.xlu0 %1448 }
 0x4c8   : > { %1516 = vmatpush1.msra.mxu0 %v1407_v59 }
 0x4c9   : > { %1517 = vmatprep.subr.mxu0 %v1406_v62 }
 0x4ca   : > { %1518 = vmatpush1.msra.mxu0 %v1405_v4 }
 0x4cb   : > { %1519 = vmatprep.subr.mxu0 %v1404_v6  ;;  %v1439_v2 = vpop.permute.xlu0 %1438 }
 0x4cc   : > { %1520 = vmatpush1.msra.mxu0 %v1403_v8 }
 0x4cd   : > { %1521 = vmatprep.subr.mxu0 %v1402_v10 }
 0x4ce   : > { %1522 = vmatpush1.msra.mxu0 %v1401_v1 }
 0x4cf   : > { %1523 = vmatprep.subr.mxu0 %v1400_v7 }
 0x4d0   : > { %1524 = vmatpush1.msra.mxu0 %v1399_v12 }
 0x4d1   : > { %1525 = vmatprep.subr.mxu0 %v1398_v13 }
 0x4d2   : > { %1526 = vmatpush1.msra.mxu0 %v1397_v15 }
 0x4d3   : > { %3878 = vmatmul.mubr.msk.f32.vlgmr.msra.gmra.mxu0 %vm634_vm2, %v3862_v14  ;;  %v1434_v14 = vpop.permute.xlu1 %1433 }
 0x4d4   : > { %1565 = vmatprep.mubr.f32.mxu0 %v4223_v5 }
 0x4d7   : > { %3879 = vmatmul.mubr.msk.f32.gmra.mxu0 %vm634_vm2, %v3863_v16 }
 0x4d8   : > { %1571 = vmatprep.mubr.f32.mxu0 %v4223_v5 }
 0x4db   : > { %3880 = vmatmul.mubr.msk.f32.gmra.mxu0 %vm634_vm2, %v3864_v17 }
 0x4dc   : > { %1577 = vmatprep.mubr.f32.mxu0 %v4223_v5 }
 0x4df   : > { %3881 = vmatmul.mubr.msk.f32.gmra.mxu0 %vm634_vm2, %v3865_v18 }
 0x4e0   : > { %1583 = vmatprep.mubr.f32.mxu0 %v4223_v5 }
 0x4e3   : > { %3882 = vmatmul.mubr.msk.f32.gmra.mxu0 %vm634_vm2, %v3866_v19 }
 0x4e4   : > { %1589 = vmatprep.mubr.f32.mxu0 %v4223_v5 }
 0x4e7   : > { %3883 = vmatmul.mubr.msk.f32.gmra.mxu0 %vm634_vm2, %v3867_v20 }
 0x4e8   : > { %1595 = vmatprep.mubr.f32.mxu0 %v4223_v5 }
 0x4eb   : > { %3884 = vmatmul.mubr.msk.f32.gmra.mxu0 %vm634_vm2, %v3868_v21 }
 0x4ec   : > { %1601 = vmatprep.mubr.f32.mxu0 %v4223_v5 }
 0x4ef   : > { %3885 = vmatmul.mubr.msk.f32.gmra.mxu0 %vm634_vm2, %v3869_v22 }
 0x4f0   : > { %1985 = vmatprep.mubr.f32.mxu0 %v4223_v5 }
 0x593   : > { %v4913_v23 = vpop.f32.mrf.mxu0 }
 0x594   : > { %v1562_v21 = vadd.f32 %v4913_v23, %v1434_v14 }
 0x595   : > { %v4915_v26 = vpop.f32.mrf.mxu0 }
 0x596   : > { %v1564_v18 = vadd.f32 %v4915_v26, %v1434_v14 }
 0x597   : > { %v1567_v25 = vpop.f32.mrf.mxu0 }
 0x598   : > { %v1568_v15 = vadd.f32 %v1567_v25, %v1439_v2  ;;  %v1625_v26 = vmul.f32 0.01, %v1564_v18 }
 0x599   : > { %v1569_v27 = vpop.f32.mrf.mxu0 }
 0x59a   : > { %v1570_v7 = vadd.f32 %v1569_v27, %v1439_v2  ;;  %vm1610_vm8 = vcmp.gt.f32.partialorder %v1568_v15, 0.0 }
 0x59b   : > { %v1573_v28 = vpop.f32.mrf.mxu0 }
 0x59c   : > { %v1574_v10 = vadd.f32 %v1573_v28, %v1444_v55  ;;  %v1627_v25 = vmul.f32 0.01, %v1570_v7  ;;  %vm1611_vm7 = vcmp.gt.f32.partialorder %v1570_v7, 0.0 }
 0x59d   : > { %v1575_v24 = vpop.f32.mrf.mxu0 }
 0x59e   : > { %v1576_v6 = vadd.f32 %v1575_v24, %v1444_v55  ;;  %v1628_v22 = vmul.f32 0.01, %v1574_v10  ;;  %vm1612_vm6 = vcmp.gt.f32.partialorder %v1574_v10, 0.0  ;;  %v1626_v24 = vmul.f32 0.01, %v1568_v15  ;;  %v1712_v55 = vpop.permute.xlu0 %1711 }
 0x59f   : > { %v1579_v29 = vpop.f32.mrf.mxu0 }
 0x5a0   : > { %v1580_v0 = vadd.f32 %v1579_v29, %v1449_v50  ;;  %v1629_v19 = vmul.f32 0.01, %v1576_v6  ;;  %vm1613_vm5 = vcmp.gt.f32.partialorder %v1576_v6, 0.0  ;;  %v1644_v23 = vsel %vm1612_vm6, %v1574_v10, %v1628_v22 }
 0x5a1   : > { %v1581_v30 = vpop.f32.mrf.mxu0 }
 0x5a2   : > { %v1582_v61 = vadd.f32 %v1581_v30, %v1449_v50  ;;  %v1630_v16 = vmul.f32 0.01, %v1580_v0  ;;  %vm1614_vm4 = vcmp.gt.f32.partialorder %v1580_v0, 0.0  ;;  %v1645_v30 = vsel %vm1613_vm5, %v1576_v6, %v1629_v19 }
 0x5a3   : > { %v1585_v31 = vpop.f32.mrf.mxu0 }
 0x5a4   : > { %v1586_v59 = vadd.f32 %v1585_v31, %v1454_v41  ;;  %v1631_v12 = vmul.f32 0.01, %v1582_v61  ;;  %vm1615_vm3 = vcmp.gt.f32.partialorder %v1582_v61, 0.0  ;;  %v1646_v29 = vsel %vm1614_vm4, %v1580_v0, %v1630_v16 }
 0x5a5   : > { %v1587_v32 = vpop.f32.mrf.mxu0  ;;  %v1624_v31 = vmul.f32 0.01, %v1562_v21 }
 0x5a6   : > { %v1588_v51 = vadd.f32 %v1587_v32, %v1454_v41  ;;  %v1632_v11 = vmul.f32 0.01, %v1586_v59  ;;  %vm1616_vm1 = vcmp.gt.f32.partialorder %v1586_v59, 0.0  ;;  %v1647_v28 = vsel %vm1615_vm3, %v1582_v61, %v1631_v12  ;;  %v3890_v41 = vld [vmem:[%s5401_s5 + $0x60] sm:$0xff] }
 0x5a7   : > { %v1591_v34 = vpop.f32.mrf.mxu0  ;;  %v1643_v32 = vsel %vm1611_vm7, %v1570_v7, %v1627_v25 }
 0x5a8   : > { %v1592_v52 = vadd.f32 %v1591_v34, %v1459_v38  ;;  %v1633_v9 = vmul.f32 0.01, %v1588_v51  ;;  %vm1617_vm15 = vcmp.gt.f32.partialorder %v1588_v51, 0.0  ;;  %v1648_v27 = vsel %vm1616_vm1, %v1586_v59, %v1632_v11 }
 0x5a9   : > { %v1593_v36 = vpop.f32.mrf.mxu0 }
 0x5aa   : > { %v1594_v48 = vadd.f32 %v1593_v36, %v1459_v38  ;;  %v1634_v4 = vmul.f32 0.01, %v1592_v52  ;;  %vm1618_vm14 = vcmp.gt.f32.partialorder %v1592_v52, 0.0  ;;  %v1649_v20 = vsel %vm1617_vm15, %v1588_v51, %v1633_v9  ;;  %v3888_v38 = vld [vmem:[%s5401_s5 + $0x50] sm:$0xff] }
 0x5ab   : > { %v1597_v37 = vpop.f32.mrf.mxu0 }
 0x5ac   : > { %v1598_v46 = vadd.f32 %v1597_v37, %v1464_v35  ;;  %v1635_v62 = vmul.f32 0.01, %v1594_v48  ;;  %vm1619_vm13 = vcmp.gt.f32.partialorder %v1594_v48, 0.0  ;;  %v1650_v17 = vsel %vm1618_vm14, %v1592_v52, %v1634_v4  ;;  %v3887_v37 = vld [vmem:[%s5401_s5 + $0x48] sm:$0xff] }
 0x5ad   : > { %v1599_v39 = vpop.f32.mrf.mxu0 }
 0x5ae   : > { %v1600_v44 = vadd.f32 %v1599_v39, %v1464_v35  ;;  %v1636_v60 = vmul.f32 0.01, %v1598_v46  ;;  %vm1620_vm12 = vcmp.gt.f32.partialorder %v1598_v46, 0.0  ;;  %v1651_v13 = vsel %vm1619_vm13, %v1594_v48, %v1635_v62  ;;  %v3886_v35 = vld [vmem:[%s5401_s5 + $0x40] sm:$0xff]  ;;  %v3889_v39 = vld [vmem:[%s5401_s5 + $0x58] sm:$0xff] }
 0x5af   : > { %v1603_v43 = vpop.f32.mrf.mxu0 }
 0x5b0   : > { %v1604_v45 = vadd.f32 %v1603_v43, %v1469_v33  ;;  %v1637_v54 = vmul.f32 0.01, %v1600_v44  ;;  %vm1621_vm11 = vcmp.gt.f32.partialorder %v1600_v44, 0.0  ;;  %v1652_v1 = vsel %vm1620_vm12, %v1598_v46, %v1636_v60  ;;  %v3891_v43 = vld [vmem:[%s5401_s5 + $0x68] sm:$0xff]  ;;  %v1707_v60 = vpop.permute.xlu1 %1706 }
 0x5b1   : > { %v1605_v47 = vpop.f32.mrf.mxu0 }
 0x5b2   : > { %v1606_v49 = vadd.f32 %v1605_v47, %v1469_v33  ;;  %v1638_v53 = vmul.f32 0.01, %v1604_v45  ;;  %vm1622_vm9 = vcmp.gt.f32.partialorder %v1604_v45, 0.0  ;;  %v1653_v8 = vsel %vm1621_vm11, %v1600_v44, %v1637_v54  ;;  %v3892_v44 = vld [vmem:[%s5401_s5 + $0x70] sm:$0xff] }
 0x5b3   : > { %v1642_v33 = vsel %vm1610_vm8, %v1568_v15, %v1626_v24 }
 0x5b4   : > { %v1639_v58 = vmul.f32 0.01, %v1606_v49  ;;  %vm1623_vm10 = vcmp.gt.f32.partialorder %v1606_v49, 0.0  ;;  %v1654_v3 = vsel %vm1622_vm9, %v1604_v45, %v1638_v53  ;;  %vm1609_vm9 = vcmp.gt.f32.partialorder %v1564_v18, 0.0  ;;  %v3893_v45 = vld [vmem:[%s5401_s5 + $0x78] sm:$0xff]  ;;  %v1697_v4 = vpop.permute.xlu1 %1696 }
 0x5b5   : > { %v1641_v34 = vsel %vm1609_vm9, %v1564_v18, %v1625_v26 }
 0x5b6   : > { %v1655_v63 = vsel %vm1623_vm10, %v1606_v49, %v1639_v58  ;;  %vm1608_vm10 = vcmp.gt.f32.partialorder %v1562_v21, 0.0 }
 0x5b7   : > { %1754 = vmatprep.subr.mxu1 %v1655_v63  ;;  %v1640_v36 = vsel %vm1608_vm10, %v1562_v21, %v1624_v31  ;;  %v1702_v63 = vpop.permute.xlu0 %1701 }
 0x5b8   : > { %1755 = vmatpush1.msra.mxu1 %v1654_v3  ;;  %v1687_v16 = vpop.permute.xlu1 %1686 }
 0x5b9   : > { %1756 = vmatprep.subr.mxu1 %v1653_v8 }
 0x5ba   : > { %1757 = vmatpush1.msra.mxu1 %v1652_v1 }
 0x5bb   : > { %1758 = vmatprep.subr.mxu1 %v1651_v13  ;;  %v1692_v1 = vpop.permute.xlu0 %1691 }
 0x5bc   : > { %1759 = vmatpush1.msra.mxu1 %v1650_v17 }
 0x5bd   : > { %1760 = vmatprep.subr.mxu1 %v1649_v20 }
 0x5be   : > { %1761 = vmatpush1.msra.mxu1 %v1648_v27 }
 0x5bf   : > { %1762 = vmatprep.subr.mxu1 %v1647_v28  ;;  %v1682_v26 = vpop.permute.xlu0 %1681 }
 0x5c0   : > { %1763 = vmatpush1.msra.mxu1 %v1646_v29 }
 0x5c1   : > { %1764 = vmatprep.subr.mxu1 %v1645_v30 }
 0x5c2   : > { %1765 = vmatpush1.msra.mxu1 %v1644_v23 }
 0x5c3   : > { %1766 = vmatprep.subr.mxu1 %v1643_v32 }
 0x5c4   : > { %1767 = vmatpush1.msra.mxu1 %v1642_v33 }
 0x5c5   : > { %1768 = vmatprep.subr.mxu1 %v1641_v34 }
 0x5c6   : > { %1769 = vmatpush1.msra.mxu1 %v1640_v36 }
 0x5c7   : > { %3902 = vmatmul.mubr.msk.f32.vlgmr.msra.gmra.mxu1 %vm634_vm2, %v3886_v35  ;;  %v1677_v35 = vpop.permute.xlu1 %1676 }
 0x5c8   : > { %1808 = vmatprep.mubr.f32.mxu1 %v4223_v5 }
 0x5cb   : > { %3903 = vmatmul.mubr.msk.f32.gmra.mxu1 %vm634_vm2, %v3887_v37 }
 0x5cc   : > { %1814 = vmatprep.mubr.f32.mxu1 %v4223_v5 }
 0x5cf   : > { %3904 = vmatmul.mubr.msk.f32.gmra.mxu1 %vm634_vm2, %v3888_v38 }
 0x5d0   : > { %1820 = vmatprep.mubr.f32.mxu1 %v4223_v5 }
 0x5d3   : > { %3905 = vmatmul.mubr.msk.f32.gmra.mxu1 %vm634_vm2, %v3889_v39 }
 0x5d4   : > { %1826 = vmatprep.mubr.f32.mxu1 %v4223_v5 }
 0x5d7   : > { %3906 = vmatmul.mubr.msk.f32.gmra.mxu1 %vm634_vm2, %v3890_v41 }
 0x5d8   : > { %1832 = vmatprep.mubr.f32.mxu1 %v4223_v5 }
 0x5db   : > { %3907 = vmatmul.mubr.msk.f32.gmra.mxu1 %vm634_vm2, %v3891_v43 }
 0x5dc   : > { %1838 = vmatprep.mubr.f32.mxu1 %v4223_v5 }
 0x5df   : > { %3908 = vmatmul.mubr.msk.f32.gmra.mxu1 %vm634_vm2, %v3892_v44 }
 0x5e0   : > { %1844 = vmatprep.mubr.f32.mxu1 %v4223_v5 }
 0x5e3   : > { %3909 = vmatmul.mubr.msk.f32.gmra.mxu1 %vm634_vm2, %v3893_v45 }
 0x5e4   : > { %2399 = vmatprep.mubr.f32.mxu1 %v4223_v5 }
 0x687   : > { %v4964_v46 = vpop.f32.mrf.mxu1 }
 0x688   : > { %v1805_v44 = vadd.f32 %v4964_v46, %v1677_v35 }
 0x689   : > { %v4966_v47 = vpop.f32.mrf.mxu1 }
 0x68a   : > { %v1807_v39 = vadd.f32 %v4966_v47, %v1677_v35 }
 0x68b   : > { %v1810_v48 = vpop.f32.mrf.mxu1 }
 0x68c   : > { %v1811_v36 = vadd.f32 %v1810_v48, %v1682_v26  ;;  %v1868_v47 = vmul.f32 0.01, %v1807_v39 }
 0x68d   : > { %v1812_v49 = vpop.f32.mrf.mxu1 }
 0x68e   : > { %v1813_v32 = vadd.f32 %v1812_v49, %v1682_v26  ;;  %vm1853_vm10 = vcmp.gt.f32.partialorder %v1811_v36, 0.0 }
 0x68f   : > { %v1816_v50 = vpop.f32.mrf.mxu1 }
 0x690   : > { %v1817_v30 = vadd.f32 %v1816_v50, %v1687_v16  ;;  %v1870_v48 = vmul.f32 0.01, %v1813_v32  ;;  %vm1854_vm9 = vcmp.gt.f32.partialorder %v1813_v32, 0.0 }
 0x691   : > { %v1818_v51 = vpop.f32.mrf.mxu1 }
 0x692   : > { %v1819_v28 = vadd.f32 %v1818_v51, %v1687_v16  ;;  %v1871_v45 = vmul.f32 0.01, %v1817_v30  ;;  %vm1855_vm8 = vcmp.gt.f32.partialorder %v1817_v30, 0.0  ;;  %v1869_v51 = vmul.f32 0.01, %v1811_v36 }
 0x693   : > { %v1822_v52 = vpop.f32.mrf.mxu1 }
 0x694   : > { %v1823_v22 = vadd.f32 %v1822_v52, %v1692_v1  ;;  %v1872_v41 = vmul.f32 0.01, %v1819_v28  ;;  %vm1856_vm7 = vcmp.gt.f32.partialorder %v1819_v28, 0.0  ;;  %v1887_v46 = vsel %vm1855_vm8, %v1817_v30, %v1871_v45 }
 0x695   : > { %v1824_v53 = vpop.f32.mrf.mxu1 }
 0x696   : > { %v1825_v19 = vadd.f32 %v1824_v53, %v1692_v1  ;;  %v1873_v37 = vmul.f32 0.01, %v1823_v22  ;;  %vm1857_vm6 = vcmp.gt.f32.partialorder %v1823_v22, 0.0  ;;  %v1888_v53 = vsel %vm1856_vm7, %v1819_v28, %v1872_v41  ;;  %v3923_v28 = vld [vmem:[%s5397_s1 + $0xb8] sm:$0xff] }
 0x697   : > { %v1828_v54 = vpop.f32.mrf.mxu1 }
 0x698   : > { %v1829_v17 = vadd.f32 %v1828_v54, %v1697_v4  ;;  %v1874_v33 = vmul.f32 0.01, %v1825_v19  ;;  %vm1858_vm5 = vcmp.gt.f32.partialorder %v1825_v19, 0.0  ;;  %v1889_v52 = vsel %vm1857_vm6, %v1823_v22, %v1873_v37  ;;  %v3920_v22 = vld [vmem:[%s5397_s1 + $0xa0] sm:$0xff] }
 0x699   : > { %v1830_v58 = vpop.f32.mrf.mxu1  ;;  %v1867_v54 = vmul.f32 0.01, %v1805_v44 }
 0x69a   : > { %v1831_v7 = vadd.f32 %v1830_v58, %v1697_v4  ;;  %v1875_v31 = vmul.f32 0.01, %v1829_v17  ;;  %vm1859_vm4 = vcmp.gt.f32.partialorder %v1829_v17, 0.0  ;;  %v1890_v50 = vsel %vm1858_vm5, %v1825_v19, %v1874_v33 }
 0x69b   : > { %v1834_v59 = vpop.f32.mrf.mxu1  ;;  %v1886_v58 = vsel %vm1854_vm9, %v1813_v32, %v1870_v48 }
 0x69c   : > { %v1835_v12 = vadd.f32 %v1834_v59, %v1702_v63  ;;  %v1876_v24 = vmul.f32 0.01, %v1831_v7  ;;  %vm1860_vm3 = vcmp.gt.f32.partialorder %v1831_v7, 0.0  ;;  %v1891_v49 = vsel %vm1859_vm4, %v1829_v17, %v1875_v31 }
 0x69d   : > { %v1836_v61 = vpop.f32.mrf.mxu1 }
 0x69e   : > { %v1837_v10 = vadd.f32 %v1836_v61, %v1702_v63  ;;  %v1877_v27 = vmul.f32 0.01, %v1835_v12  ;;  %vm1861_vm1 = vcmp.gt.f32.partialorder %v1835_v12, 0.0  ;;  %v1892_v43 = vsel %vm1860_vm3, %v1831_v7, %v1876_v24  ;;  %v1908_v63 = vpop.permute.xlu0 %1907 }
 0x69f   : > { %v1840_v62 = vpop.f32.mrf.mxu1 }
 0x6a0   : > { %v1841_v8 = vadd.f32 %v1840_v62, %v1707_v60  ;;  %v1878_v20 = vmul.f32 0.01, %v1837_v10  ;;  %vm1862_vm15 = vcmp.gt.f32.partialorder %v1837_v10, 0.0  ;;  %v1893_v38 = vsel %vm1861_vm1, %v1835_v12, %v1877_v27  ;;  %v3911_v62 = vld [vmem:[%s5403_s7 + $0x18] sm:$0xff]  ;;  %v3921_v27 = vld [vmem:[%s5397_s1 + $0xa8] sm:$0xff] }
 0x6a1   : > { %v1842_v0 = vpop.f32.mrf.mxu1 }
 0x6a2   : > { %v1843_v6 = vadd.f32 %v1842_v0, %v1707_v60  ;;  %v1879_v18 = vmul.f32 0.01, %v1841_v8  ;;  %vm1863_vm14 = vcmp.gt.f32.partialorder %v1841_v8, 0.0  ;;  %v1894_v34 = vsel %vm1862_vm15, %v1837_v10, %v1878_v20  ;;  %v3910_v60 = vld [vmem:[%s5403_s7 + $0x10] sm:$0xff]  ;;  %v3916_v20 = vld [vmem:[%s5397_s1 + $0x80] sm:$0xff] }
 0x6a3   : > { %v1846_v3 = vpop.f32.mrf.mxu1 }
 0x6a4   : > { %v1847_v9 = vadd.f32 %v1846_v3, %v1712_v55  ;;  %v1880_v14 = vmul.f32 0.01, %v1843_v6  ;;  %vm1864_vm13 = vcmp.gt.f32.partialorder %v1843_v6, 0.0  ;;  %v1895_v23 = vsel %vm1863_vm14, %v1841_v8, %v1879_v18 }
 0x6a5   : > { %v1848_v2 = vpop.f32.mrf.mxu1 }
 0x6a6   : > { %v1849_v11 = vadd.f32 %v1848_v2, %v1712_v55  ;;  %v1881_v13 = vmul.f32 0.01, %v1847_v9  ;;  %vm1865_vm11 = vcmp.gt.f32.partialorder %v1847_v9, 0.0  ;;  %v1896_v29 = vsel %vm1864_vm13, %v1843_v6, %v1880_v14 }
 0x6a7   : > { %v1885_v55 = vsel %vm1853_vm10, %v1811_v36, %v1869_v51  ;;  %v2066_v36 = vpop.permute.xlu0 %2065 }
 0x6a8   : > { %v1882_v15 = vmul.f32 0.01, %v1849_v11  ;;  %vm1866_vm12 = vcmp.gt.f32.partialorder %v1849_v11, 0.0  ;;  %v1897_v25 = vsel %vm1865_vm11, %v1847_v9, %v1881_v13  ;;  %vm1852_vm11 = vcmp.gt.f32.partialorder %v1807_v39, 0.0  ;;  %v1913_v13 = vpop.permute.xlu1 %1912 }
 0x6a9   : > { %v1884_v59 = vsel %vm1852_vm11, %v1807_v39, %v1868_v47 }
 0x6aa   : > { %v1898_v21 = vsel %vm1866_vm12, %v1849_v11, %v1882_v15  ;;  %vm1851_vm12 = vcmp.gt.f32.partialorder %v1805_v44, 0.0 }
 0x6ab   : > { %1937 = vmatprep.subr.mxu0 %v1898_v21  ;;  %v1883_v61 = vsel %vm1851_vm12, %v1805_v44, %v1867_v54  ;;  %v3919_v21 = vld [vmem:[%s5397_s1 + $0x98] sm:$0xff] }
 0x6ac   : > { %1938 = vmatpush1.msra.mxu0 %v1897_v25  ;;  %v3922_v25 = vld [vmem:[%s5397_s1 + $0xb0] sm:$0xff] }
 0x6ad   : > { %1939 = vmatprep.subr.mxu0 %v1896_v29 }
 0x6ae   : > { %1940 = vmatpush1.msra.mxu0 %v1895_v23 }
 0x6af   : > { %1941 = vmatprep.subr.mxu0 %v1894_v34 }
 0x6b0   : > { %1942 = vmatpush1.msra.mxu0 %v1893_v38  ;;  %v2061_v38 = vpop.permute.xlu1 %2060 }
 0x6b1   : > { %1943 = vmatprep.subr.mxu0 %v1892_v43  ;;  %v2056_v43 = vpop.permute.xlu0 %2055 }
 0x6b2   : > { %1944 = vmatpush1.msra.mxu0 %v1891_v49 }
 0x6b3   : > { %1945 = vmatprep.subr.mxu0 %v1890_v50 }
 0x6b4   : > { %1946 = vmatpush1.msra.mxu0 %v1889_v52  ;;  %v2051_v45 = vpop.permute.xlu1 %2050 }
 0x6b5   : > { %1947 = vmatprep.subr.mxu0 %v1888_v53  ;;  %v2046_v54 = vpop.permute.xlu0 %2045 }
 0x6b6   : > { %1948 = vmatpush1.msra.mxu0 %v1887_v46 }
 0x6b7   : > { %1949 = vmatprep.subr.mxu0 %v1886_v58 }
 0x6b8   : > { %1950 = vmatpush1.msra.mxu0 %v1885_v55 }
 0x6b9   : > { %1951 = vmatprep.subr.mxu0 %v1884_v59 }
 0x6ba   : > { %1952 = vmatpush1.msra.mxu0 %v1883_v61  ;;  %v2041_v61 = vpop.permute.xlu1 %2040 }
 0x6bb   : > { %3914 = vmatmul.mubr.msk.f32.vlgmr.msra.gmra.mxu0 %vm634_vm2, %v3910_v60 }
 0x6bc   : > { %1991 = vmatprep.mubr.f32.mxu0 %v4223_v5 }
 0x6bf   : > { %3915 = vmatmul.mubr.msk.f32.gmra.mxu0 %vm634_vm2, %v3911_v62 }
 0x6c0   : > { %2156 = vmatprep.mubr.f32.mxu0 %v4223_v5 }
 0x77b   : > { %v1987_v0 = vpop.f32.mrf.mxu0 }
 0x77c   : > { %v1988_v4 = vadd.f32 %v1987_v0, %v1908_v63 }
 0x77d   : > { %v1989_v3 = vpop.f32.mrf.mxu0 }
 0x77e   : > { %4134 = vtanh.f32 %v1988_v4  ;;  %v1990_v6 = vadd.f32 %v1989_v3, %v1908_v63 }
 0x77f   : > { %v1993_v11 = vpop.f32.mrf.mxu0 }
 0x780   : > { %4136 = vtanh.f32 %v1990_v6  ;;  %v1994_v17 = vadd.f32 %v1993_v11, %v1913_v13 }
 0x781   : > { %v1995_v7 = vpop.f32.mrf.mxu0 }
 0x782   : > { %v1996_v15 = vadd.f32 %v1995_v7, %v1913_v13 }
 0x78b   : > { %v4985_v9 = vpop.eup %4134 }
 0x78c   : > { %v2000_v8 = vmul.f32 1.442695, %v4985_v9 }
 0x78d   : > { %v4988_v2 = vpop.eup %4136 }
 0x78e   : > { %4138 = vpow2.f32 %v2000_v8  ;;  %v2002_v10 = vmul.f32 1.442695, %v4988_v2 }
 0x790   : > { %4140 = vpow2.f32 %v2002_v10 }
 0x79b   : > { %v4139_v1 = vpop.eup %4138 }
 0x79c   : > { %v2004_v14 = vmul.f32 %v4139_v1, %v4818_v57  ;;  %v3918_v57 = vld [vmem:[%s5397_s1 + $0x90] sm:$0xff] }
 0x79d   : > { %v4141_v12 = vpop.eup %4140 }
 0x79e   : > { %v2005_v16 = vmul.f32 %v4141_v12, %v4816_v56  ;;  %v4995_v19 = vadd.f32 %v2004_v14, %v1994_v17  ;;  %v3917_v56 = vld [vmem:[%s5397_s1 + $0x88] sm:$0xff]  ;;  %v2036_v12 = vpop.permute.xlu0 %2035 }
 0x7a0   : > { %v4993_v18 = vadd.f32 %v2005_v16, %v1996_v15 }
 0x7a2   : > { %2122 = vmatprep.subr.mxu0 %v4993_v18 }
 0x7a3   : > { %2123 = vmatpush1.msra.mxu0 %v4995_v19 }
 0x7a4   : > { %3932 = vmatmul.mubr.msk.f32.vlgmr.msra.gmra.mxu0 %vm392_vm0, %v3916_v20 }
 0x7a5   : > { %2162 = vmatprep.mubr.f32.mxu0 %v4223_v5 }
 0x7a8   : > { %3933 = vmatmul.mubr.msk.f32.gmra.mxu0 %vm392_vm0, %v3917_v56  ;;  %v2031_v56 = vpop.permute.xlu1 %2030 }
 0x7a9   : > { %2168 = vmatprep.mubr.f32.mxu0 %v4223_v5 }
 0x7ac   : > { %3934 = vmatmul.mubr.msk.f32.gmra.mxu0 %vm392_vm0, %v3918_v57 }
 0x7ad   : > { %2174 = vmatprep.mubr.f32.mxu0 %v4223_v5 }
 0x7b0   : > { %3935 = vmatmul.mubr.msk.f32.gmra.mxu0 %vm392_vm0, %v3919_v21 }
 0x7b1   : > { %2180 = vmatprep.mubr.f32.mxu0 %v4223_v5 }
 0x7b4   : > { %3936 = vmatmul.mubr.msk.f32.gmra.mxu0 %vm392_vm0, %v3920_v22 }
 0x7b5   : > { %2186 = vmatprep.mubr.f32.mxu0 %v4223_v5 }
 0x7b8   : > { %3937 = vmatmul.mubr.msk.f32.gmra.mxu0 %vm392_vm0, %v3921_v27 }
 0x7b9   : > { %2192 = vmatprep.mubr.f32.mxu0 %v4223_v5 }
 0x7bc   : > { %3938 = vmatmul.mubr.msk.f32.gmra.mxu0 %vm392_vm0, %v3922_v25 }
 0x7bd   : > { %2198 = vmatprep.mubr.f32.mxu0 %v4223_v5 }
 0x7c0   : > { %3939 = vmatmul.mubr.msk.f32.gmra.mxu0 %vm392_vm0, %v3923_v28 }
 0x7c1   : > { %2642 = vmatprep.mubr.f32.mxu0 %v4223_v5 }
 0x864   : > { %v5039_v24 = vpop.f32.mrf.mxu0 }
 0x866   : > { %v5041_v29 = vpop.f32.mrf.mxu0 }
 0x867   : > { %v2161_v27 = vadd.f32 %v5041_v29, %v2031_v56 }
 0x868   : > { %v2164_v26 = vpop.f32.mrf.mxu0 }
 0x869   : > { %v2165_v57 = vadd.f32 %v2164_v26, %v2036_v12  ;;  %v2222_v29 = vmul.f32 0.01, %v2161_v27 }
 0x86a   : > { %v2166_v30 = vpop.f32.mrf.mxu0 }
 0x86b   : > { %v2167_v16 = vadd.f32 %v2166_v30, %v2036_v12  ;;  %v2159_v30 = vadd.f32 %v5039_v24, %v2031_v56  ;;  %vm2207_vm12 = vcmp.gt.f32.partialorder %v2165_v57, 0.0 }
 0x86c   : > { %v2170_v31 = vpop.f32.mrf.mxu0 }
 0x86d   : > { %v2171_v13 = vadd.f32 %v2170_v31, %v2041_v61  ;;  %v2224_v26 = vmul.f32 0.01, %v2167_v16  ;;  %vm2208_vm11 = vcmp.gt.f32.partialorder %v2167_v16, 0.0 }
 0x86e   : > { %v2172_v23 = vpop.f32.mrf.mxu0 }
 0x86f   : > { %v2173_v11 = vadd.f32 %v2172_v23, %v2041_v61  ;;  %v2225_v31 = vmul.f32 0.01, %v2171_v13  ;;  %vm2209_vm10 = vcmp.gt.f32.partialorder %v2171_v13, 0.0 }
 0x870   : > { %v2176_v32 = vpop.f32.mrf.mxu0 }
 0x871   : > { %v2177_v6 = vadd.f32 %v2176_v32, %v2046_v54  ;;  %v2226_v25 = vmul.f32 0.01, %v2173_v11  ;;  %vm2210_vm9 = vcmp.gt.f32.partialorder %v2173_v11, 0.0  ;;  %v2241_v24 = vsel %vm2209_vm10, %v2171_v13, %v2225_v31 }
 0x872   : > { %v2178_v33 = vpop.f32.mrf.mxu0 }
 0x873   : > { %v2179_v0 = vadd.f32 %v2178_v33, %v2046_v54  ;;  %v2227_v21 = vmul.f32 0.01, %v2177_v6  ;;  %vm2211_vm8 = vcmp.gt.f32.partialorder %v2177_v6, 0.0  ;;  %v2223_v33 = vmul.f32 0.01, %v2165_v57 }
 0x874   : > { %v2182_v34 = vpop.f32.mrf.mxu0 }
 0x875   : > { %v2183_v62 = vadd.f32 %v2182_v34, %v2051_v45  ;;  %v2228_v17 = vmul.f32 0.01, %v2179_v0  ;;  %vm2212_vm7 = vcmp.gt.f32.partialorder %v2179_v0, 0.0  ;;  %v2243_v34 = vsel %vm2211_vm8, %v2177_v6, %v2227_v21 }
 0x876   : > { %v2184_v35 = vpop.f32.mrf.mxu0 }
 0x877   : > { %v2185_v46 = vadd.f32 %v2184_v35, %v2051_v45  ;;  %v2229_v14 = vmul.f32 0.01, %v2183_v62  ;;  %vm2213_vm6 = vcmp.gt.f32.partialorder %v2183_v62, 0.0  ;;  %v2244_v32 = vsel %vm2212_vm7, %v2179_v0, %v2228_v17  ;;  %v3942_v45 = vld [vmem:[%s5399_s3 + $0x90] sm:$0xff] }
 0x878   : > { %v2188_v37 = vpop.f32.mrf.mxu0  ;;  %v2242_v35 = vsel %vm2210_vm9, %v2173_v11, %v2226_v25 }
 0x879   : > { %v2189_v58 = vadd.f32 %v2188_v37, %v2056_v43  ;;  %v2230_v1 = vmul.f32 0.01, %v2185_v46  ;;  %vm2214_vm5 = vcmp.gt.f32.partialorder %v2185_v46, 0.0  ;;  %v2245_v23 = vsel %vm2213_vm6, %v2183_v62, %v2229_v14 }
 0x87a   : > { %v2190_v39 = vpop.f32.mrf.mxu0  ;;  %v2240_v37 = vsel %vm2208_vm11, %v2167_v16, %v2224_v26 }
 0x87b   : > { %v2191_v47 = vadd.f32 %v2190_v39, %v2056_v43  ;;  %v2231_v8 = vmul.f32 0.01, %v2189_v58  ;;  %vm2215_vm4 = vcmp.gt.f32.partialorder %v2189_v58, 0.0  ;;  %v2246_v28 = vsel %vm2214_vm5, %v2185_v46, %v2230_v1 }
 0x87c   : > { %v2194_v41 = vpop.f32.mrf.mxu0 }
 0x87d   : > { %v2195_v51 = vadd.f32 %v2194_v41, %v2061_v38  ;;  %v2232_v4 = vmul.f32 0.01, %v2191_v47  ;;  %vm2216_vm3 = vcmp.gt.f32.partialorder %v2191_v47, 0.0  ;;  %v2247_v22 = vsel %vm2215_vm4, %v2189_v58, %v2231_v8  ;;  %v3940_v41 = vld [vmem:[%s5399_s3 + $0x80] sm:$0xff] }
 0x87e   : > { %v2196_v44 = vpop.f32.mrf.mxu0 }
 0x87f   : > { %v2197_v48 = vadd.f32 %v2196_v44, %v2061_v38  ;;  %v2233_v63 = vmul.f32 0.01, %v2195_v51  ;;  %vm2217_vm1 = vcmp.gt.f32.partialorder %v2195_v51, 0.0  ;;  %v2248_v20 = vsel %vm2216_vm3, %v2191_v47, %v2232_v4  ;;  %v3941_v44 = vld [vmem:[%s5399_s3 + $0x88] sm:$0xff]  ;;  %v2304_v4 = vpop.permute.xlu1 %2303 }
 0x880   : > { %v2200_v49 = vpop.f32.mrf.mxu0  ;;  %v2239_v38 = vsel %vm2207_vm12, %v2165_v57, %v2223_v33 }
 0x881   : > { %v2201_v50 = vadd.f32 %v2200_v49, %v2066_v36  ;;  %v2234_v59 = vmul.f32 0.01, %v2197_v48  ;;  %vm2218_vm15 = vcmp.gt.f32.partialorder %v2197_v48, 0.0  ;;  %v2249_v15 = vsel %vm2217_vm1, %v2195_v51, %v2233_v63  ;;  %v3943_v49 = vld [vmem:[%s5399_s3 + $0x98] sm:$0xff]  ;;  %v3946_v51 = vld [vmem:[%s5399_s3 + $0xb0] sm:$0xff]  ;;  %v2309_v63 = vpop.permute.xlu0 %2308 }
 0x882   : > { %v2202_v52 = vpop.f32.mrf.mxu0 }
 0x883   : > { %v2203_v53 = vadd.f32 %v2202_v52, %v2066_v36  ;;  %v2235_v55 = vmul.f32 0.01, %v2201_v50  ;;  %vm2219_vm13 = vcmp.gt.f32.partialorder %v2201_v50, 0.0  ;;  %v2250_v7 = vsel %vm2218_vm15, %v2197_v48, %v2234_v59  ;;  %v3944_v48 = vld [vmem:[%s5399_s3 + $0xa0] sm:$0xff]  ;;  %v3947_v52 = vld [vmem:[%s5399_s3 + $0xb8] sm:$0xff]  ;;  %v2294_v11 = vpop.permute.xlu1 %2293 }
 0x884   : > { %v2221_v36 = vmul.f32 0.01, %v2159_v30 }
 0x885   : > { %v2236_v60 = vmul.f32 0.01, %v2203_v53  ;;  %vm2220_vm14 = vcmp.gt.f32.partialorder %v2203_v53, 0.0  ;;  %v2251_v10 = vsel %vm2219_vm13, %v2201_v50, %v2235_v55  ;;  %vm2206_vm13 = vcmp.gt.f32.partialorder %v2161_v27, 0.0  ;;  %v3945_v50 = vld [vmem:[%s5399_s3 + $0xa8] sm:$0xff]  ;;  %v2299_v8 = vpop.permute.xlu0 %2298 }
 0x886   : > { %v2238_v39 = vsel %vm2206_vm13, %v2161_v27, %v2222_v29 }
 0x887   : > { %v2252_v3 = vsel %vm2220_vm14, %v2203_v53, %v2236_v60  ;;  %vm2205_vm14 = vcmp.gt.f32.partialorder %v2159_v30, 0.0  ;;  %v2284_v27 = vpop.permute.xlu1 %2283 }
 0x888   : > { %2351 = vmatprep.subr.mxu1 %v2252_v3  ;;  %v2237_v43 = vsel %vm2205_vm14, %v2159_v30, %v2221_v36 }
 0x889   : > { %2352 = vmatpush1.msra.mxu1 %v2251_v10  ;;  %v2289_v17 = vpop.permute.xlu0 %2288 }
 0x88a   : > { %2353 = vmatprep.subr.mxu1 %v2250_v7 }
 0x88b   : > { %2354 = vmatpush1.msra.mxu1 %v2249_v15 }
 0x88c   : > { %2355 = vmatprep.subr.mxu1 %v2248_v20 }
 0x88d   : > { %2356 = vmatpush1.msra.mxu1 %v2247_v22  ;;  %v2279_v36 = vpop.permute.xlu0 %2278 }
 0x88e   : > { %2357 = vmatprep.subr.mxu1 %v2246_v28 }
 0x88f   : > { %2358 = vmatpush1.msra.mxu1 %v2245_v23 }
 0x890   : > { %2359 = vmatprep.subr.mxu1 %v2244_v32 }
 0x891   : > { %2360 = vmatpush1.msra.mxu1 %v2243_v34 }
 0x892   : > { %2361 = vmatprep.subr.mxu1 %v2242_v35 }
 0x893   : > { %2362 = vmatpush1.msra.mxu1 %v2241_v24 }
 0x894   : > { %2363 = vmatprep.subr.mxu1 %v2240_v37 }
 0x895   : > { %2364 = vmatpush1.msra.mxu1 %v2239_v38 }
 0x896   : > { %2365 = vmatprep.subr.mxu1 %v2238_v39 }
 0x897   : > { %2366 = vmatpush1.msra.mxu1 %v2237_v43 }
 0x898   : > { %3956 = vmatmul.mubr.msk.f32.vlgmr.msra.gmra.mxu1 %vm634_vm2, %v3940_v41 }
 0x899   : > { %2405 = vmatprep.mubr.f32.mxu1 %v4223_v5 }
 0x89c   : > { %3957 = vmatmul.mubr.msk.f32.gmra.mxu1 %vm634_vm2, %v3941_v44  ;;  %v2274_v44 = vpop.permute.xlu1 %2273 }
 0x89d   : > { %2411 = vmatprep.mubr.f32.mxu1 %v4223_v5 }
 0x8a0   : > { %3958 = vmatmul.mubr.msk.f32.gmra.mxu1 %vm634_vm2, %v3942_v45 }
 0x8a1   : > { %2417 = vmatprep.mubr.f32.mxu1 %v4223_v5 }
 0x8a4   : > { %3959 = vmatmul.mubr.msk.f32.gmra.mxu1 %vm634_vm2, %v3943_v49 }
 0x8a5   : > { %2423 = vmatprep.mubr.f32.mxu1 %v4223_v5 }
 0x8a8   : > { %3960 = vmatmul.mubr.msk.f32.gmra.mxu1 %vm634_vm2, %v3944_v48 }
 0x8a9   : > { %2429 = vmatprep.mubr.f32.mxu1 %v4223_v5 }
 0x8ac   : > { %3961 = vmatmul.mubr.msk.f32.gmra.mxu1 %vm634_vm2, %v3945_v50 }
 0x8ad   : > { %2435 = vmatprep.mubr.f32.mxu1 %v4223_v5 }
 0x8b0   : > { %3962 = vmatmul.mubr.msk.f32.gmra.mxu1 %vm634_vm2, %v3946_v51 }
 0x8b1   : > { %2441 = vmatprep.mubr.f32.mxu1 %v4223_v5 }
 0x8b4   : > { %3963 = vmatmul.mubr.msk.f32.gmra.mxu1 %vm634_vm2, %v3947_v52 }
 0x8b5   : > { %2825 = vmatprep.mubr.f32.mxu1 %v4223_v5 }
 0x958   : > { %v5090_v47 = vpop.f32.mrf.mxu1 }
 0x95a   : > { %v5092_v53 = vpop.f32.mrf.mxu1 }
 0x95b   : > { %v2404_v50 = vadd.f32 %v5092_v53, %v2274_v44 }
 0x95c   : > { %v2407_v54 = vpop.f32.mrf.mxu1 }
 0x95d   : > { %v2408_v45 = vadd.f32 %v2407_v54, %v2279_v36  ;;  %v2465_v53 = vmul.f32 0.01, %v2404_v50 }
 0x95e   : > { %v2409_v46 = vpop.f32.mrf.mxu1 }
 0x95f   : > { %v2410_v39 = vadd.f32 %v2409_v46, %v2279_v36  ;;  %v2402_v46 = vadd.f32 %v5090_v47, %v2274_v44  ;;  %vm2450_vm14 = vcmp.gt.f32.partialorder %v2408_v45, 0.0 }
 0x960   : > { %v2413_v58 = vpop.f32.mrf.mxu1 }
 0x961   : > { %v2414_v24 = vadd.f32 %v2413_v58, %v2284_v27  ;;  %v2467_v54 = vmul.f32 0.01, %v2410_v39  ;;  %vm2451_vm13 = vcmp.gt.f32.partialorder %v2410_v39, 0.0 }
 0x962   : > { %v2415_v55 = vpop.f32.mrf.mxu1 }
 0x963   : > { %v2416_v34 = vadd.f32 %v2415_v55, %v2284_v27  ;;  %v2468_v58 = vmul.f32 0.01, %v2414_v24  ;;  %vm2452_vm12 = vcmp.gt.f32.partialorder %v2414_v24, 0.0 }
 0x964   : > { %v2419_v59 = vpop.f32.mrf.mxu1 }
 0x965   : > { %v2420_v26 = vadd.f32 %v2419_v59, %v2289_v17  ;;  %v2469_v51 = vmul.f32 0.01, %v2416_v34  ;;  %vm2453_vm11 = vcmp.gt.f32.partialorder %v2416_v34, 0.0  ;;  %v2484_v47 = vsel %vm2452_vm12, %v2414_v24, %v2468_v58 }
 0x966   : > { %v2421_v60 = vpop.f32.mrf.mxu1 }
 0x967   : > { %v2422_v30 = vadd.f32 %v2421_v60, %v2289_v17  ;;  %v2470_v49 = vmul.f32 0.01, %v2420_v26  ;;  %vm2454_vm10 = vcmp.gt.f32.partialorder %v2420_v26, 0.0  ;;  %v2466_v60 = vmul.f32 0.01, %v2408_v45 }
 0x968   : > { %v2425_v61 = vpop.f32.mrf.mxu1 }
 0x969   : > { %v2426_v25 = vadd.f32 %v2425_v61, %v2294_v11  ;;  %v2471_v41 = vmul.f32 0.01, %v2422_v30  ;;  %vm2455_vm9 = vcmp.gt.f32.partialorder %v2422_v30, 0.0  ;;  %v2486_v61 = vsel %vm2454_vm10, %v2420_v26, %v2470_v49 }
 0x96a   : > { %v2427_v62 = vpop.f32.mrf.mxu1 }
 0x96b   : > { %v2428_v20 = vadd.f32 %v2427_v62, %v2294_v11  ;;  %v2472_v37 = vmul.f32 0.01, %v2426_v25  ;;  %vm2456_vm8 = vcmp.gt.f32.partialorder %v2426_v25, 0.0  ;;  %v2487_v59 = vsel %vm2455_vm9, %v2422_v30, %v2471_v41  ;;  %v3966_v11 = vld [vmem:[%s5401_s5 + $0x90] sm:$0xff] }
 0x96c   : > { %v2431_v0 = vpop.f32.mrf.mxu1  ;;  %v2485_v62 = vsel %vm2453_vm11, %v2416_v34, %v2469_v51 }
 0x96d   : > { %v2432_v56 = vadd.f32 %v2431_v0, %v2299_v8  ;;  %v2473_v29 = vmul.f32 0.01, %v2428_v20  ;;  %vm2457_vm7 = vcmp.gt.f32.partialorder %v2428_v20, 0.0  ;;  %v2488_v55 = vsel %vm2456_vm8, %v2426_v25, %v2472_v37 }
 0x96e   : > { %v2433_v3 = vpop.f32.mrf.mxu1  ;;  %v2483_v0 = vsel %vm2451_vm13, %v2410_v39, %v2467_v54 }
 0x96f   : > { %v2434_v15 = vadd.f32 %v2433_v3, %v2299_v8  ;;  %v2474_v32 = vmul.f32 0.01, %v2432_v56  ;;  %vm2458_vm6 = vcmp.gt.f32.partialorder %v2432_v56, 0.0  ;;  %v2489_v52 = vsel %vm2457_vm7, %v2428_v20, %v2473_v29 }
 0x970   : > { %v2437_v6 = vpop.f32.mrf.mxu1 }
 0x971   : > { %v2438_v13 = vadd.f32 %v2437_v6, %v2304_v4  ;;  %v2475_v31 = vmul.f32 0.01, %v2434_v15  ;;  %vm2459_vm5 = vcmp.gt.f32.partialorder %v2434_v15, 0.0  ;;  %v2490_v48 = vsel %vm2458_vm6, %v2432_v56, %v2474_v32  ;;  %v3964_v6 = vld [vmem:[%s5401_s5 + $0x80] sm:$0xff] }
 0x972   : > { %v2439_v10 = vpop.f32.mrf.mxu1 }
 0x973   : > { %v2440_v7 = vadd.f32 %v2439_v10, %v2304_v4  ;;  %v2476_v28 = vmul.f32 0.01, %v2438_v13  ;;  %vm2460_vm4 = vcmp.gt.f32.partialorder %v2438_v13, 0.0  ;;  %v2491_v43 = vsel %vm2459_vm5, %v2434_v15, %v2475_v31  ;;  %v3965_v10 = vld [vmem:[%s5401_s5 + $0x88] sm:$0xff]  ;;  %v2547_v31 = vpop.permute.xlu1 %2546 }
 0x974   : > { %v2443_v1 = vpop.f32.mrf.mxu1  ;;  %v2482_v4 = vsel %vm2450_vm14, %v2408_v45, %v2466_v60 }
 0x975   : > { %v2444_v12 = vadd.f32 %v2443_v1, %v2309_v63  ;;  %v2477_v21 = vmul.f32 0.01, %v2440_v7  ;;  %vm2461_vm3 = vcmp.gt.f32.partialorder %v2440_v7, 0.0  ;;  %v2492_v38 = vsel %vm2460_vm4, %v2438_v13, %v2476_v28  ;;  %v3967_v1 = vld [vmem:[%s5401_s5 + $0x98] sm:$0xff]  ;;  %v3970_v13 = vld [vmem:[%s5401_s5 + $0xb0] sm:$0xff]  ;;  %v2552_v28 = vpop.permute.xlu0 %2551 }
 0x976   : > { %v2445_v14 = vpop.f32.mrf.mxu1 }
 0x977   : > { %v2446_v16 = vadd.f32 %v2445_v14, %v2309_v63  ;;  %v2478_v57 = vmul.f32 0.01, %v2444_v12  ;;  %vm2462_vm15 = vcmp.gt.f32.partialorder %v2444_v12, 0.0  ;;  %v2493_v35 = vsel %vm2461_vm3, %v2440_v7, %v2477_v21  ;;  %v3968_v7 = vld [vmem:[%s5401_s5 + $0xa0] sm:$0xff]  ;;  %v3971_v14 = vld [vmem:[%s5401_s5 + $0xb8] sm:$0xff]  ;;  %v2537_v34 = vpop.permute.xlu1 %2536 }
 0x978   : > { %v2464_v63 = vmul.f32 0.01, %v2402_v46 }
 0x979   : > { %v2479_v22 = vmul.f32 0.01, %v2446_v16  ;;  %vm2463_vm1 = vcmp.gt.f32.partialorder %v2446_v16, 0.0  ;;  %v2494_v33 = vsel %vm2462_vm15, %v2444_v12, %v2478_v57  ;;  %vm2449_vm15 = vcmp.gt.f32.partialorder %v2404_v50, 0.0  ;;  %v3969_v12 = vld [vmem:[%s5401_s5 + $0xa8] sm:$0xff]  ;;  %v2542_v32 = vpop.permute.xlu0 %2541 }
 0x97a   : > { %v2481_v3 = vsel %vm2449_vm15, %v2404_v50, %v2465_v53 }
 0x97b   : > { %v2495_v23 = vsel %vm2463_vm1, %v2446_v16, %v2479_v22  ;;  %vm2448_vm1 = vcmp.gt.f32.partialorder %v2402_v46, 0.0  ;;  %v2527_v50 = vpop.permute.xlu1 %2526 }
 0x97c   : > { %2594 = vmatprep.subr.mxu0 %v2495_v23  ;;  %v2480_v8 = vsel %vm2448_vm1, %v2402_v46, %v2464_v63 }
 0x97d   : > { %2595 = vmatpush1.msra.mxu0 %v2494_v33  ;;  %v2532_v41 = vpop.permute.xlu0 %2531 }
 0x97e   : > { %2596 = vmatprep.subr.mxu0 %v2493_v35 }
 0x97f   : > { %2597 = vmatpush1.msra.mxu0 %v2492_v38 }
 0x980   : > { %2598 = vmatprep.subr.mxu0 %v2491_v43 }
 0x981   : > { %2599 = vmatpush1.msra.mxu0 %v2490_v48  ;;  %v2522_v63 = vpop.permute.xlu0 %2521 }
 0x982   : > { %2600 = vmatprep.subr.mxu0 %v2489_v52 }
 0x983   : > { %2601 = vmatpush1.msra.mxu0 %v2488_v55 }
 0x984   : > { %2602 = vmatprep.subr.mxu0 %v2487_v59 }
 0x985   : > { %2603 = vmatpush1.msra.mxu0 %v2486_v61 }
 0x986   : > { %2604 = vmatprep.subr.mxu0 %v2485_v62 }
 0x987   : > { %2605 = vmatpush1.msra.mxu0 %v2484_v47 }
 0x988   : > { %2606 = vmatprep.subr.mxu0 %v2483_v0 }
 0x989   : > { %2607 = vmatpush1.msra.mxu0 %v2482_v4 }
 0x98a   : > { %2608 = vmatprep.subr.mxu0 %v2481_v3 }
 0x98b   : > { %2609 = vmatpush1.msra.mxu0 %v2480_v8 }
 0x98c   : > { %3980 = vmatmul.mubr.msk.f32.vlgmr.msra.gmra.mxu0 %vm634_vm2, %v3964_v6 }
 0x98d   : > { %2648 = vmatprep.mubr.f32.mxu0 %v4223_v5 }
 0x990   : > { %3981 = vmatmul.mubr.msk.f32.gmra.mxu0 %vm634_vm2, %v3965_v10  ;;  %v2517_v10 = vpop.permute.xlu1 %2516 }
 0x991   : > { %2654 = vmatprep.mubr.f32.mxu0 %v4223_v5 }
 0x994   : > { %3982 = vmatmul.mubr.msk.f32.gmra.mxu0 %vm634_vm2, %v3966_v11 }
 0x995   : > { %2660 = vmatprep.mubr.f32.mxu0 %v4223_v5 }
 0x998   : > { %3983 = vmatmul.mubr.msk.f32.gmra.mxu0 %vm634_vm2, %v3967_v1 }
 0x999   : > { %2666 = vmatprep.mubr.f32.mxu0 %v4223_v5 }
 0x99c   : > { %3984 = vmatmul.mubr.msk.f32.gmra.mxu0 %vm634_vm2, %v3968_v7 }
 0x99d   : > { %2672 = vmatprep.mubr.f32.mxu0 %v4223_v5 }
 0x9a0   : > { %3985 = vmatmul.mubr.msk.f32.gmra.mxu0 %vm634_vm2, %v3969_v12 }
 0x9a1   : > { %2678 = vmatprep.mubr.f32.mxu0 %v4223_v5 }
 0x9a4   : > { %3986 = vmatmul.mubr.msk.f32.gmra.mxu0 %vm634_vm2, %v3970_v13 }
 0x9a5   : > { %2684 = vmatprep.mubr.f32.mxu0 %v4223_v5 }
 0x9a8   : > { %3987 = vmatmul.mubr.msk.f32.gmra.mxu0 %vm634_vm2, %v3971_v14 }
 0x9a9   : > { %3239 = vmatprep.mubr.f32.mxu0 %v4223_v5 }
 0xa4c   : > { %v5141_v15 = vpop.f32.mrf.mxu0 }
 0xa4e   : > { %v5143_v16 = vpop.f32.mrf.mxu0 }
 0xa4f   : > { %v2647_v12 = vadd.f32 %v5143_v16, %v2517_v10 }
 0xa50   : > { %v2650_v17 = vpop.f32.mrf.mxu0 }
 0xa51   : > { %v2651_v11 = vadd.f32 %v2650_v17, %v2522_v63  ;;  %v2708_v16 = vmul.f32 0.01, %v2647_v12 }
 0xa52   : > { %v2652_v20 = vpop.f32.mrf.mxu0 }
 0xa53   : > { %v2653_v3 = vadd.f32 %v2652_v20, %v2522_v63  ;;  %v2645_v20 = vadd.f32 %v5141_v15, %v2517_v10  ;;  %vm2693_vm1 = vcmp.gt.f32.partialorder %v2651_v11, 0.0 }
 0xa54   : > { %v2656_v56 = vpop.f32.mrf.mxu0 }
 0xa55   : > { %v2657_v47 = vadd.f32 %v2656_v56, %v2527_v50  ;;  %v2710_v17 = vmul.f32 0.01, %v2653_v3  ;;  %vm2694_vm15 = vcmp.gt.f32.partialorder %v2653_v3, 0.0 }
 0xa56   : > { %v2658_v57 = vpop.f32.mrf.mxu0 }
 0xa57   : > { %v2659_v61 = vadd.f32 %v2658_v57, %v2527_v50  ;;  %v2711_v56 = vmul.f32 0.01, %v2657_v47  ;;  %vm2695_vm14 = vcmp.gt.f32.partialorder %v2657_v47, 0.0 }
 0xa58   : > { %v2662_v21 = vpop.f32.mrf.mxu0 }
 0xa59   : > { %v2663_v54 = vadd.f32 %v2662_v21, %v2532_v41  ;;  %v2712_v13 = vmul.f32 0.01, %v2659_v61  ;;  %vm2696_vm13 = vcmp.gt.f32.partialorder %v2659_v61, 0.0  ;;  %v2727_v15 = vsel %vm2695_vm14, %v2657_v47, %v2711_v56 }
 0xa5a   : > { %v2664_v22 = vpop.f32.mrf.mxu0 }
 0xa5b   : > { %v2665_v46 = vadd.f32 %v2664_v22, %v2532_v41  ;;  %v2713_v1 = vmul.f32 0.01, %v2663_v54  ;;  %vm2697_vm12 = vcmp.gt.f32.partialorder %v2663_v54, 0.0  ;;  %v2709_v22 = vmul.f32 0.01, %v2651_v11 }
 0xa5c   : > { %v2668_v27 = vpop.f32.mrf.mxu0 }
 0xa5d   : > { %v2669_v51 = vadd.f32 %v2668_v27, %v2537_v34  ;;  %v2714_v6 = vmul.f32 0.01, %v2665_v46  ;;  %vm2698_vm11 = vcmp.gt.f32.partialorder %v2665_v46, 0.0  ;;  %v2729_v27 = vsel %vm2697_vm12, %v2663_v54, %v2713_v1  ;;  %v3994_v54 = vld [vmem:[%s5397_s1 + $0xc0] sm:$0xff] }
 0xa5e   : > { %v2670_v25 = vpop.f32.mrf.mxu0 }
 0xa5f   : > { %v2671_v43 = vadd.f32 %v2670_v25, %v2537_v34  ;;  %v2715_v0 = vmul.f32 0.01, %v2669_v51  ;;  %vm2699_vm10 = vcmp.gt.f32.partialorder %v2669_v51, 0.0  ;;  %v2730_v21 = vsel %vm2698_vm11, %v2665_v46, %v2714_v6  ;;  %v2748_v34 = vpop.permute.xlu0 %2747  ;;  %v2753_v46 = vpop.permute.xlu1 %2752 }
 0xa60   : > { %v2674_v30 = vpop.f32.mrf.mxu0  ;;  %v2728_v25 = vsel %vm2696_vm13, %v2659_v61, %v2712_v13  ;;  %v3999_v61 = vld [vmem:[%s5397_s1 + $0xe8] sm:$0xff] }
 0xa61   : > { %v2675_v44 = vadd.f32 %v2674_v30, %v2542_v32  ;;  %v2716_v53 = vmul.f32 0.01, %v2671_v43  ;;  %vm2700_vm9 = vcmp.gt.f32.partialorder %v2671_v43, 0.0  ;;  %v2731_v57 = vsel %vm2699_vm10, %v2669_v51, %v2715_v0 }
 0xa62   : > { %v2676_v23 = vpop.f32.mrf.mxu0  ;;  %v2726_v30 = vsel %vm2694_vm15, %v2653_v3, %v2710_v17 }
 0xa63   : > { %v2677_v38 = vadd.f32 %v2676_v23, %v2542_v32  ;;  %v2717_v59 = vmul.f32 0.01, %v2675_v44  ;;  %vm2701_vm8 = vcmp.gt.f32.partialorder %v2675_v44, 0.0  ;;  %v2732_v14 = vsel %vm2700_vm9, %v2671_v43, %v2716_v53  ;;  %v4000_v53 = vld [vmem:[%s5397_s1 + $0xf0] sm:$0xff]  ;;  %v2901_v13 = vpop.permute.xlu1 %2900 }
 0xa64   : > { %v2680_v26 = vpop.f32.mrf.mxu0 }
 0xa65   : > { %v2681_v24 = vadd.f32 %v2680_v26, %v2547_v31  ;;  %v2718_v58 = vmul.f32 0.01, %v2677_v38  ;;  %vm2702_vm7 = vcmp.gt.f32.partialorder %v2677_v38, 0.0  ;;  %v2733_v7 = vsel %vm2701_vm8, %v2675_v44, %v2717_v59  ;;  %v3988_v26 = vld [vmem:[%s5403_s7 + $0x20] sm:$0xff]  ;;  %v3997_v59 = vld [vmem:[%s5397_s1 + $0xd8] sm:$0xff] }
 0xa66   : > { %v2682_v33 = vpop.f32.mrf.mxu0 }
 0xa67   : > { %v2683_v35 = vadd.f32 %v2682_v33, %v2547_v31  ;;  %v2719_v52 = vmul.f32 0.01, %v2681_v24  ;;  %vm2703_vm6 = vcmp.gt.f32.partialorder %v2681_v24, 0.0  ;;  %v2734_v8 = vsel %vm2702_vm7, %v2677_v38, %v2718_v58  ;;  %v3989_v33 = vld [vmem:[%s5403_s7 + $0x28] sm:$0xff]  ;;  %v2891_v17 = vpop.permute.xlu1 %2890 }
 0xa68   : > { %v2686_v29 = vpop.f32.mrf.mxu0  ;;  %v2725_v31 = vsel %vm2693_vm1, %v2651_v11, %v2709_v22 }
 0xa69   : > { %v2687_v36 = vadd.f32 %v2686_v29, %v2552_v28  ;;  %v2720_v49 = vmul.f32 0.01, %v2683_v35  ;;  %vm2704_vm5 = vcmp.gt.f32.partialorder %v2683_v35, 0.0  ;;  %v2735_v4 = vsel %vm2703_vm6, %v2681_v24, %v2719_v52 }
 0xa6a   : > { %v2688_v37 = vpop.f32.mrf.mxu0 }
 0xa6b   : > { %v2689_v39 = vadd.f32 %v2688_v37, %v2552_v28  ;;  %v2721_v45 = vmul.f32 0.01, %v2687_v36  ;;  %vm2705_vm3 = vcmp.gt.f32.partialorder %v2687_v36, 0.0  ;;  %v2736_v62 = vsel %vm2704_vm5, %v2683_v35, %v2720_v49 }
 0xa6c   : > { %v2707_v28 = vmul.f32 0.01, %v2645_v20  ;;  %v2008_v37 = vadd.f32 %v4985_v9, %v4808_v40 }
 0xa6d   : > { %v2722_v48 = vmul.f32 0.01, %v2689_v39  ;;  %vm2706_vm4 = vcmp.gt.f32.partialorder %v2689_v39, 0.0  ;;  %v2737_v60 = vsel %vm2705_vm3, %v2687_v36, %v2721_v45  ;;  %vm2692_vm3 = vcmp.gt.f32.partialorder %v2647_v12, 0.0 }
 0xa6e   : > { %v2724_v23 = vsel %vm2692_vm3, %v2647_v12, %v2708_v16 }
 0xa6f   : > { %v2738_v55 = vsel %vm2706_vm4, %v2689_v39, %v2722_v48  ;;  %vm2691_vm4 = vcmp.gt.f32.partialorder %v2645_v20, 0.0  ;;  %v2009_v39 = vadd.f32 %v4988_v2, %v4811_v42 }
 0xa70   : > { %2777 = vmatprep.subr.mxu1 %v2738_v55  ;;  %v2723_v32 = vsel %vm2691_vm4, %v2645_v20, %v2707_v28 }
 0xa71   : > { %2778 = vmatpush1.msra.mxu1 %v2737_v60  ;;  %v3998_v60 = vld [vmem:[%s5397_s1 + $0xe0] sm:$0xff] }
 0xa72   : > { %2779 = vmatprep.subr.mxu1 %v2736_v62  ;;  %v4001_v62 = vld [vmem:[%s5397_s1 + $0xf8] sm:$0xff] }
 0xa73   : > { %2780 = vmatpush1.msra.mxu1 %v2735_v4 }
 0xa74   : > { %2781 = vmatprep.subr.mxu1 %v2734_v8 }
 0xa75   : > { %2782 = vmatpush1.msra.mxu1 %v2733_v7  ;;  %v2906_v7 = vpop.permute.xlu0 %2905 }
 0xa76   : > { %2783 = vmatprep.subr.mxu1 %v2732_v14 }
 0xa77   : > { %2784 = vmatpush1.msra.mxu1 %v2731_v57 }
 0xa78   : > { %2785 = vmatprep.subr.mxu1 %v2730_v21 }
 0xa79   : > { %2786 = vmatpush1.msra.mxu1 %v2729_v27  ;;  %v2896_v56 = vpop.permute.xlu0 %2895 }
 0xa7a   : > { %2787 = vmatprep.subr.mxu1 %v2728_v25 }
 0xa7b   : > { %2788 = vmatpush1.msra.mxu1 %v2727_v15 }
 0xa7c   : > { %2789 = vmatprep.subr.mxu1 %v2726_v30 }
 0xa7d   : > { %2790 = vmatpush1.msra.mxu1 %v2725_v31  ;;  %v2886_v30 = vpop.permute.xlu0 %2885 }
 0xa7e   : > { %2791 = vmatprep.subr.mxu1 %v2724_v23 }
 0xa7f   : > { %2792 = vmatpush1.msra.mxu1 %v2723_v32 }
 0xa80   : > { %3992 = vmatmul.mubr.msk.f32.vlgmr.msra.gmra.mxu1 %vm634_vm2, %v3988_v26 }
 0xa81   : > { %2831 = vmatprep.mubr.f32.mxu1 %v4223_v5 }
 0xa84   : > { %3993 = vmatmul.mubr.msk.f32.gmra.mxu1 %vm634_vm2, %v3989_v33 }
 0xa85   : > { %2996 = vmatprep.mubr.f32.mxu1 %v4223_v5 }
 0xb40   : > { %v2827_v29 = vpop.f32.mrf.mxu1 }
 0xb41   : > { %v2828_v35 = vadd.f32 %v2827_v29, %v2748_v34 }
 0xb42   : > { %v2829_v36 = vpop.f32.mrf.mxu1 }
 0xb43   : > { %4142 = vtanh.f32 %v2828_v35  ;;  %v2830_v24 = vadd.f32 %v2829_v36, %v2748_v34  ;;  %v2881_v34 = vpop.permute.xlu1 %2880 }
 0xb44   : > { %v2833_v48 = vpop.f32.mrf.mxu1 }
 0xb45   : > { %4144 = vtanh.f32 %v2830_v24  ;;  %v2834_v42 = vadd.f32 %v2833_v48, %v2753_v46 }
 0xb46   : > { %v2835_v51 = vpop.f32.mrf.mxu1 }
 0xb47   : > { %v2836_v9 = vadd.f32 %v2835_v51, %v2753_v46 }
 0xb50   : > { %v4143_v38 = vpop.eup %4142 }
 0xb51   : > { %v2840_v41 = vmul.f32 1.442695, %v4143_v38  ;;  %v5166_v43 = vadd.f32 %v4143_v38, %v2008_v37 }
 0xb52   : > { %v4145_v44 = vpop.eup %4144 }
 0xb53   : > { %4146 = vpow2.f32 %v2840_v41  ;;  %v2842_v45 = vmul.f32 1.442695, %v4145_v44  ;;  %v5168_v49 = vadd.f32 %v4145_v44, %v2009_v39 }
 0xb55   : > { %4148 = vpow2.f32 %v2842_v45 }
 0xb60   : > { %v4147_v50 = vpop.eup %4146 }
 0xb61   : > { %v2844_v40 = vmul.f32 %v4147_v50, %v4995_v19  ;;  %v3996_v19 = vld [vmem:[%s5397_s1 + $0xd0] sm:$0xff]  ;;  %v2876_v50 = vpop.permute.xlu0 %2875 }
 0xb62   : > { %v4149_v52 = vpop.eup %4148 }
 0xb63   : > { %v2845_v58 = vmul.f32 %v4149_v52, %v4993_v18  ;;  %v5174_v55 = vadd.f32 %v2844_v40, %v2834_v42  ;;  %v3995_v18 = vld [vmem:[%s5397_s1 + $0xc8] sm:$0xff]  ;;  %v2871_v42 = vpop.permute.xlu1 %2870 }
 0xb65   : > { %v5172_v2 = vadd.f32 %v2845_v58, %v2836_v9 }
 0xb67   : > { %2962 = vmatprep.subr.mxu1 %v5172_v2 }
 0xb68   : > { %2963 = vmatpush1.msra.mxu1 %v5174_v55 }
 0xb69   : > { %4010 = vmatmul.mubr.msk.f32.vlgmr.msra.gmra.mxu1 %vm392_vm0, %v3994_v54 }
 0xb6a   : > { %3002 = vmatprep.mubr.f32.mxu1 %v4223_v5 }
 0xb6d   : > { %4011 = vmatmul.mubr.msk.f32.gmra.mxu1 %vm392_vm0, %v3995_v18 }
 0xb6e   : > { %3008 = vmatprep.mubr.f32.mxu1 %v4223_v5 }
 0xb71   : > { %4012 = vmatmul.mubr.msk.f32.gmra.mxu1 %vm392_vm0, %v3996_v19 }
 0xb72   : > { %3014 = vmatprep.mubr.f32.mxu1 %v4223_v5 }
 0xb75   : > { %4013 = vmatmul.mubr.msk.f32.gmra.mxu1 %vm392_vm0, %v3997_v59 }
 0xb76   : > { %3020 = vmatprep.mubr.f32.mxu1 %v4223_v5 }
 0xb79   : > { %4014 = vmatmul.mubr.msk.f32.gmra.mxu1 %vm392_vm0, %v3998_v60 }
 0xb7a   : > { %3026 = vmatprep.mubr.f32.mxu1 %v4223_v5 }
 0xb7d   : > { %4015 = vmatmul.mubr.msk.f32.gmra.mxu1 %vm392_vm0, %v3999_v61 }
 0xb7e   : > { %3032 = vmatprep.mubr.f32.mxu1 %v4223_v5 }
 0xb81   : > { %4016 = vmatmul.mubr.msk.f32.gmra.mxu1 %vm392_vm0, %v4000_v53 }
 0xb82   : > { %3038 = vmatprep.mubr.f32.mxu1 %v4223_v5 }
 0xb85   : > { %4017 = vmatmul.mubr.msk.f32.gmra.mxu1 %vm392_vm0, %v4001_v62 }
 0xb86   : > { %3482 = vmatprep.mubr.f32.mxu1 %v4223_v5 }
 0xc29   : > { %v5218_v63 = vpop.f32.mrf.mxu1 }
 0xc2a   : > { %v2999_v53 = vadd.f32 %v5218_v63, %v2871_v42 }
 0xc2b   : > { %v5220_v47 = vpop.f32.mrf.mxu1 }
 0xc2c   : > { %v3001_v59 = vadd.f32 %v5220_v47, %v2871_v42 }
 0xc2d   : > { %v3004_v0 = vpop.f32.mrf.mxu1 }
 0xc2e   : > { %v3005_v54 = vadd.f32 %v3004_v0, %v2876_v50  ;;  %v3062_v47 = vmul.f32 0.01, %v3001_v59  ;;  %vm3046_vm4 = vcmp.gt.f32.partialorder %v3001_v59, 0.0 }
 0xc2f   : > { %v3006_v4 = vpop.f32.mrf.mxu1 }
 0xc30   : > { %v3007_v40 = vadd.f32 %v3006_v4, %v2876_v50  ;;  %vm3047_vm3 = vcmp.gt.f32.partialorder %v3005_v54, 0.0 }
 0xc31   : > { %v3010_v3 = vpop.f32.mrf.mxu1 }
 0xc32   : > { %v3011_v51 = vadd.f32 %v3010_v3, %v2881_v34  ;;  %v3064_v0 = vmul.f32 0.01, %v3007_v40  ;;  %vm3048_vm1 = vcmp.gt.f32.partialorder %v3007_v40, 0.0 }
 0xc33   : > { %v3012_v6 = vpop.f32.mrf.mxu1 }
 0xc34   : > { %v3013_v44 = vadd.f32 %v3012_v6, %v2881_v34  ;;  %v3065_v62 = vmul.f32 0.01, %v3011_v51  ;;  %vm3049_vm15 = vcmp.gt.f32.partialorder %v3011_v51, 0.0  ;;  %v3063_v6 = vmul.f32 0.01, %v3005_v54  ;;  %v3149_v34 = vpop.permute.xlu0 %3148 }
 0xc35   : > { %v3016_v8 = vpop.f32.mrf.mxu1 }
 0xc36   : > { %v3017_v38 = vadd.f32 %v3016_v8, %v2886_v30  ;;  %v3066_v60 = vmul.f32 0.01, %v3013_v44  ;;  %vm3050_vm14 = vcmp.gt.f32.partialorder %v3013_v44, 0.0  ;;  %v3081_v63 = vsel %vm3049_vm15, %v3011_v51, %v3065_v62 }
 0xc37   : > { %v3018_v10 = vpop.f32.mrf.mxu1 }
 0xc38   : > { %v3019_v36 = vadd.f32 %v3018_v10, %v2886_v30  ;;  %v3067_v18 = vmul.f32 0.01, %v3017_v38  ;;  %vm3051_vm13 = vcmp.gt.f32.partialorder %v3017_v38, 0.0  ;;  %v3082_v10 = vsel %vm3050_vm14, %v3013_v44, %v3066_v60 }
 0xc39   : > { %v3022_v11 = vpop.f32.mrf.mxu1 }
 0xc3a   : > { %v3023_v29 = vadd.f32 %v3022_v11, %v2891_v17  ;;  %v3068_v9 = vmul.f32 0.01, %v3019_v36  ;;  %vm3052_vm12 = vcmp.gt.f32.partialorder %v3019_v36, 0.0  ;;  %v3083_v8 = vsel %vm3051_vm13, %v3017_v38, %v3067_v18 }
 0xc3b   : > { %v3024_v1 = vpop.f32.mrf.mxu1  ;;  %v3061_v11 = vmul.f32 0.01, %v2999_v53 }
 0xc3c   : > { %v3025_v31 = vadd.f32 %v3024_v1, %v2891_v17  ;;  %v3069_v52 = vmul.f32 0.01, %v3023_v29  ;;  %vm3053_vm11 = vcmp.gt.f32.partialorder %v3023_v29, 0.0  ;;  %v3084_v3 = vsel %vm3052_vm12, %v3019_v36, %v3068_v9  ;;  %v4022_v17 = vld [vmem:[%s5399_s3 + $0xe0] sm:$0xff] }
 0xc3d   : > { %v3028_v12 = vpop.f32.mrf.mxu1  ;;  %v3080_v1 = vsel %vm3048_vm1, %v3007_v40, %v3064_v0 }
 0xc3e   : > { %v3029_v23 = vadd.f32 %v3028_v12, %v2896_v56  ;;  %v3070_v45 = vmul.f32 0.01, %v3025_v31  ;;  %vm3054_vm10 = vcmp.gt.f32.partialorder %v3025_v31, 0.0  ;;  %v3085_v4 = vsel %vm3053_vm11, %v3023_v29, %v3069_v52 }
 0xc3f   : > { %v3030_v14 = vpop.f32.mrf.mxu1  ;;  %v3078_v12 = vsel %vm3046_vm4, %v3001_v59, %v3062_v47 }
 0xc40   : > { %v3031_v28 = vadd.f32 %v3030_v14, %v2896_v56  ;;  %v3071_v39 = vmul.f32 0.01, %v3029_v23  ;;  %vm3055_vm9 = vcmp.gt.f32.partialorder %v3029_v23, 0.0  ;;  %v3086_v61 = vsel %vm3054_vm10, %v3025_v31, %v3070_v45  ;;  %v4020_v56 = vld [vmem:[%s5399_s3 + $0xd0] sm:$0xff] }
 0xc41   : > { %v3034_v20 = vpop.f32.mrf.mxu1 }
 0xc42   : > { %v3035_v16 = vadd.f32 %v3034_v20, %v2901_v13  ;;  %v3072_v24 = vmul.f32 0.01, %v3031_v28  ;;  %vm3056_vm8 = vcmp.gt.f32.partialorder %v3031_v28, 0.0  ;;  %v3087_v19 = vsel %vm3055_vm9, %v3029_v23, %v3071_v39  ;;  %v4019_v20 = vld [vmem:[%s5399_s3 + $0xc8] sm:$0xff] }
 0xc43   : > { %v3036_v57 = vpop.f32.mrf.mxu1 }
 0xc44   : > { %v3037_v22 = vadd.f32 %v3036_v57, %v2901_v13  ;;  %v3073_v35 = vmul.f32 0.01, %v3035_v16  ;;  %vm3057_vm7 = vcmp.gt.f32.partialorder %v3035_v16, 0.0  ;;  %v3088_v58 = vsel %vm3056_vm8, %v3031_v28, %v3072_v24  ;;  %v4018_v13 = vld [vmem:[%s5399_s3 + $0xc0] sm:$0xff]  ;;  %v4021_v57 = vld [vmem:[%s5399_s3 + $0xd8] sm:$0xff] }
 0xc45   : > { %v3040_v21 = vpop.f32.mrf.mxu1 }
 0xc46   : > { %v3041_v27 = vadd.f32 %v3040_v21, %v2906_v7  ;;  %v3074_v32 = vmul.f32 0.01, %v3037_v22  ;;  %vm3058_vm6 = vcmp.gt.f32.partialorder %v3037_v22, 0.0  ;;  %v3089_v46 = vsel %vm3057_vm7, %v3035_v16, %v3073_v35  ;;  %v4023_v21 = vld [vmem:[%s5399_s3 + $0xe8] sm:$0xff]  ;;  %v3144_v35 = vpop.permute.xlu1 %3143 }
 0xc47   : > { %v3042_v25 = vpop.f32.mrf.mxu1 }
 0xc48   : > { %v3043_v15 = vadd.f32 %v3042_v25, %v2906_v7  ;;  %v3075_v26 = vmul.f32 0.01, %v3041_v27  ;;  %vm3059_vm0 = vcmp.gt.f32.partialorder %v3041_v27, 0.0  ;;  %v3090_v48 = vsel %vm3058_vm6, %v3037_v22, %v3074_v32  ;;  %v4024_v22 = vld [vmem:[%s5399_s3 + $0xf0] sm:$0xff] }
 0xc49   : > { %v3079_v7 = vsel %vm3047_vm3, %v3005_v54, %v3063_v6 }
 0xc4a   : > { %v3076_v33 = vmul.f32 0.01, %v3043_v15  ;;  %vm3060_vm5 = vcmp.gt.f32.partialorder %v3043_v15, 0.0  ;;  %v3091_v41 = vsel %vm3059_vm0, %v3041_v27, %v3075_v26  ;;  %vm3045_vm0 = vcmp.gt.f32.partialorder %v2999_v53, 0.0  ;;  %v4025_v27 = vld [vmem:[%s5399_s3 + $0xf8] sm:$0xff]  ;;  %v3134_v39 = vpop.permute.xlu1 %3133 }
 0xc4b   : > { %v3077_v14 = vsel %vm3045_vm0, %v2999_v53, %v3061_v11 }
 0xc4c   : > { %v3092_v37 = vsel %vm3060_vm5, %v3043_v15, %v3076_v33 }
 0xc4d   : > { %3191 = vmatprep.subr.mxu0 %v3092_v37  ;;  %v3139_v37 = vpop.permute.xlu0 %3138 }
 0xc4e   : > { %3192 = vmatpush1.msra.mxu0 %v3091_v41  ;;  %v3124_v18 = vpop.permute.xlu1 %3123 }
 0xc4f   : > { %3193 = vmatprep.subr.mxu0 %v3090_v48 }
 0xc50   : > { %3194 = vmatpush1.msra.mxu0 %v3089_v46 }
 0xc51   : > { %3195 = vmatprep.subr.mxu0 %v3088_v58  ;;  %v3129_v46 = vpop.permute.xlu0 %3128 }
 0xc52   : > { %3196 = vmatpush1.msra.mxu0 %v3087_v19 }
 0xc53   : > { %3197 = vmatprep.subr.mxu0 %v3086_v61 }
 0xc54   : > { %3198 = vmatpush1.msra.mxu0 %v3085_v4 }
 0xc55   : > { %3199 = vmatprep.subr.mxu0 %v3084_v3  ;;  %v3119_v47 = vpop.permute.xlu0 %3118 }
 0xc56   : > { %3200 = vmatpush1.msra.mxu0 %v3083_v8 }
 0xc57   : > { %3201 = vmatprep.subr.mxu0 %v3082_v10 }
 0xc58   : > { %3202 = vmatpush1.msra.mxu0 %v3081_v63 }
 0xc59   : > { %3203 = vmatprep.subr.mxu0 %v3080_v1 }
 0xc5a   : > { %3204 = vmatpush1.msra.mxu0 %v3079_v7 }
 0xc5b   : > { %3205 = vmatprep.subr.mxu0 %v3078_v12 }
 0xc5c   : > { %3206 = vmatpush1.msra.mxu0 %v3077_v14 }
 0xc5d   : > { %4034 = vmatmul.mubr.msk.f32.vlgmr.msra.gmra.mxu0 %vm634_vm2, %v4018_v13  ;;  %v3114_v13 = vpop.permute.xlu1 %3113 }
 0xc5e   : > { %3245 = vmatprep.mubr.f32.mxu0 %v4223_v5 }
 0xc61   : > { %4035 = vmatmul.mubr.msk.f32.gmra.mxu0 %vm634_vm2, %v4019_v20 }
 0xc62   : > { %3251 = vmatprep.mubr.f32.mxu0 %v4223_v5 }
 0xc65   : > { %4036 = vmatmul.mubr.msk.f32.gmra.mxu0 %vm634_vm2, %v4020_v56 }
 0xc66   : > { %3257 = vmatprep.mubr.f32.mxu0 %v4223_v5 }
 0xc69   : > { %4037 = vmatmul.mubr.msk.f32.gmra.mxu0 %vm634_vm2, %v4021_v57 }
 0xc6a   : > { %3263 = vmatprep.mubr.f32.mxu0 %v4223_v5 }
 0xc6d   : > { %4038 = vmatmul.mubr.msk.f32.gmra.mxu0 %vm634_vm2, %v4022_v17 }
 0xc6e   : > { %3269 = vmatprep.mubr.f32.mxu0 %v4223_v5 }
 0xc71   : > { %4039 = vmatmul.mubr.msk.f32.gmra.mxu0 %vm634_vm2, %v4023_v21 }
 0xc72   : > { %3275 = vmatprep.mubr.f32.mxu0 %v4223_v5 }
 0xc75   : > { %4040 = vmatmul.mubr.msk.f32.gmra.mxu0 %vm634_vm2, %v4024_v22 }
 0xc76   : > { %3281 = vmatprep.mubr.f32.mxu0 %v4223_v5 }
 0xc79   : > { %4041 = vmatmul.mubr.msk.f32.gmra.mxu0 %vm634_vm2, %v4025_v27 }
 0xc7a   : > { %3665 = vmatprep.mubr.f32.mxu0 %v4223_v5 }
 0xd1d   : > { %v5269_v16 = vpop.f32.mrf.mxu0 }
 0xd1e   : > { %v3242_v22 = vadd.f32 %v5269_v16, %v3114_v13 }
 0xd1f   : > { %v5271_v25 = vpop.f32.mrf.mxu0 }
 0xd20   : > { %v3244_v57 = vadd.f32 %v5271_v25, %v3114_v13 }
 0xd21   : > { %v3247_v28 = vpop.f32.mrf.mxu0 }
 0xd22   : > { %v3248_v14 = vadd.f32 %v3247_v28, %v3119_v47  ;;  %v3305_v25 = vmul.f32 0.01, %v3244_v57  ;;  %vm3289_vm0 = vcmp.gt.f32.partialorder %v3244_v57, 0.0 }
 0xd23   : > { %v3249_v15 = vpop.f32.mrf.mxu0 }
 0xd24   : > { %v3250_v1 = vadd.f32 %v3249_v15, %v3119_v47  ;;  %vm3290_vm4 = vcmp.gt.f32.partialorder %v3248_v14, 0.0 }
 0xd25   : > { %v3253_v30 = vpop.f32.mrf.mxu0 }
 0xd26   : > { %v3254_v10 = vadd.f32 %v3253_v30, %v3124_v18  ;;  %v3307_v28 = vmul.f32 0.01, %v3250_v1  ;;  %vm3291_vm3 = vcmp.gt.f32.partialorder %v3250_v1, 0.0 }
 0xd27   : > { %v3255_v31 = vpop.f32.mrf.mxu0 }
 0xd28   : > { %v3256_v3 = vadd.f32 %v3255_v31, %v3124_v18  ;;  %v3308_v27 = vmul.f32 0.01, %v3254_v10  ;;  %vm3292_vm1 = vcmp.gt.f32.partialorder %v3254_v10, 0.0  ;;  %v3306_v31 = vmul.f32 0.01, %v3248_v14  ;;  %v3392_v18 = vpop.permute.xlu0 %3391 }
 0xd29   : > { %v3259_v23 = vpop.f32.mrf.mxu0 }
 0xd2a   : > { %v3260_v62 = vadd.f32 %v3259_v23, %v3129_v46  ;;  %v3309_v17 = vmul.f32 0.01, %v3256_v3  ;;  %vm3293_vm15 = vcmp.gt.f32.partialorder %v3256_v3, 0.0  ;;  %v3324_v16 = vsel %vm3292_vm1, %v3254_v10, %v3308_v27 }
 0xd2b   : > { %v3261_v26 = vpop.f32.mrf.mxu0 }
 0xd2c   : > { %v3262_v60 = vadd.f32 %v3261_v26, %v3129_v46  ;;  %v3310_v20 = vmul.f32 0.01, %v3260_v62  ;;  %vm3294_vm14 = vcmp.gt.f32.partialorder %v3260_v62, 0.0  ;;  %v3325_v26 = vsel %vm3293_vm15, %v3256_v3, %v3309_v17 }
 0xd2d   : > { %v3265_v32 = vpop.f32.mrf.mxu0 }
 0xd2e   : > { %v3266_v19 = vadd.f32 %v3265_v32, %v3134_v39  ;;  %v3311_v7 = vmul.f32 0.01, %v3262_v60  ;;  %vm3295_vm13 = vcmp.gt.f32.partialorder %v3262_v60, 0.0  ;;  %v3326_v23 = vsel %vm3294_vm14, %v3260_v62, %v3310_v20 }
 0xd2f   : > { %v3267_v33 = vpop.f32.mrf.mxu0  ;;  %v3304_v32 = vmul.f32 0.01, %v3242_v22 }
 0xd30   : > { %v3268_v40 = vadd.f32 %v3267_v33, %v3134_v39  ;;  %v3312_v11 = vmul.f32 0.01, %v3266_v19  ;;  %vm3296_vm12 = vcmp.gt.f32.partialorder %v3266_v19, 0.0  ;;  %v3327_v30 = vsel %vm3295_vm13, %v3262_v60, %v3311_v7  ;;  %v4046_v39 = vld [vmem:[%s5401_s5 + $0xe0] sm:$0xff] }
 0xd31   : > { %v3271_v29 = vpop.f32.mrf.mxu0  ;;  %v3323_v33 = vsel %vm3291_vm3, %v3250_v1, %v3307_v28 }
 0xd32   : > { %v3272_v9 = vadd.f32 %v3271_v29, %v3139_v37  ;;  %v3313_v6 = vmul.f32 0.01, %v3268_v40  ;;  %vm3297_vm11 = vcmp.gt.f32.partialorder %v3268_v40, 0.0  ;;  %v3328_v15 = vsel %vm3296_vm12, %v3266_v19, %v3312_v11 }
 0xd33   : > { %v3273_v36 = vpop.f32.mrf.mxu0  ;;  %v3321_v29 = vsel %vm3289_vm0, %v3244_v57, %v3305_v25 }
 0xd34   : > { %v3274_v51 = vadd.f32 %v3273_v36, %v3139_v37  ;;  %v3314_v4 = vmul.f32 0.01, %v3272_v9  ;;  %vm3298_vm10 = vcmp.gt.f32.partialorder %v3272_v9, 0.0  ;;  %v3329_v21 = vsel %vm3297_vm11, %v3268_v40, %v3313_v6  ;;  %v4044_v37 = vld [vmem:[%s5401_s5 + $0xd0] sm:$0xff] }
 0xd35   : > { %v3277_v24 = vpop.f32.mrf.mxu0 }
 0xd36   : > { %v3278_v48 = vadd.f32 %v3277_v24, %v3144_v35  ;;  %v3315_v61 = vmul.f32 0.01, %v3274_v51  ;;  %vm3299_vm9 = vcmp.gt.f32.partialorder %v3274_v51, 0.0  ;;  %v3330_v56 = vsel %vm3298_vm10, %v3272_v9, %v3314_v4  ;;  %v4043_v24 = vld [vmem:[%s5401_s5 + $0xc8] sm:$0xff] }
 0xd37   : > { %v3279_v38 = vpop.f32.mrf.mxu0 }
 0xd38   : > { %v3280_v44 = vadd.f32 %v3279_v38, %v3144_v35  ;;  %v3316_v59 = vmul.f32 0.01, %v3278_v48  ;;  %vm3300_vm8 = vcmp.gt.f32.partialorder %v3278_v48, 0.0  ;;  %v3331_v12 = vsel %vm3299_vm9, %v3274_v51, %v3315_v61  ;;  %v4042_v35 = vld [vmem:[%s5401_s5 + $0xc0] sm:$0xff]  ;;  %v4045_v38 = vld [vmem:[%s5401_s5 + $0xd8] sm:$0xff] }
 0xd39   : > { %v3283_v41 = vpop.f32.mrf.mxu0 }
 0xd3a   : > { %v3284_v45 = vadd.f32 %v3283_v41, %v3149_v34  ;;  %v3317_v42 = vmul.f32 0.01, %v3280_v44  ;;  %vm3301_vm7 = vcmp.gt.f32.partialorder %v3280_v44, 0.0  ;;  %v3332_v63 = vsel %vm3300_vm8, %v3278_v48, %v3316_v59  ;;  %v4047_v41 = vld [vmem:[%s5401_s5 + $0xe8] sm:$0xff]  ;;  %v3387_v59 = vpop.permute.xlu1 %3386 }
 0xd3b   : > { %v3285_v50 = vpop.f32.mrf.mxu0 }
 0xd3c   : > { %v3286_v52 = vadd.f32 %v3285_v50, %v3149_v34  ;;  %v3318_v58 = vmul.f32 0.01, %v3284_v45  ;;  %vm3302_vm5 = vcmp.gt.f32.partialorder %v3284_v45, 0.0  ;;  %v3333_v8 = vsel %vm3301_vm7, %v3280_v44, %v3317_v42  ;;  %v4048_v44 = vld [vmem:[%s5401_s5 + $0xf0] sm:$0xff] }
 0xd3d   : > { %v3322_v34 = vsel %vm3290_vm4, %v3248_v14, %v3306_v31 }
 0xd3e   : > { %v3319_v54 = vmul.f32 0.01, %v3286_v52  ;;  %vm3303_vm6 = vcmp.gt.f32.partialorder %v3286_v52, 0.0  ;;  %v3334_v0 = vsel %vm3302_vm5, %v3284_v45, %v3318_v58  ;;  %vm3288_vm5 = vcmp.gt.f32.partialorder %v3242_v22, 0.0  ;;  %v4049_v45 = vld [vmem:[%s5401_s5 + $0xf8] sm:$0xff]  ;;  %v3377_v4 = vpop.permute.xlu1 %3376 }
 0xd3f   : > { %v3320_v36 = vsel %vm3288_vm5, %v3242_v22, %v3304_v32 }
 0xd40   : > { %v3335_v53 = vsel %vm3303_vm6, %v3286_v52, %v3319_v54 }
 0xd41   : > { %3434 = vmatprep.subr.mxu1 %v3335_v53  ;;  %v3382_v53 = vpop.permute.xlu0 %3381 }
 0xd42   : > { %3435 = vmatpush1.msra.mxu1 %v3334_v0  ;;  %v3367_v20 = vpop.permute.xlu1 %3366 }
 0xd43   : > { %3436 = vmatprep.subr.mxu1 %v3333_v8 }
 0xd44   : > { %3437 = vmatpush1.msra.mxu1 %v3332_v63 }
 0xd45   : > { %3438 = vmatprep.subr.mxu1 %v3331_v12  ;;  %v3372_v63 = vpop.permute.xlu0 %3371 }
 0xd46   : > { %3439 = vmatpush1.msra.mxu1 %v3330_v56 }
 0xd47   : > { %3440 = vmatprep.subr.mxu1 %v3329_v21 }
 0xd48   : > { %3441 = vmatpush1.msra.mxu1 %v3328_v15 }
 0xd49   : > { %3442 = vmatprep.subr.mxu1 %v3327_v30  ;;  %v3362_v25 = vpop.permute.xlu0 %3361 }
 0xd4a   : > { %3443 = vmatpush1.msra.mxu1 %v3326_v23 }
 0xd4b   : > { %3444 = vmatprep.subr.mxu1 %v3325_v26 }
 0xd4c   : > { %3445 = vmatpush1.msra.mxu1 %v3324_v16 }
 0xd4d   : > { %3446 = vmatprep.subr.mxu1 %v3323_v33 }
 0xd4e   : > { %3447 = vmatpush1.msra.mxu1 %v3322_v34 }
 0xd4f   : > { %3448 = vmatprep.subr.mxu1 %v3321_v29 }
 0xd50   : > { %3449 = vmatpush1.msra.mxu1 %v3320_v36 }
 0xd51   : > { %4058 = vmatmul.mubr.msk.f32.vlgmr.msra.gmra.mxu1 %vm634_vm2, %v4042_v35  ;;  %v3357_v35 = vpop.permute.xlu1 %3356 }
 0xd52   : > { %3488 = vmatprep.mubr.f32.mxu1 %v4223_v5 }
 0xd55   : > { %4059 = vmatmul.mubr.msk.f32.gmra.mxu1 %vm634_vm2, %v4043_v24 }
 0xd56   : > { %3494 = vmatprep.mubr.f32.mxu1 %v4223_v5 }
 0xd59   : > { %4060 = vmatmul.mubr.msk.f32.gmra.mxu1 %vm634_vm2, %v4044_v37 }
 0xd5a   : > { %3500 = vmatprep.mubr.f32.mxu1 %v4223_v5 }
 0xd5d   : > { %4061 = vmatmul.mubr.msk.f32.gmra.mxu1 %vm634_vm2, %v4045_v38 }
 0xd5e   : > { %3506 = vmatprep.mubr.f32.mxu1 %v4223_v5 }
 0xd61   : > { %4062 = vmatmul.mubr.msk.f32.gmra.mxu1 %vm634_vm2, %v4046_v39 }
 0xd62   : > { %3512 = vmatprep.mubr.f32.mxu1 %v4223_v5 }
 0xd65   : > { %4063 = vmatmul.mubr.msk.f32.gmra.mxu1 %vm634_vm2, %v4047_v41 }
 0xd66   : > { %3518 = vmatprep.mubr.f32.mxu1 %v4223_v5 }
 0xd69   : > { %4064 = vmatmul.mubr.msk.f32.gmra.mxu1 %vm634_vm2, %v4048_v44 }
 0xd6a   : > { %3524 = vmatprep.mubr.f32.mxu1 %v4223_v5 }
 0xd6d   : > { %4065 = vmatmul.mubr.msk.f32.gmra.mxu1 %vm634_vm2, %v4049_v45 }
 0xe11   : > { %v5319_v48 = vpop.f32.mrf.mxu1 }
 0xe12   : > { %v3485_v44 = vadd.f32 %v5319_v48, %v3357_v35 }
 0xe13   : > { %v5321_v50 = vpop.f32.mrf.mxu1 }
 0xe14   : > { %v3487_v38 = vadd.f32 %v5321_v50, %v3357_v35 }
 0xe15   : > { %v3490_v51 = vpop.f32.mrf.mxu1 }
 0xe16   : > { %v3491_v36 = vadd.f32 %v3490_v51, %v3362_v25  ;;  %v3548_v50 = vmul.f32 0.01, %v3487_v38  ;;  %vm3532_vm5 = vcmp.gt.f32.partialorder %v3487_v38, 0.0 }
 0xe17   : > { %v3492_v52 = vpop.f32.mrf.mxu1 }
 0xe18   : > { %v3493_v33 = vadd.f32 %v3492_v52, %v3362_v25  ;;  %vm3533_vm0 = vcmp.gt.f32.partialorder %v3491_v36, 0.0  ;;  %v3593_v25 = vpop.permute.xlu1 %3592 }
 0xe19   : > { %v3496_v46 = vpop.f32.mrf.mxu1 }
 0xe1a   : > { %v3497_v26 = vadd.f32 %v3496_v46, %v3367_v20  ;;  %v3550_v51 = vmul.f32 0.01, %v3493_v33  ;;  %vm3534_vm4 = vcmp.gt.f32.partialorder %v3493_v33, 0.0 }
 0xe1b   : > { %v3498_v40 = vpop.f32.mrf.mxu1 }
 0xe1c   : > { %v3499_v30 = vadd.f32 %v3498_v40, %v3367_v20  ;;  %v3551_v45 = vmul.f32 0.01, %v3497_v26  ;;  %vm3535_vm3 = vcmp.gt.f32.partialorder %v3497_v26, 0.0  ;;  %v3549_v40 = vmul.f32 0.01, %v3491_v36 }
 0xe1d   : > { %v3502_v9 = vpop.f32.mrf.mxu1 }
 0xe1e   : > { %v3503_v27 = vadd.f32 %v3502_v9, %v3372_v63  ;;  %v3552_v39 = vmul.f32 0.01, %v3499_v30  ;;  %vm3536_vm1 = vcmp.gt.f32.partialorder %v3499_v30, 0.0  ;;  %v3567_v48 = vsel %vm3535_vm3, %v3497_v26, %v3551_v45 }
 0xe1f   : > { %v3504_v58 = vpop.f32.mrf.mxu1 }
 0xe20   : > { %v3505_v17 = vadd.f32 %v3504_v58, %v3372_v63  ;;  %v3553_v24 = vmul.f32 0.01, %v3503_v27  ;;  %vm3537_vm15 = vcmp.gt.f32.partialorder %v3503_v27, 0.0  ;;  %v3568_v58 = vsel %vm3536_vm1, %v3499_v30, %v3552_v39 }
 0xe21   : > { %v3508_v42 = vpop.f32.mrf.mxu1 }
 0xe22   : > { %v3509_v56 = vadd.f32 %v3508_v42, %v3377_v4  ;;  %v3554_v34 = vmul.f32 0.01, %v3505_v17  ;;  %vm3538_vm14 = vcmp.gt.f32.partialorder %v3505_v17, 0.0  ;;  %v3569_v9 = vsel %vm3537_vm15, %v3503_v27, %v3553_v24 }
 0xe23   : > { %v3510_v54 = vpop.f32.mrf.mxu1  ;;  %v3547_v42 = vmul.f32 0.01, %v3485_v44 }
 0xe24   : > { %v3511_v1 = vadd.f32 %v3510_v54, %v3377_v4  ;;  %v3555_v32 = vmul.f32 0.01, %v3509_v56  ;;  %vm3539_vm13 = vcmp.gt.f32.partialorder %v3509_v56, 0.0  ;;  %v3570_v46 = vsel %vm3538_vm14, %v3505_v17, %v3554_v34 }
 0xe25   : > { %v3514_v19 = vpop.f32.mrf.mxu1  ;;  %v3566_v54 = vsel %vm3534_vm4, %v3493_v33, %v3550_v51 }
 0xe26   : > { %v3515_v7 = vadd.f32 %v3514_v19, %v3382_v53  ;;  %v3556_v31 = vmul.f32 0.01, %v3511_v1  ;;  %vm3540_vm12 = vcmp.gt.f32.partialorder %v3511_v1, 0.0  ;;  %v3571_v52 = vsel %vm3539_vm13, %v3509_v56, %v3555_v32 }
 0xe27   : > { %v3516_v60 = vpop.f32.mrf.mxu1  ;;  %v3564_v19 = vsel %vm3532_vm5, %v3487_v38, %v3548_v50  ;;  %v3710_v56 = vlaneseq }
 0xe28   : > { %v3517_v10 = vadd.f32 %v3516_v60, %v3382_v53  ;;  %v3557_v15 = vmul.f32 0.01, %v3515_v7  ;;  %vm3541_vm11 = vcmp.gt.f32.partialorder %v3515_v7, 0.0  ;;  %v3572_v41 = vsel %vm3540_vm12, %v3511_v1, %v3556_v31  ;;  %v3588_v53 = vpop.permute.xlu0 %3587 }
 0xe29   : > { %v3520_v61 = vpop.f32.mrf.mxu1  ;;  %v3711_v27 = vshrl.u32 %v3710_v56, 7 }
 0xe2a   : > { %v3521_v8 = vadd.f32 %v3520_v61, %v3387_v59  ;;  %v3558_v21 = vmul.f32 0.01, %v3517_v10  ;;  %vm3542_vm10 = vcmp.gt.f32.partialorder %v3517_v10, 0.0  ;;  %v3573_v37 = vsel %vm3541_vm11, %v3515_v7, %v3557_v15  ;;  %v4067_v61 = vld [vmem:[%s5403_s7 + $0x38] sm:$0xff] }
 0xe2b   : > { %v3522_v62 = vpop.f32.mrf.mxu1 }
 0xe2c   : > { %v3523_v3 = vadd.f32 %v3522_v62, %v3387_v59  ;;  %v3559_v57 = vmul.f32 0.01, %v3521_v8  ;;  %vm3543_vm9 = vcmp.gt.f32.partialorder %v3521_v8, 0.0  ;;  %v3574_v29 = vsel %vm3542_vm10, %v3517_v10, %v3558_v21  ;;  %v4066_v59 = vld [vmem:[%s5403_s7 + $0x30] sm:$0xff] }
 0xe2d   : > { %v3526_v0 = vpop.f32.mrf.mxu1 }
 0xe2e   : > { %v3527_v6 = vadd.f32 %v3526_v0, %v3392_v18  ;;  %v3560_v13 = vmul.f32 0.01, %v3523_v3  ;;  %vm3544_vm8 = vcmp.gt.f32.partialorder %v3523_v3, 0.0  ;;  %v3575_v16 = vsel %vm3543_vm9, %v3521_v8, %v3559_v57 }
 0xe2f   : > { %v3528_v47 = vpop.f32.mrf.mxu1 }
 0xe30   : > { %v3529_v11 = vadd.f32 %v3528_v47, %v3392_v18  ;;  %v3561_v12 = vmul.f32 0.01, %v3527_v6  ;;  %vm3545_vm6 = vcmp.gt.f32.partialorder %v3527_v6, 0.0  ;;  %v3576_v23 = vsel %vm3544_vm8, %v3523_v3, %v3560_v13 }
 0xe31   : > { %v3565_v18 = vsel %vm3533_vm0, %v3491_v36, %v3549_v40 }
 0xe32   : > { %v3562_v14 = vmul.f32 0.01, %v3529_v11  ;;  %vm3546_vm7 = vcmp.gt.f32.partialorder %v3529_v11, 0.0  ;;  %v3577_v28 = vsel %vm3545_vm6, %v3527_v6, %v3561_v12  ;;  %vm3531_vm6 = vcmp.gt.f32.partialorder %v3485_v44, 0.0 }
 0xe33   : > { %v3563_v60 = vsel %vm3531_vm6, %v3485_v44, %v3547_v42 }
 0xe34   : > { %v3578_v22 = vsel %vm3546_vm7, %v3529_v11, %v3562_v14  ;;  %v4224_v14 = vmov 1966171168  }
 0xe35   : > { %3617 = vmatprep.subr.mxu0 %v3578_v22  ;;  %v3708_v20 = vunpack.c.l.s4 %v4224_v14 }
 0xe36   : > { %3618 = vmatpush1.msra.mxu0 %v3577_v28 }
 0xe37   : > { %3619 = vmatprep.subr.mxu0 %v3576_v23  ;;  %v3709_v22 = vunpack.c.0.s8 %v3708_v20 }
 0xe38   : > { %3620 = vmatpush1.msra.mxu0 %v3575_v16 }
 0xe39   : > { %3621 = vmatprep.subr.mxu0 %v3574_v29  ;;  %v3712_v31 = vsub.s32 %v3709_v22, %v3711_v27 }
 0xe3a   : > { %3622 = vmatpush1.msra.mxu0 %v3573_v37 }
 0xe3b   : > { %3623 = vmatprep.subr.mxu0 %v3572_v41 }
 0xe3c   : > { %3624 = vmatpush1.msra.mxu0 %v3571_v52 }
 0xe3d   : > { %3625 = vmatprep.subr.mxu0 %v3570_v46 }
 0xe3e   : > { %3626 = vmatpush1.msra.mxu0 %v3569_v9 }
 0xe3f   : > { %3627 = vmatprep.subr.mxu0 %v3568_v58 }
 0xe40   : > { %3628 = vmatpush1.msra.mxu0 %v3567_v48 }
 0xe41   : > { %3629 = vmatprep.subr.mxu0 %v3566_v54 }
 0xe42   : > { %3630 = vmatpush1.msra.mxu0 %v3565_v18 }
 0xe43   : > { %3631 = vmatprep.subr.mxu0 %v3564_v19 }
 0xe44   : > { %3632 = vmatpush1.msra.mxu0 %v3563_v60 }
 0xe45   : > { %4070 = vmatmul.mubr.msk.f32.vlgmr.msra.gmra.mxu0 %vm634_vm2, %v4066_v59 }
 0xe46   : > { %3671 = vmatprep.mubr.f32.mxu0 %v4223_v5 }
 0xe49   : > { %4071 = vmatmul.mubr.msk.f32.gmra.mxu0 %vm634_vm2, %v4067_v61  ;;  %vm3724_vm2 = vcmp.lt.s32.totalorder %v3710_v56, 256 }
 0xf05   : > { %v3667_v62 = vpop.f32.mrf.mxu0 }
 0xf06   : > { %v3668_v4 = vadd.f32 %v3667_v62, %v3588_v53 }
 0xf07   : > { %v3669_v0 = vpop.f32.mrf.mxu0 }
 0xf08   : > { %4150 = vtanh.f32 %v3668_v4  ;;  %v3670_v3 = vadd.f32 %v3669_v0, %v3588_v53 }
 0xf09   : > { %v3673_v15 = vpop.f32.mrf.mxu0 }
 0xf0a   : > { %4152 = vtanh.f32 %v3670_v3  ;;  %v3674_v32 = vadd.f32 %v3673_v15, %v3593_v25 }
 0xf0b   : > { %v3675_v26 = vpop.f32.mrf.mxu0 }
 0xf0c   : > { %v3676_v36 = vadd.f32 %v3675_v26, %v3593_v25 }
 0xf15   : > { %v4151_v6 = vpop.eup %4150 }
 0xf16   : > { %v3680_v8 = vmul.f32 1.442695, %v4151_v6  ;;  %v3688_v47 = vadd.f32 %v4151_v6, %v5166_v43 }
 0xf17   : > { %v4153_v10 = vpop.eup %4152 }
 0xf18   : > { %4154 = vpow2.f32 %v3680_v8  ;;  %v3692_v5 = vrot.slane %v3688_v47, 4  ;;  %v3682_v11 = vmul.f32 1.442695, %v4153_v10  ;;  %v3689_v63 = vadd.f32 %v4153_v10, %v5168_v49 }
 0xf1a   : > { %v3693_v1 = vadd.f32 %v3692_v5, %v3688_v47  ;;  %4156 = vpow2.f32 %v3682_v11  ;;  %v3698_v7 = vrot.slane %v3689_v63, 4 }
 0xf1c   : > { %v3694_v12 = vrot.slane %v3693_v1, 2  ;;  %v3699_v13 = vadd.f32 %v3698_v7, %v3689_v63 }
 0xf1e   : > { %v3695_v57 = vadd.f32 %v3694_v12, %v3693_v1  ;;  %v3700_v17 = vrot.slane %v3699_v13, 2 }
 0xf20   : > { %v3696_v43 = vrot.slane %v3695_v57, 1  ;;  %v3701_v21 = vadd.f32 %v3700_v17, %v3699_v13 }
 0xf22   : > { %v3702_v49 = vrot.slane %v3701_v21, 1  ;;  %v3697_v28 = vadd.f32 %v3696_v43, %v3695_v57 }
 0xf24   : > { %v3703_v30 = vadd.f32 %v3702_v49, %v3701_v21 }
 0xf25   : > { %v4155_v23 = vpop.eup %4154 }
 0xf26   : > { %v3684_v16 = vmul.f32 %v4155_v23, %v5174_v55  ;;  %v3706_v33 = vcombine.low %v3697_v28, %v3703_v30 }
 0xf27   : > { %v4157_v34 = vpop.eup %4156 }
 0xf28   : > { %v3686_v29 = vadd.f32 %v3684_v16, %v3674_v32  ;;  %v3713_v35 = vrot.slane %v3706_v33, %v3712_v31  ;;  %v3685_v24 = vmul.f32 %v4157_v34, %v5172_v2 }
 0xf2a   : > { %3690 = vst [vmem:[%s326_s23] sm:$0xff] %v3686_v29  ;;  %v3720_v55 = vrot.slane %v3713_v35, %v3712_v31  ;;  %v3687_v37 = vadd.f32 %v3685_v24, %v3676_v36 }
 0xf2c   : > { %4072 = vst.msk [vmem:[%s326_s23 + $0x10] ss:$8 sm:$0x3] %vm3724_vm2, %v3720_v55  ;;  %3691 = vst [vmem:[%s326_s23 + $0x8] sm:$0xff] %v3687_v37 }
 0xf2d   : > { %4173 = shalt.err (!%p4170_p3)
}
 0xf2e   : > { %s4174_s17 = scalar_lea.hbm %s5352_s27, 512  ;;  %s4178_s24 = scalar_lea.hbm %s5405_s9, 1024 }
 0xf2f   : > { %p4175_p4 = scmp.ne.s32.totalorder %s5352_s27, %s4174_s17  ;;  %p4179_p9 = scmp.lt.s32.totalorder %s5352_s27, %s5405_s9 }
 0xf30   : > { %p4180_p10 = scmp.lt.s32.totalorder %s4178_s24, %s4174_s17 }
 0xf31   : > { %p4176_p7 = pnand %p4175_p4, %p4317_p5 }
 0xf32   : > { %p4181_p11 = por %p4180_p10, %p4179_p9 }
 0xf33   : > { %p4177_p8 = pneg %p4176_p7 }
 0xf35   : > { %p4182_p12 = pnand %p4181_p11, %p4177_p8 }
 0xf37   : > { %4185 = shalt.err (!%p4182_p12)
}
 0xf38   : > { %s4226_s28 = smov 256   ;;  %s4227_s29 = smov 512  }
 0xf39   : > { %s4228_s14 = smov 16  }
 0xf3a   : > { %4079 = dma.vmem_to_hbm [thread:$0]  (%p4317_p5), %s5346_s21, 512, %s5352_s27, %s5356_s13, %s4226_s28, %s4227_s29, %s4228_s14  }
 0xf3b PF: > { %p4085_p13 = scmp.ge.s32.totalorder %s4220_s12, 2  ;;  %s3758_s16 = sand.u32 1, %s4208_s30  }
 0xf3c   : > { %s3759_s17 = scalar_lea.sflag [#allocation3], %s3758_s16 }
 0xf3d   : > { %p4082_p0 = pnand %p4085_p13, %p4321_p6 }
 0xf3f   : > { %p4083_p1 = pneg %p4082_p0 }
 0xf41   : > { %4203 = dma.done.wait (%p4083_p1), %s3759_s17, 512  }
 0xf42   : > { %4205 = vsyncadd (%p4083_p1), %s3759_s17, 4294966784  ;;  %p19_p2 = scmp.ge.s32.totalorder %s4304_s15, 4   ;;  %s5408_s30 = smov %s4212_s10 }
 0xf43   : > { %s5409_s10 = smov %s4216_s11  ;;  %s5410_s11 = smov %s4315_s18 }
 0xf44   : > { %s5411_s12 = smov %s4304_s15  ;;  %21 = sbr.rel (!%p19_p2) target bundleno = 3 (0x3), region = 116 }
 0xf49   :  { %3764 = vsyncpa [#allocation3], 1 }
 0xf4a   :  { %3766 = vsyncpa [#allocation3 + $0x1], 1 }

</bundles_post_ra>
